<compile_context>
chip_gen: v6e
topology: v6e:2x2x1
jax: 0.10.0
libtpu: 0.0.40
codegen_flags: <defaults>
</compile_context>

<pallas_src>
import numpy as np
import jax
import jax.numpy as jnp
from jax.experimental import pallas as pl
from jax.experimental.pallas import tpu as pltpu


def _round_up(x, m):
    return ((x + m - 1) // m) * m


# ----------------------------------------------------------------------------
# IGSO(3) helpers (host-side numpy, used only to sample decoy rotations)
# ----------------------------------------------------------------------------
def _expansion(theta, sigma, L=100):
    p = np.zeros_like(theta)
    for l in range(L):
        p += (2 * l + 1) * np.exp(-l * (l + 1) * sigma ** 2 / 2) * \
             np.sin(theta * (l + 0.5)) / np.sin(theta / 2)
    return p


def _density(expansion, theta):
    d = expansion * (1 - np.cos(theta)) / np.pi
    d = np.clip(d, a_min=0.0, a_max=None)
    return d / d.sum()


# ----------------------------------------------------------------------------
# FARigidModel helpers (plain JAX)
# ----------------------------------------------------------------------------
def mean_jax(X, mask):
    # X: (B, N, 3), mask: (B, N)
    num = jnp.sum(X * mask[..., None], axis=1)
    den = jnp.maximum(jnp.sum(mask[..., None], axis=1), 1e-6)
    return num / den


def rotate_jax(X, w):
    # X: (B, N, 14, 3), w: (B, 3)  — Rodrigues rotation, matches FARigidModel.rotate
    B, N = X.shape[0], X.shape[1]
    Xf = X.reshape(B, N * 14, 3)
    wb = jnp.broadcast_to(w[:, None, :], Xf.shape)
    c = jnp.linalg.norm(wb, axis=-1, keepdims=True)
    c1 = jnp.sin(c) / jnp.maximum(c, 1e-6)
    c2 = (1.0 - jnp.cos(c)) / jnp.maximum(c ** 2, 1e-6)
    cr1 = jnp.cross(wb, Xf)
    cr2 = jnp.cross(wb, cr1)
    Xf = Xf + c1 * cr1 + c2 * cr2
    return Xf.reshape(B, N, 14, 3)


# ----------------------------------------------------------------------------
# Synthetic deterministic encoder surrogate (AllAtomEncoder not provided)
# ----------------------------------------------------------------------------
def encoder_apply(params, X, S, A):
    # X: (BB, L, 14, 3), S: (BB, L) int, A: (BB, L, 14) int -> (BB, L, 14, H)
    seq_emb = params["E_seq"][S]                                   # (BB, L, H)
    coord = jnp.einsum("blad,dh->blah", X, params["W_x"])          # (BB, L, 14, H)
    h = jax.nn.silu(coord + seq_emb[:, :, None, :] + params["b_x"])
    return h * (A > 0)[..., None].astype(h.dtype)


# ----------------------------------------------------------------------------
# Pallas kernel: W_o / U_o MLPs + masked energy matmul + reduction
#   - TB batch elements per grid step, "parallel" batch-tile grid axis
#   - MA padded to multiple of 128 (lane-dense), NA padded to multiple of 8
#   - distances computed per-component on the VPU (no K=3 MXU dot)
# ----------------------------------------------------------------------------
def masked_energy_pallas(hb, ht, bx, tx, bmask, tmask, params, threshold):
    # hb: (BB, NA0, H)   ht: (BB, MA0, H)
    # bx: (BB, NA0, 3)   tx: (BB, MA0, 3)
    # bmask: (BB, NA0)   tmask: (BB, MA0)
    BB, NA0, H = hb.shape
    MA0 = ht.shape[1]
    thr2 = float(threshold) ** 2

    NA = _round_up(NA0, 8)
    MAp = _round_up(MA0, 128)

    # batch tile: fold up to 32 batch elements per grid step
    TB = BB if BB <= 32 else 32
    BB_pad = _round_up(BB, TB)
    num_steps = BB_pad // TB

    # pad (padded rows / cols / batches carry zero masks -> contribute nothing)
    hb = jnp.pad(hb, ((0, BB_pad - BB), (0, NA - NA0), (0, 0)))
    bx = jnp.pad(bx, ((0, BB_pad - BB), (0, NA - NA0), (0, 0)))
    bmask = jnp.pad(bmask, ((0, BB_pad - BB), (0, NA - NA0)))[..., None]   # (BB_pad, NA, 1)
    ht = jnp.pad(ht, ((0, BB_pad - BB), (0, MAp - MA0), (0, 0)))
    tx = jnp.pad(tx, ((0, BB_pad - BB), (0, MAp - MA0), (0, 0)))
    tmask = jnp.pad(tmask, ((0, BB_pad - BB), (0, MAp - MA0)))[..., None]  # (BB_pad, MAp, 1)
    txT = jnp.transpose(tx, (0, 2, 1))                                     # (BB_pad, 3, MAp)

    def kernel(hb_ref, ht_ref, bx_ref, txT_ref, bm_ref, tm_ref,
               w1_ref, b1_ref, w2_ref, b2_ref, u1_ref, ub1_ref, out_ref):
        # --- MLPs over all TB batch elements at once (tall MXU matmuls) ---
        hb2 = hb_ref[...].reshape(TB * NA, H)
        ht2 = ht_ref[...].reshape(TB * MAp, H)

        # W_o: Linear -> SiLU -> Linear
        z = jnp.dot(hb2, w1_ref[...], preferred_element_type=jnp.float32) + b1_ref[...]
        z = z * jax.nn.sigmoid(z)
        bind_h = jnp.dot(z, w2_ref[...], preferred_element_type=jnp.float32) + b2_ref[...]

        # U_o: Linear -> SiLU
        y = jnp.dot(ht2, u1_ref[...], preferred_element_type=jnp.float32) + ub1_ref[...]
        tgt_h = y * jax.nn.sigmoid(y)

        # fold validity masks (also zeroes MA padding columns / batch padding)
        bind_h = bind_h.reshape(TB, NA, H) * bm_ref[...]     # (TB, NA, H)
        tgt_h = tgt_h.reshape(TB, MAp, H) * tm_ref[...]      # (TB, MAp, H)

        # batched energy matrix (TB, NA, MAp) on the MXU
        e_mat = jnp.einsum('tih,tjh->tij', bind_h, tgt_h,
                           preferred_element_type=jnp.float32)

        # pairwise squared distances: 3 per-component VPU broadcast passes
        bxv = bx_ref[...]                                    # (TB, NA, 3)
        txv = txT_ref[...]                                   # (TB, 3, MAp)
        d2 = None
        for d in range(3):
            bc = bxv[:, :, d:d + 1]                          # (TB, NA, 1)  lane-broadcast
            tc = txv[:, d:d + 1, :]                          # (TB, 1, MAp) sublane-broadcast
            diff = bc - tc                                   # (TB, NA, MAp)
            sq = diff * diff
            d2 = sq if d2 is None else d2 + sq

        # distance-threshold mask + per-batch masked sum
        p = jnp.where(d2 < thr2, e_mat, 0.0)                 # (TB, NA, MAp)
        e_row = jnp.sum(p, axis=2)                           # (TB, NA)  lane reduce (XLU)
        e_b = jnp.sum(e_row, axis=1, keepdims=True)          # (TB, 1)
        out_ref[...] = jnp.broadcast_to(e_b, (TB, 128))      # lane-dense store

    const2 = lambda b: (0, 0)
    out = pl.pallas_call(
        kernel,
        out_shape=jax.ShapeDtypeStruct((BB_pad, 128), jnp.float32),
        grid=(num_steps,),
        in_specs=[
            pl.BlockSpec((TB, NA, H), lambda b: (b, 0, 0)),
            pl.BlockSpec((TB, MAp, H), lambda b: (b, 0, 0)),
            pl.BlockSpec((TB, NA, 3), lambda b: (b, 0, 0)),
            pl.BlockSpec((TB, 3, MAp), lambda b: (b, 0, 0)),
            pl.BlockSpec((TB, NA, 1), lambda b: (b, 0, 0)),
            pl.BlockSpec((TB, MAp, 1), lambda b: (b, 0, 0)),
            pl.BlockSpec((H, H), const2),
            pl.BlockSpec((1, H), const2),
            pl.BlockSpec((H, H), const2),
            pl.BlockSpec((1, H), const2),
            pl.BlockSpec((H, H), const2),
            pl.BlockSpec((1, H), const2),
        ],
        out_specs=pl.BlockSpec((TB, 128), lambda b: (b, 0)),
        compiler_params=pltpu.CompilerParams(
            dimension_semantics=("parallel",)),
    )(hb, ht, bx, txT, bmask, tmask,
      params["W1"], params["b1"], params["W2"], params["b2"],
      params["U1"], params["ub1"])
    return out[:BB, 0]                                       # (BB,)


# ----------------------------------------------------------------------------
# FADecoyModel.forward
# ----------------------------------------------------------------------------
def fa_decoy_forward(binder, target, params, *, num_decoy=1, threshold=10.0, seed=0):
    true_X, bind_S, bind_A = binder
    tgt_X, tgt_S, tgt_A = target
    B, N = bind_S.shape
    M = tgt_X.shape[1]
    rng = np.random.default_rng(seed)

    # masks (order matches the PyTorch forward: bind_mask before norm-zeroing)
    bind_mask = jnp.minimum(bind_A[:, :, 1], 1).astype(jnp.float32)
    bind_A = bind_A * (jnp.linalg.norm(true_X, axis=-1) > 1e-4).astype(bind_A.dtype)
    tgt_A = tgt_A * (jnp.linalg.norm(tgt_X, axis=-1) > 1e-4).astype(tgt_A.dtype)

    # IGSO(3) density tables (host-side)
    theta_range = np.linspace(0.1, np.pi, 100)
    sigma_range = np.linspace(0, 10.0, 100) + 0.1
    expansion = [_expansion(theta_range, s) for s in sigma_range]
    density = [_density(e, theta_range) for e in expansion]

    decoys = []
    for _ in range(num_decoy):
        sidx = rng.integers(0, 100, size=B)
        tidx = np.array([rng.choice(100, p=density[i]) for i in sidx])
        theta = jnp.asarray(theta_range[tidx], dtype=jnp.float32)
        w = jnp.asarray(rng.standard_normal((B, 3)), dtype=jnp.float32)
        hat_w = w / jnp.maximum(jnp.linalg.norm(w, axis=-1, keepdims=True), 1e-12)
        w = hat_w * theta[:, None]
        eps = jnp.asarray(rng.uniform(0.1, 1.0, size=(B, 1)), dtype=jnp.float32)
        hat_t = jnp.asarray(rng.standard_normal((B, 3)), dtype=jnp.float32) * eps
        center = mean_jax(true_X[:, :, 1], bind_mask)
        bX = true_X - center[:, None, None, :]
        bX = rotate_jax(bX, w) + hat_t[:, None, None, :]
        bX = bX + center[:, None, None, :]
        decoys.append(bX)

    bind_X = jnp.concatenate([true_X] + decoys, axis=0)
    bind_S_all = jnp.concatenate([bind_S] * (num_decoy + 1), axis=0)
    bind_A_all = jnp.concatenate([bind_A] * (num_decoy + 1), axis=0)
    tgt_X_all = jnp.concatenate([tgt_X] * (num_decoy + 1), axis=0)
    tgt_S_all = jnp.concatenate([tgt_S] * (num_decoy + 1), axis=0)
    tgt_A_all = jnp.concatenate([tgt_A] * (num_decoy + 1), axis=0)
    BB = B * (num_decoy + 1)

    # encoder (synthetic surrogate for AllAtomEncoder)
    h_bind = encoder_apply(params, bind_X, bind_S_all, bind_A_all)   # (BB, N, 14, H)
    h_tgt = encoder_apply(params, tgt_X_all, tgt_S_all, tgt_A_all)   # (BB, M, 14, H)

    NA, MA = N * 14, M * 14
    hb = h_bind.reshape(BB, NA, -1).astype(jnp.float32)
    ht = h_tgt.reshape(BB, MA, -1).astype(jnp.float32)
    bx = bind_X.reshape(BB, NA, 3).astype(jnp.float32)
    tx = tgt_X_all.reshape(BB, MA, 3).astype(jnp.float32)
    bmask = (bind_A_all > 0).reshape(BB, NA).astype(jnp.float32)
    tmask = (tgt_A_all > 0).reshape(BB, MA).astype(jnp.float32)

    energy = masked_energy_pallas(hb, ht, bx, tx, bmask, tmask, params, threshold)  # (BB,)

    # logits: (B, num_decoy + 1), label = 0 -> CrossEntropyLoss
    logits = jnp.stack([energy[B * i: B * i + B] for i in range(num_decoy + 1)], axis=-1)
    loss = jnp.mean(jax.nn.logsumexp(logits, axis=-1) - logits[:, 0])
    return loss


# ----------------------------------------------------------------------------
# Deterministic parameter init
# ----------------------------------------------------------------------------
def init_params(key, hidden_size=32, vocab=21):
    ks = jax.random.split(key, 6)
    H = hidden_size
    s = 1.0 / np.sqrt(H)
    return {
        "E_seq": jax.random.normal(ks[0], (vocab, H), jnp.float32) * 0.1,
        "W_x": jax.random.normal(ks[1], (3, H), jnp.float32) * 0.1,
        "b_x": jnp.zeros((H,), jnp.float32),
        "W1": jax.random.normal(ks[2], (H, H), jnp.float32) * s,
        "b1": jnp.zeros((1, H), jnp.float32),
        "W2": jax.random.normal(ks[3], (H, H), jnp.float32) * s,
        "b2": jnp.zeros((1, H), jnp.float32),
        "U1": jax.random.normal(ks[4], (H, H), jnp.float32) * s,
        "ub1": jnp.zeros((1, H), jnp.float32),
    }


if __name__ == "__main__":
    B, N, M, H, num_decoy = 2, 8, 8, 32, 1

    key = jax.random.PRNGKey(0)
    kp, k1, k2, k3, k4, k5, k6 = jax.random.split(key, 7)
    params = init_params(kp, hidden_size=H)

    true_X = jax.random.normal(k1, (B, N, 14, 3), jnp.float32) * 3.0
    tgt_X = jax.random.normal(k2, (B, M, 14, 3), jnp.float32) * 3.0 + 1.0
    bind_S = jax.random.randint(k3, (B, N), 0, 21)
    tgt_S = jax.random.randint(k4, (B, M), 0, 21)
    bind_A = jax.random.randint(k5, (B, N, 14), 0, 6)
    bind_A = bind_A.at[:, :, :4].set(jnp.maximum(bind_A[:, :, :4], 1))
    tgt_A = jax.random.randint(k6, (B, M, 14), 0, 6)
    tgt_A = tgt_A.at[:, :, :4].set(jnp.maximum(tgt_A[:, :, :4], 1))

    loss = fa_decoy_forward(
        (true_X, bind_S, bind_A),
        (tgt_X, tgt_S, tgt_A),
        params,
        num_decoy=num_decoy,
        threshold=10.0,
        seed=0,
    )
    loss = jax.block_until_ready(loss)
    assert np.isfinite(float(loss))
    print("KERNEL_OK")
</pallas_src>

<mosaic_0001>
module attributes {stable_mosaic.version = 11 : i64} {
  func.func @kernel(%arg0: i32, %arg1: memref<4x112x32xf32, #tpu.memory_space<vmem>>, %arg2: memref<4x128x32xf32, #tpu.memory_space<vmem>>, %arg3: memref<4x112x3xf32, #tpu.memory_space<vmem>>, %arg4: memref<4x3x128xf32, #tpu.memory_space<vmem>>, %arg5: memref<4x112x1xf32, #tpu.memory_space<vmem>>, %arg6: memref<4x128x1xf32, #tpu.memory_space<vmem>>, %arg7: memref<32x32xf32, #tpu.memory_space<vmem>>, %arg8: memref<1x32xf32, #tpu.memory_space<vmem>>, %arg9: memref<32x32xf32, #tpu.memory_space<vmem>>, %arg10: memref<1x32xf32, #tpu.memory_space<vmem>>, %arg11: memref<32x32xf32, #tpu.memory_space<vmem>>, %arg12: memref<1x32xf32, #tpu.memory_space<vmem>>, %arg13: memref<4x128xf32, #tpu.memory_space<vmem>>) attributes {dimension_semantics = [#tpu.dimension_semantics<parallel>], iteration_bounds = array<i64: 1>, scalar_prefetch = 0 : i64, scratch_operands = 0 : i64, tpu.core_type = #tpu.core_type<tc>, window_params = [{transform_indices = @transform_0, window_bounds = array<i64: 4, 112, 32>}, {transform_indices = @transform_1, window_bounds = array<i64: 4, 128, 32>}, {transform_indices = @transform_2, window_bounds = array<i64: 4, 112, 3>}, {transform_indices = @transform_3, window_bounds = array<i64: 4, 3, 128>}, {transform_indices = @transform_4, window_bounds = array<i64: 4, 112, 1>}, {transform_indices = @transform_5, window_bounds = array<i64: 4, 128, 1>}, {pipeline_mode = #tpu.pipeline_mode<synchronous>, transform_indices = @transform_6, window_bounds = array<i64: 32, 32>}, {pipeline_mode = #tpu.pipeline_mode<synchronous>, transform_indices = @transform_7, window_bounds = array<i64: 1, 32>}, {pipeline_mode = #tpu.pipeline_mode<synchronous>, transform_indices = @transform_8, window_bounds = array<i64: 32, 32>}, {pipeline_mode = #tpu.pipeline_mode<synchronous>, transform_indices = @transform_9, window_bounds = array<i64: 1, 32>}, {pipeline_mode = #tpu.pipeline_mode<synchronous>, transform_indices = @transform_10, window_bounds = array<i64: 32, 32>}, {pipeline_mode = #tpu.pipeline_mode<synchronous>, transform_indices = @transform_11, window_bounds = array<i64: 1, 32>}, {transform_indices = @transform_12, window_bounds = array<i64: 4, 128>}]} {
    %c0 = arith.constant 0 : index
    %c0_0 = arith.constant 0 : index
    %c0_1 = arith.constant 0 : index
    %0 = vector.load %arg1[%c0, %c0_0, %c0_1] : memref<4x112x32xf32, #tpu.memory_space<vmem>>, vector<4x112x32xf32>
    %1 = vector.shape_cast %0 : vector<4x112x32xf32> to vector<448x32xf32>
    %c0_2 = arith.constant 0 : index
    %c0_3 = arith.constant 0 : index
    %c0_4 = arith.constant 0 : index
    %2 = vector.load %arg2[%c0_2, %c0_3, %c0_4] : memref<4x128x32xf32, #tpu.memory_space<vmem>>, vector<4x128x32xf32>
    %3 = vector.shape_cast %2 : vector<4x128x32xf32> to vector<512x32xf32>
    %c0_5 = arith.constant 0 : index
    %c0_6 = arith.constant 0 : index
    %4 = vector.load %arg7[%c0_5, %c0_6] : memref<32x32xf32, #tpu.memory_space<vmem>>, vector<32x32xf32>
    %cst = arith.constant dense<0.000000e+00> : vector<448x32xf32>
    %5 = tpu.matmul %1, %4, %cst {dimension_numbers = #tpu.dot_dimension_numbers<[1], [0], [0], [1], [0, 0, 1, 1], [], []>} : vector<448x32xf32>, vector<32x32xf32>, vector<448x32xf32> -> vector<448x32xf32>
    %c0_7 = arith.constant 0 : index
    %c0_8 = arith.constant 0 : index
    %6 = vector.load %arg8[%c0_7, %c0_8] : memref<1x32xf32, #tpu.memory_space<vmem>>, vector<1x32xf32>
    %7 = vector.broadcast %6 : vector<1x32xf32> to vector<448x32xf32>
    %8 = arith.addf %5, %7 : vector<448x32xf32>
    %9 = arith.negf %8 : vector<448x32xf32>
    %10 = math.exp %9 : vector<448x32xf32>
    %cst_9 = arith.constant 1.000000e+00 : f32
    %11 = vector.broadcast %cst_9 : f32 to vector<448x32xf32>
    %12 = arith.addf %11, %10 : vector<448x32xf32>
    %13 = arith.divf %11, %12 : vector<448x32xf32>
    %14 = arith.mulf %8, %13 : vector<448x32xf32>
    %c0_10 = arith.constant 0 : index
    %c0_11 = arith.constant 0 : index
    %15 = vector.load %arg9[%c0_10, %c0_11] : memref<32x32xf32, #tpu.memory_space<vmem>>, vector<32x32xf32>
    %cst_12 = arith.constant dense<0.000000e+00> : vector<448x32xf32>
    %16 = tpu.matmul %14, %15, %cst_12 {dimension_numbers = #tpu.dot_dimension_numbers<[1], [0], [0], [1], [0, 0, 1, 1], [], []>} : vector<448x32xf32>, vector<32x32xf32>, vector<448x32xf32> -> vector<448x32xf32>
    %c0_13 = arith.constant 0 : index
    %c0_14 = arith.constant 0 : index
    %17 = vector.load %arg10[%c0_13, %c0_14] : memref<1x32xf32, #tpu.memory_space<vmem>>, vector<1x32xf32>
    %18 = vector.broadcast %17 : vector<1x32xf32> to vector<448x32xf32>
    %19 = arith.addf %16, %18 : vector<448x32xf32>
    %c0_15 = arith.constant 0 : index
    %c0_16 = arith.constant 0 : index
    %20 = vector.load %arg11[%c0_15, %c0_16] : memref<32x32xf32, #tpu.memory_space<vmem>>, vector<32x32xf32>
    %cst_17 = arith.constant dense<0.000000e+00> : vector<512x32xf32>
    %21 = tpu.matmul %3, %20, %cst_17 {dimension_numbers = #tpu.dot_dimension_numbers<[1], [0], [0], [1], [0, 0, 1, 1], [], []>} : vector<512x32xf32>, vector<32x32xf32>, vector<512x32xf32> -> vector<512x32xf32>
    %c0_18 = arith.constant 0 : index
    %c0_19 = arith.constant 0 : index
    %22 = vector.load %arg12[%c0_18, %c0_19] : memref<1x32xf32, #tpu.memory_space<vmem>>, vector<1x32xf32>
    %23 = vector.broadcast %22 : vector<1x32xf32> to vector<512x32xf32>
    %24 = arith.addf %21, %23 : vector<512x32xf32>
    %25 = arith.negf %24 : vector<512x32xf32>
    %26 = math.exp %25 : vector<512x32xf32>
    %cst_20 = arith.constant 1.000000e+00 : f32
    %27 = vector.broadcast %cst_20 : f32 to vector<512x32xf32>
    %28 = arith.addf %27, %26 : vector<512x32xf32>
    %29 = arith.divf %27, %28 : vector<512x32xf32>
    %30 = arith.mulf %24, %29 : vector<512x32xf32>
    %31 = vector.shape_cast %19 : vector<448x32xf32> to vector<4x112x32xf32>
    %c0_21 = arith.constant 0 : index
    %c0_22 = arith.constant 0 : index
    %c0_23 = arith.constant 0 : index
    %32 = vector.load %arg5[%c0_21, %c0_22, %c0_23] : memref<4x112x1xf32, #tpu.memory_space<vmem>>, vector<4x112x1xf32>
    %33 = vector.broadcast %32 : vector<4x112x1xf32> to vector<4x112x32xf32>
    %34 = arith.mulf %31, %33 : vector<4x112x32xf32>
    %35 = vector.shape_cast %30 : vector<512x32xf32> to vector<4x128x32xf32>
    %c0_24 = arith.constant 0 : index
    %c0_25 = arith.constant 0 : index
    %c0_26 = arith.constant 0 : index
    %36 = vector.load %arg6[%c0_24, %c0_25, %c0_26] : memref<4x128x1xf32, #tpu.memory_space<vmem>>, vector<4x128x1xf32>
    %37 = vector.broadcast %36 : vector<4x128x1xf32> to vector<4x128x32xf32>
    %38 = arith.mulf %35, %37 : vector<4x128x32xf32>
    "tpu.trace_start"() <{level = 10 : i32, message = "tih,tjh->tij"}> : () -> ()
    %cst_27 = arith.constant dense<0.000000e+00> : vector<4x112x128xf32>
    %39 = tpu.matmul %34, %38, %cst_27 {dimension_numbers = #tpu.dot_dimension_numbers<[2], [2], [1], [1], [0, 0, 0, 1, 1, 1], [0], [0]>} : vector<4x112x32xf32>, vector<4x128x32xf32>, vector<4x112x128xf32> -> vector<4x112x128xf32>
    "tpu.trace_stop"() : () -> ()
    %c0_28 = arith.constant 0 : index
    %c0_29 = arith.constant 0 : index
    %c0_30 = arith.constant 0 : index
    %40 = vector.load %arg3[%c0_28, %c0_29, %c0_30] : memref<4x112x3xf32, #tpu.memory_space<vmem>>, vector<4x112x3xf32>
    %c0_31 = arith.constant 0 : index
    %c0_32 = arith.constant 0 : index
    %c0_33 = arith.constant 0 : index
    %41 = vector.load %arg4[%c0_31, %c0_32, %c0_33] : memref<4x3x128xf32, #tpu.memory_space<vmem>>, vector<4x3x128xf32>
    %42 = vector.extract_strided_slice %40 {offsets = [0, 0, 0], sizes = [4, 112, 1], strides = [1, 1, 1]} : vector<4x112x3xf32> to vector<4x112x1xf32>
    %43 = vector.extract_strided_slice %41 {offsets = [0, 0, 0], sizes = [4, 1, 128], strides = [1, 1, 1]} : vector<4x3x128xf32> to vector<4x1x128xf32>
    %44 = vector.broadcast %42 : vector<4x112x1xf32> to vector<4x112x128xf32>
    %45 = vector.broadcast %43 : vector<4x1x128xf32> to vector<4x112x128xf32>
    %46 = arith.subf %44, %45 : vector<4x112x128xf32>
    %47 = arith.mulf %46, %46 : vector<4x112x128xf32>
    %48 = vector.extract_strided_slice %40 {offsets = [0, 0, 1], sizes = [4, 112, 1], strides = [1, 1, 1]} : vector<4x112x3xf32> to vector<4x112x1xf32>
    %49 = vector.extract_strided_slice %41 {offsets = [0, 1, 0], sizes = [4, 1, 128], strides = [1, 1, 1]} : vector<4x3x128xf32> to vector<4x1x128xf32>
    %50 = vector.broadcast %48 : vector<4x112x1xf32> to vector<4x112x128xf32>
    %51 = vector.broadcast %49 : vector<4x1x128xf32> to vector<4x112x128xf32>
    %52 = arith.subf %50, %51 : vector<4x112x128xf32>
    %53 = arith.mulf %52, %52 : vector<4x112x128xf32>
    %54 = arith.addf %47, %53 : vector<4x112x128xf32>
    %55 = vector.extract_strided_slice %40 {offsets = [0, 0, 2], sizes = [4, 112, 1], strides = [1, 1, 1]} : vector<4x112x3xf32> to vector<4x112x1xf32>
    %56 = vector.extract_strided_slice %41 {offsets = [0, 2, 0], sizes = [4, 1, 128], strides = [1, 1, 1]} : vector<4x3x128xf32> to vector<4x1x128xf32>
    %57 = vector.broadcast %55 : vector<4x112x1xf32> to vector<4x112x128xf32>
    %58 = vector.broadcast %56 : vector<4x1x128xf32> to vector<4x112x128xf32>
    %59 = arith.subf %57, %58 : vector<4x112x128xf32>
    %60 = arith.mulf %59, %59 : vector<4x112x128xf32>
    %61 = arith.addf %54, %60 : vector<4x112x128xf32>
    %cst_34 = arith.constant 1.000000e+02 : f32
    %62 = vector.broadcast %cst_34 : f32 to vector<4x112x128xf32>
    %63 = arith.cmpf olt, %61, %62 : vector<4x112x128xf32>
    %cst_35 = arith.constant 0.000000e+00 : f32
    %64 = vector.broadcast %cst_35 : f32 to vector<4x112x128xf32>
    %65 = arith.select %63, %39, %64 : vector<4x112x128xi1>, vector<4x112x128xf32>
    %cst_36 = arith.constant dense<0.000000e+00> : vector<4x112xf32>
    %66 = vector.multi_reduction <add>, %65, %cst_36 [2] : vector<4x112x128xf32> to vector<4x112xf32>
    %cst_37 = arith.constant dense<0.000000e+00> : vector<4xf32>
    %67 = vector.multi_reduction <add>, %66, %cst_37 [1] : vector<4x112xf32> to vector<4xf32>
    %68 = vector.shape_cast %67 : vector<4xf32> to vector<4x1xf32>
    %69 = vector.shape_cast %68 : vector<4x1xf32> to vector<4x1xf32>
    %70 = vector.broadcast %69 : vector<4x1xf32> to vector<4x128xf32>
    %c0_38 = arith.constant 0 : index
    %c0_39 = arith.constant 0 : index
    %71 = vector.load %arg13[%c0_38, %c0_39] : memref<4x128xf32, #tpu.memory_space<vmem>>, vector<4x128xf32>
    tpu.vector_store %arg13[%c0_38, %c0_39], %70 {strides = array<i32>} : memref<4x128xf32, #tpu.memory_space<vmem>>, vector<4x128xf32>,
    return
  }
  func.func @transform_0(%arg0: i32) -> (i32, i32, i32) {
    %c0_i32 = arith.constant 0 : i32
    %c0_i32_0 = arith.constant 0 : i32
    %c0_i32_1 = arith.constant 0 : i32
    return %arg0, %c0_i32, %c0_i32_0 : i32, i32, i32
  }
  func.func @transform_1(%arg0: i32) -> (i32, i32, i32) {
    %c0_i32 = arith.constant 0 : i32
    %c0_i32_0 = arith.constant 0 : i32
    %c0_i32_1 = arith.constant 0 : i32
    return %arg0, %c0_i32, %c0_i32_0 : i32, i32, i32
  }
  func.func @transform_2(%arg0: i32) -> (i32, i32, i32) {
    %c0_i32 = arith.constant 0 : i32
    %c0_i32_0 = arith.constant 0 : i32
    %c0_i32_1 = arith.constant 0 : i32
    return %arg0, %c0_i32, %c0_i32_0 : i32, i32, i32
  }
  func.func @transform_3(%arg0: i32) -> (i32, i32, i32) {
    %c0_i32 = arith.constant 0 : i32
    %c0_i32_0 = arith.constant 0 : i32
    %c0_i32_1 = arith.constant 0 : i32
    return %arg0, %c0_i32, %c0_i32_0 : i32, i32, i32
  }
  func.func @transform_4(%arg0: i32) -> (i32, i32, i32) {
    %c0_i32 = arith.constant 0 : i32
    %c0_i32_0 = arith.constant 0 : i32
    %c0_i32_1 = arith.constant 0 : i32
    return %arg0, %c0_i32, %c0_i32_0 : i32, i32, i32
  }
  func.func @transform_5(%arg0: i32) -> (i32, i32, i32) {
    %c0_i32 = arith.constant 0 : i32
    %c0_i32_0 = arith.constant 0 : i32
    %c0_i32_1 = arith.constant 0 : i32
    return %arg0, %c0_i32, %c0_i32_0 : i32, i32, i32
  }
  func.func @transform_6(%arg0: i32) -> (i32, i32) {
    %c0_i32 = arith.constant 0 : i32
    %c0_i32_0 = arith.constant 0 : i32
    %c0_i32_1 = arith.constant 0 : i32
    return %c0_i32, %c0_i32_0 : i32, i32
  }
  func.func @transform_7(%arg0: i32) -> (i32, i32) {
    %c0_i32 = arith.constant 0 : i32
    %c0_i32_0 = arith.constant 0 : i32
    %c0_i32_1 = arith.constant 0 : i32
    return %c0_i32, %c0_i32_0 : i32, i32
  }
  func.func @transform_8(%arg0: i32) -> (i32, i32) {
    %c0_i32 = arith.constant 0 : i32
    %c0_i32_0 = arith.constant 0 : i32
    %c0_i32_1 = arith.constant 0 : i32
    return %c0_i32, %c0_i32_0 : i32, i32
  }
  func.func @transform_9(%arg0: i32) -> (i32, i32) {
    %c0_i32 = arith.constant 0 : i32
    %c0_i32_0 = arith.constant 0 : i32
    %c0_i32_1 = arith.constant 0 : i32
    return %c0_i32, %c0_i32_0 : i32, i32
  }
  func.func @transform_10(%arg0: i32) -> (i32, i32) {
    %c0_i32 = arith.constant 0 : i32
    %c0_i32_0 = arith.constant 0 : i32
    %c0_i32_1 = arith.constant 0 : i32
    return %c0_i32, %c0_i32_0 : i32, i32
  }
  func.func @transform_11(%arg0: i32) -> (i32, i32) {
    %c0_i32 = arith.constant 0 : i32
    %c0_i32_0 = arith.constant 0 : i32
    %c0_i32_1 = arith.constant 0 : i32
    return %c0_i32, %c0_i32_0 : i32, i32
  }
  func.func @transform_12(%arg0: i32) -> (i32, i32) {
    %c0_i32 = arith.constant 0 : i32
    %c0_i32_0 = arith.constant 0 : i32
    return %arg0, %c0_i32 : i32, i32
  }
}

</mosaic_0001>

<bundles_post_ra>
// kernel: tpu_custom_call.1
= control target key start
LH: loop header
LB: loop body
LE: loop exit
PB: predicated region body
PF: predicated region fallthrough
CT: control target
= control target key end

     0   :  { %v8111_v3 = vmov 0   ;;  %vm173_vm0 = vcmask 261120   ;;  %s12258_s0 = inlined_call_operand.vmem [shape: f32[4,112,32], index: 0, kind: input, shape index: {}]   ;;  %s12259_s1 = inlined_call_operand.vmem [shape: f32[4,128,32], index: 1, kind: input, shape index: {}]   ;;  %s12260_s2 = inlined_call_operand.vmem [shape: f32[4,112,3], index: 2, kind: input, shape index: {}]   ;;  %s12261_s3 = inlined_call_operand.vmem [shape: f32[4,3,128], index: 3, kind: input, shape index: {}]   ;;  %s12262_s4 = inlined_call_operand.vmem [shape: f32[4,112,1], index: 4, kind: input, shape index: {}]   ;;  %s12263_s5 = inlined_call_operand.vmem [shape: f32[4,128,1], index: 5, kind: input, shape index: {}]   ;;  %s12264_s6 = inlined_call_operand.vmem [shape: f32[32,32], index: 6, kind: input, shape index: {}]   ;;  %s12265_s7 = inlined_call_operand.vmem [shape: f32[1,32], index: 7, kind: input, shape index: {}]   ;;  %s12266_s8 = inlined_call_operand.vmem [shape: f32[32,32], index: 8, kind: input, shape index: {}]   ;;  %s12267_s9 = inlined_call_operand.vmem [shape: f32[1,32], index: 9, kind: input, shape index: {}]   ;;  %s12268_s10 = inlined_call_operand.vmem [shape: f32[32,32], index: 10, kind: input, shape index: {}]   ;;  %s12269_s11 = inlined_call_operand.vmem [shape: f32[1,32], index: 11, kind: input, shape index: {}]   ;;  %s12270_s12 = inlined_call_operand.hbm [shape: f32[4,128], index: 12, kind: output, shape index: {}]  }
   0x1   :  { %v165_v0 = vld [vmem:[%s12264_s6 + $0x18] sm:$0xff]  ;;  %v2641_v1 = vld [vmem:[%s12262_s4 + $0x10] sm:$0xff]  ;;  %v2639_v2 = vld [vmem:[%s12262_s4] sm:$0xff]  ;;  %7505 = vset.pattern.permute.xlu1 %v8111_v3  ;;  %7504 = vset.pattern.permute.xlu0 %v8111_v3 }
   0x2   :  { %v164_v4 = vld [vmem:[%s12264_s6 + $0x10] sm:$0xff]  ;;  %7000 = vmatprep.subr.mxu0 %v165_v0  ;;  %2707 = vperm.xlu1 %7505, %v2641_v1   ;;  %v42_v5 = vld [vmem:[%s12258_s0] sm:$0xff]  ;;  %v163_v6 = vld [vmem:[%s12264_s6 + $0x8] sm:$0xff] }
   0x3   :  { %2697 = vperm.xlu0 %7504, %v2639_v2   ;;  %7001 = vmatpush3.msra.mxu0 %v165_v0  ;;  %v2642_v7 = vld [vmem:[%s12262_s4 + $0x18] sm:$0xff]  ;;  %v2640_v8 = vld [vmem:[%s12262_s4 + $0x8] sm:$0xff]  ;;  %v162_v9 = vld [vmem:[%s12264_s6] sm:$0xff] }
   0x4   :  { %7002 = vmatprep.subr.mxu0 %v164_v4  ;;  %7008 = vmatprep.mubr.msk.f32.mxu0 %vm173_vm0, %v42_v5  ;;  %v43_v10 = vld [vmem:[%s12258_s0 + $0x8] sm:$0xff]  ;;  %v2643_v12 = vld [vmem:[%s12262_s4 + $0x20] sm:$0xff]  ;;  %v44_v13 = vld [vmem:[%s12258_s0 + $0x10] sm:$0xff] }
   0x5   :  { %7003 = vmatpush3.msra.mxu0 %v164_v4  ;;  %v2644_v11 = vld [vmem:[%s12262_s4 + $0x28] sm:$0xff]  ;;  %v45_v14 = vld [vmem:[%s12258_s0 + $0x18] sm:$0xff]  ;;  %v2645_v16 = vld [vmem:[%s12262_s4 + $0x30] sm:$0xff] }
   0x6   :  { %7004 = vmatprep.subr.mxu0 %v163_v6  ;;  %2712 = vperm.xlu1 %7505, %v2642_v7   ;;  %v2646_v15 = vld [vmem:[%s12262_s4 + $0x38] sm:$0xff]  ;;  %v46_v17 = vld [vmem:[%s12258_s0 + $0x20] sm:$0xff]  ;;  %v47_v18 = vld [vmem:[%s12258_s0 + $0x28] sm:$0xff] }
   0x7   :  { %2702 = vperm.xlu0 %7504, %v2640_v8   ;;  %7005 = vmatpush3.msra.mxu0 %v163_v6  ;;  %v2648_v19 = vld [vmem:[%s12262_s4 + $0x48] sm:$0xff]  ;;  %v2647_v20 = vld [vmem:[%s12262_s4 + $0x40] sm:$0xff]  ;;  %v48_v21 = vld [vmem:[%s12258_s0 + $0x30] sm:$0xff] }
   0x8   :  { %7006 = vmatprep.subr.mxu0 %v162_v9  ;;  %v49_v22 = vld [vmem:[%s12258_s0 + $0x38] sm:$0xff]  ;;  %v2649_v24 = vld [vmem:[%s12262_s4 + $0x50] sm:$0xff]  ;;  %v50_v25 = vld [vmem:[%s12258_s0 + $0x40] sm:$0xff] }
   0x9   :  { %7007 = vmatpush3.msra.mxu0 %v162_v9  ;;  %v2650_v23 = vld [vmem:[%s12262_s4 + $0x58] sm:$0xff]  ;;  %v51_v27 = vld [vmem:[%s12258_s0 + $0x48] sm:$0xff]  ;;  %v2651_v29 = vld [vmem:[%s12262_s4 + $0x60] sm:$0xff] }
   0xa   :  { %7009 = vmatmul.mubr.msk.f32.vlgmr.msra.gmra.mxu0 %vm173_vm0, %v43_v10  ;;  %2722 = vperm.xlu1 %7505, %v2644_v11   ;;  %v1606_v26 = vld [vmem:[%s12268_s10 + $0x18] sm:$0xff]  ;;  %v2652_v28 = vld [vmem:[%s12262_s4 + $0x68] sm:$0xff]  ;;  %v52_v30 = vld [vmem:[%s12258_s0 + $0x50] sm:$0xff] }
   0xb   :  { %2717 = vperm.xlu0 %7504, %v2643_v12   ;;  %7011 = vmatprep.mubr.msk.f32.mxu0 %vm173_vm0, %v44_v13  ;;  %v53_v31 = vld [vmem:[%s12258_s0 + $0x58] sm:$0xff]  ;;  %v2653_v33 = vld [vmem:[%s12262_s4 + $0x70] sm:$0xff]  ;;  %v54_v34 = vld [vmem:[%s12258_s0 + $0x60] sm:$0xff] }
   0xc   :  { %7184 = vmatprep.subr.mxu0 %v1606_v26  ;;  %v2654_v32 = vld [vmem:[%s12262_s4 + $0x78] sm:$0xff]  ;;  %v1605_v35 = vld [vmem:[%s12268_s10 + $0x10] sm:$0xff]  ;;  %v55_v36 = vld [vmem:[%s12258_s0 + $0x68] sm:$0xff] }
   0xd   :  { %7185 = vmatpush3.msra.mxu0 %v1606_v26  ;;  %v2656_v37 = vld [vmem:[%s12262_s4 + $0x88] sm:$0xff]  ;;  %v2655_v38 = vld [vmem:[%s12262_s4 + $0x80] sm:$0xff]  ;;  %v56_v39 = vld [vmem:[%s12258_s0 + $0x70] sm:$0xff] }
   0xe   :  { %7012 = vmatmul.mubr.msk.f32.gmra.mxu0 %vm173_vm0, %v45_v14  ;;  %2732 = vperm.xlu1 %7505, %v2646_v15   ;;  %v57_v40 = vld [vmem:[%s12258_s0 + $0x78] sm:$0xff]  ;;  %v2657_v42 = vld [vmem:[%s12262_s4 + $0x90] sm:$0xff]  ;;  %v58_v43 = vld [vmem:[%s12258_s0 + $0x80] sm:$0xff] }
   0xf   :  { %2727 = vperm.xlu0 %7504, %v2645_v16   ;;  %7014 = vmatprep.mubr.msk.f32.mxu0 %vm173_vm0, %v46_v17  ;;  %v2658_v41 = vld [vmem:[%s12262_s4 + $0x98] sm:$0xff]  ;;  %v59_v44 = vld [vmem:[%s12258_s0 + $0x88] sm:$0xff]  ;;  %v2659_v47 = vld [vmem:[%s12262_s4 + $0xa0] sm:$0xff] }
  0x10   :  { %7186 = vmatprep.subr.mxu0 %v1605_v35  ;;  %v2660_v45 = vld [vmem:[%s12262_s4 + $0xa8] sm:$0xff]  ;;  %v60_v48 = vld [vmem:[%s12258_s0 + $0x90] sm:$0xff]  ;;  %v1603_v49 = vld [vmem:[%s12268_s10] sm:$0xff] }
  0x11   :  { %7187 = vmatpush3.msra.mxu0 %v1605_v35  ;;  %v1604_v46 = vld [vmem:[%s12268_s10 + $0x8] sm:$0xff]  ;;  %v61_v50 = vld [vmem:[%s12258_s0 + $0x98] sm:$0xff]  ;;  %v2661_v52 = vld [vmem:[%s12262_s4 + $0xb0] sm:$0xff] }
  0x12   :  { %7015 = vmatmul.mubr.msk.f32.gmra.mxu0 %vm173_vm0, %v47_v18  ;;  %2742 = vperm.xlu1 %7505, %v2648_v19   ;;  %v2662_v51 = vld [vmem:[%s12262_s4 + $0xb8] sm:$0xff]  ;;  %v62_v53 = vld [vmem:[%s12258_s0 + $0xa0] sm:$0xff]  ;;  %v63_v54 = vld [vmem:[%s12258_s0 + $0xa8] sm:$0xff] }
  0x13   :  { %2737 = vperm.xlu0 %7504, %v2647_v20   ;;  %7017 = vmatprep.mubr.msk.f32.mxu0 %vm173_vm0, %v48_v21  ;;  %v2664_v55 = vld [vmem:[%s12262_s4 + $0xc8] sm:$0xff]  ;;  %v2663_v56 = vld [vmem:[%s12262_s4 + $0xc0] sm:$0xff]  ;;  %v64_v57 = vld [vmem:[%s12258_s0 + $0xb0] sm:$0xff] }
  0x14   :  { %7188 = vmatprep.subr.mxu0 %v1604_v46  ;;  %v65_v58 = vld [vmem:[%s12258_s0 + $0xb8] sm:$0xff]  ;;  %v2665_v60 = vld [vmem:[%s12262_s4 + $0xd0] sm:$0xff]  ;;  %v66_v61 = vld [vmem:[%s12258_s0 + $0xc0] sm:$0xff] }
  0x15   :  { %7189 = vmatpush3.msra.mxu0 %v1604_v46  ;;  %v2666_v59 = vld [vmem:[%s12262_s4 + $0xd8] sm:$0xff]  ;;  %v67_v62 = vld [vmem:[%s12258_s0 + $0xc8] sm:$0xff]  ;;  %v2667_v0 = vld [vmem:[%s12262_s4 + $0xe0] sm:$0xff] }
  0x16   :  { %7018 = vmatmul.mubr.msk.f32.gmra.mxu0 %vm173_vm0, %v49_v22  ;;  %2752 = vperm.xlu1 %7505, %v2650_v23   ;;  %v2668_v63 = vld [vmem:[%s12262_s4 + $0xe8] sm:$0xff]  ;;  %v68_v1 = vld [vmem:[%s12258_s0 + $0xd0] sm:$0xff]  ;;  %v69_v2 = vld [vmem:[%s12258_s0 + $0xd8] sm:$0xff] }
  0x17   :  { %2747 = vperm.xlu0 %7504, %v2649_v24   ;;  %7020 = vmatprep.mubr.msk.f32.mxu0 %vm173_vm0, %v50_v25  ;;  %v2670_v3 = vld [vmem:[%s12262_s4 + $0xf8] sm:$0xff]  ;;  %v2669_v4 = vld [vmem:[%s12262_s4 + $0xf0] sm:$0xff]  ;;  %v70_v5 = vld [vmem:[%s12258_s0 + $0xe0] sm:$0xff] }
  0x18   :  { %7190 = vmatprep.subr.mxu0 %v1603_v49  ;;  %v71_v6 = vld [vmem:[%s12258_s0 + $0xe8] sm:$0xff]  ;;  %v2671_v8 = vld [vmem:[%s12262_s4 + $0x100] sm:$0xff]  ;;  %v72_v9 = vld [vmem:[%s12258_s0 + $0xf0] sm:$0xff] }
  0x19   :  { %7191 = vmatpush3.msra.mxu0 %v1603_v49  ;;  %v2672_v7 = vld [vmem:[%s12262_s4 + $0x108] sm:$0xff] }
  0x1a   :  { %7021 = vmatmul.mubr.msk.f32.gmra.mxu0 %vm173_vm0, %v51_v27  ;;  %2762 = vperm.xlu1 %7505, %v2652_v28  }
  0x1b   :  { %2757 = vperm.xlu0 %7504, %v2651_v29   ;;  %7023 = vmatprep.mubr.msk.f32.mxu0 %vm173_vm0, %v52_v30 }
  0x1e   :  { %7024 = vmatmul.mubr.msk.f32.gmra.mxu0 %vm173_vm0, %v53_v31  ;;  %2772 = vperm.xlu1 %7505, %v2654_v32  }
  0x1f   :  { %2767 = vperm.xlu0 %7504, %v2653_v33   ;;  %7026 = vmatprep.mubr.msk.f32.mxu0 %vm173_vm0, %v54_v34 }
  0x22   :  { %7027 = vmatmul.mubr.msk.f32.gmra.mxu0 %vm173_vm0, %v55_v36  ;;  %2782 = vperm.xlu1 %7505, %v2656_v37  }
  0x23   :  { %2777 = vperm.xlu0 %7504, %v2655_v38   ;;  %7029 = vmatprep.mubr.msk.f32.mxu0 %vm173_vm0, %v56_v39 }
  0x26   :  { %7030 = vmatmul.mubr.msk.f32.gmra.mxu0 %vm173_vm0, %v57_v40  ;;  %2792 = vperm.xlu1 %7505, %v2658_v41  }
  0x27   :  { %2787 = vperm.xlu0 %7504, %v2657_v42   ;;  %7032 = vmatprep.mubr.msk.f32.mxu0 %vm173_vm0, %v58_v43 }
  0x2a   :  { %7033 = vmatmul.mubr.msk.f32.gmra.mxu0 %vm173_vm0, %v59_v44  ;;  %2802 = vperm.xlu1 %7505, %v2660_v45  }
  0x2b   :  { %2797 = vperm.xlu0 %7504, %v2659_v47   ;;  %7035 = vmatprep.mubr.msk.f32.mxu0 %vm173_vm0, %v60_v48 }
  0x2e   :  { %7036 = vmatmul.mubr.msk.f32.gmra.mxu0 %vm173_vm0, %v61_v50  ;;  %2812 = vperm.xlu1 %7505, %v2662_v51  }
  0x2f   :  { %2807 = vperm.xlu0 %7504, %v2661_v52   ;;  %7038 = vmatprep.mubr.msk.f32.mxu0 %vm173_vm0, %v62_v53 }
  0x32   :  { %7039 = vmatmul.mubr.msk.f32.gmra.mxu0 %vm173_vm0, %v63_v54  ;;  %2822 = vperm.xlu1 %7505, %v2664_v55  }
  0x33   :  { %2817 = vperm.xlu0 %7504, %v2663_v56   ;;  %7041 = vmatprep.mubr.msk.f32.mxu0 %vm173_vm0, %v64_v57 }
  0x36   :  { %7042 = vmatmul.mubr.msk.f32.gmra.mxu0 %vm173_vm0, %v65_v58  ;;  %2832 = vperm.xlu1 %7505, %v2666_v59  }
  0x37   :  { %2827 = vperm.xlu0 %7504, %v2665_v60   ;;  %7044 = vmatprep.mubr.msk.f32.mxu0 %vm173_vm0, %v66_v61 }
  0x3a   :  { %7045 = vmatmul.mubr.msk.f32.gmra.mxu0 %vm173_vm0, %v67_v62  ;;  %2842 = vperm.xlu1 %7505, %v2668_v63  }
  0x3b   :  { %2837 = vperm.xlu0 %7504, %v2667_v0   ;;  %7047 = vmatprep.mubr.msk.f32.mxu0 %vm173_vm0, %v68_v1 }
  0x3e   :  { %7048 = vmatmul.mubr.msk.f32.gmra.mxu0 %vm173_vm0, %v69_v2  ;;  %2852 = vperm.xlu1 %7505, %v2670_v3  }
  0x3f   :  { %2847 = vperm.xlu0 %7504, %v2669_v4   ;;  %7050 = vmatprep.mubr.msk.f32.mxu0 %vm173_vm0, %v70_v5 }
  0x42   :  { %7051 = vmatmul.mubr.msk.f32.gmra.mxu0 %vm173_vm0, %v71_v6  ;;  %2862 = vperm.xlu1 %7505, %v2672_v7  }
  0x43   :  { %17 = vsyncpa [#allocation3], 0  ;;  %2857 = vperm.xlu0 %7504, %v2671_v8   ;;  %7053 = vmatprep.mubr.msk.f32.mxu0 %vm173_vm0, %v72_v9  ;;  %v73_v10 = vld [vmem:[%s12258_s0 + $0xf8] sm:$0xff]  ;;  %v2673_v12 = vld [vmem:[%s12262_s4 + $0x110] sm:$0xff] }
  0x44   :  { %v2674_v11 = vld [vmem:[%s12262_s4 + $0x118] sm:$0xff]  ;;  %v74_v13 = vld [vmem:[%s12258_s0 + $0x100] sm:$0xff]  ;;  %v75_v14 = vld [vmem:[%s12258_s0 + $0x108] sm:$0xff] }
  0x45   :  { %v2676_v15 = vld [vmem:[%s12262_s4 + $0x128] sm:$0xff]  ;;  %v2675_v16 = vld [vmem:[%s12262_s4 + $0x120] sm:$0xff]  ;;  %v76_v17 = vld [vmem:[%s12258_s0 + $0x110] sm:$0xff] }
  0x46   :  { %7054 = vmatmul.mubr.msk.f32.gmra.mxu0 %vm173_vm0, %v73_v10  ;;  %2872 = vperm.xlu1 %7505, %v2674_v11   ;;  %v77_v18 = vld [vmem:[%s12258_s0 + $0x118] sm:$0xff]  ;;  %v2677_v20 = vld [vmem:[%s12262_s4 + $0x130] sm:$0xff]  ;;  %v78_v21 = vld [vmem:[%s12258_s0 + $0x120] sm:$0xff] }
  0x47   :  { %2867 = vperm.xlu0 %7504, %v2673_v12   ;;  %7056 = vmatprep.mubr.msk.f32.mxu0 %vm173_vm0, %v74_v13  ;;  %v2678_v19 = vld [vmem:[%s12262_s4 + $0x138] sm:$0xff]  ;;  %v79_v22 = vld [vmem:[%s12258_s0 + $0x128] sm:$0xff]  ;;  %v2679_v24 = vld [vmem:[%s12262_s4 + $0x140] sm:$0xff] }
  0x48   :  { %v2680_v23 = vld [vmem:[%s12262_s4 + $0x148] sm:$0xff]  ;;  %v80_v25 = vld [vmem:[%s12258_s0 + $0x130] sm:$0xff]  ;;  %v81_v26 = vld [vmem:[%s12258_s0 + $0x138] sm:$0xff] }
  0x49   :  { %v2682_v27 = vld [vmem:[%s12262_s4 + $0x158] sm:$0xff]  ;;  %v2681_v28 = vld [vmem:[%s12262_s4 + $0x150] sm:$0xff]  ;;  %v82_v29 = vld [vmem:[%s12258_s0 + $0x140] sm:$0xff] }
  0x4a   :  { %7057 = vmatmul.mubr.msk.f32.gmra.mxu0 %vm173_vm0, %v75_v14  ;;  %2882 = vperm.xlu1 %7505, %v2676_v15   ;;  %v83_v30 = vld [vmem:[%s12258_s0 + $0x148] sm:$0xff]  ;;  %v2683_v32 = vld [vmem:[%s12262_s4 + $0x160] sm:$0xff]  ;;  %v84_v33 = vld [vmem:[%s12258_s0 + $0x150] sm:$0xff] }
  0x4b   :  { %2877 = vperm.xlu0 %7504, %v2675_v16   ;;  %7059 = vmatprep.mubr.msk.f32.mxu0 %vm173_vm0, %v76_v17  ;;  %v2684_v31 = vld [vmem:[%s12262_s4 + $0x168] sm:$0xff]  ;;  %v85_v34 = vld [vmem:[%s12258_s0 + $0x158] sm:$0xff]  ;;  %v2685_v36 = vld [vmem:[%s12262_s4 + $0x170] sm:$0xff] }
  0x4c   :  { %v2686_v35 = vld [vmem:[%s12262_s4 + $0x178] sm:$0xff]  ;;  %v86_v37 = vld [vmem:[%s12258_s0 + $0x160] sm:$0xff]  ;;  %v87_v38 = vld [vmem:[%s12258_s0 + $0x168] sm:$0xff] }
  0x4d   :  { %v2688_v39 = vld [vmem:[%s12262_s4 + $0x188] sm:$0xff]  ;;  %v2687_v40 = vld [vmem:[%s12262_s4 + $0x180] sm:$0xff]  ;;  %v88_v41 = vld [vmem:[%s12258_s0 + $0x170] sm:$0xff] }
  0x4e   :  { %7060 = vmatmul.mubr.msk.f32.gmra.mxu0 %vm173_vm0, %v77_v18  ;;  %2892 = vperm.xlu1 %7505, %v2678_v19   ;;  %v89_v42 = vld [vmem:[%s12258_s0 + $0x178] sm:$0xff]  ;;  %v2689_v44 = vld [vmem:[%s12262_s4 + $0x190] sm:$0xff]  ;;  %v90_v45 = vld [vmem:[%s12258_s0 + $0x180] sm:$0xff] }
  0x4f   :  { %2887 = vperm.xlu0 %7504, %v2677_v20   ;;  %7062 = vmatprep.mubr.msk.f32.mxu0 %vm173_vm0, %v78_v21  ;;  %v2690_v43 = vld [vmem:[%s12262_s4 + $0x198] sm:$0xff]  ;;  %v91_v46 = vld [vmem:[%s12258_s0 + $0x188] sm:$0xff]  ;;  %v2691_v48 = vld [vmem:[%s12262_s4 + $0x1a0] sm:$0xff] }
  0x50   :  { %v2692_v47 = vld [vmem:[%s12262_s4 + $0x1a8] sm:$0xff]  ;;  %v92_v49 = vld [vmem:[%s12258_s0 + $0x190] sm:$0xff]  ;;  %v1082_v50 = vld [vmem:[%s12266_s8 + $0x18] sm:$0xff] }
  0x51   :  { %v93_v51 = vld [vmem:[%s12258_s0 + $0x198] sm:$0xff]  ;;  %v2693_v53 = vld [vmem:[%s12262_s4 + $0x1b0] sm:$0xff]  ;;  %v94_v54 = vld [vmem:[%s12258_s0 + $0x1a0] sm:$0xff]  ;;  %7092 = vmatprep.subr.mxu1 %v1082_v50 }
  0x52   :  { %7063 = vmatmul.mubr.msk.f32.gmra.mxu0 %vm173_vm0, %v79_v22  ;;  %2902 = vperm.xlu1 %7505, %v2680_v23   ;;  %v2694_v52 = vld [vmem:[%s12262_s4 + $0x1b8] sm:$0xff]  ;;  %v1081_v55 = vld [vmem:[%s12266_s8 + $0x10] sm:$0xff]  ;;  %v95_v56 = vld [vmem:[%s12258_s0 + $0x1a8] sm:$0xff] }
  0x53   :  { %2897 = vperm.xlu0 %7504, %v2679_v24   ;;  %7065 = vmatprep.mubr.msk.f32.mxu0 %vm173_vm0, %v80_v25  ;;  %v3032_v57 = vld [vmem:[%s12263_s5 + $0x8] sm:$0xff]  ;;  %v3031_v58 = vld [vmem:[%s12263_s5] sm:$0xff]  ;;  %v96_v59 = vld [vmem:[%s12258_s0 + $0x1b0] sm:$0xff] }
  0x54   :  { %7093 = vmatpush3.msra.mxu1 %v1082_v50  ;;  %v1080_v60 = vld [vmem:[%s12266_s8 + $0x8] sm:$0xff]  ;;  %v97_v61 = vld [vmem:[%s12258_s0 + $0x1b8] sm:$0xff]  ;;  %v3033_v63 = vld [vmem:[%s12263_s5 + $0x10] sm:$0xff] }
  0x55   :  { %7094 = vmatprep.subr.mxu1 %v1081_v55  ;;  %v3034_v62 = vld [vmem:[%s12263_s5 + $0x18] sm:$0xff]  ;;  %v98_v0 = vld [vmem:[%s12259_s1] sm:$0xff]  ;;  %v99_v2 = vld [vmem:[%s12259_s1 + $0x8] sm:$0xff] }
  0x56   :  { %7066 = vmatmul.mubr.msk.f32.gmra.mxu0 %vm173_vm0, %v81_v26  ;;  %2912 = vperm.xlu1 %7505, %v2682_v27   ;;  %v1079_v1 = vld [vmem:[%s12266_s8] sm:$0xff]  ;;  %v3036_v3 = vld [vmem:[%s12263_s5 + $0x28] sm:$0xff]  ;;  %v100_v5 = vld [vmem:[%s12259_s1 + $0x10] sm:$0xff] }
  0x57   :  { %2907 = vperm.xlu0 %7504, %v2681_v28   ;;  %7068 = vmatprep.mubr.msk.f32.mxu0 %vm173_vm0, %v82_v29  ;;  %v3035_v4 = vld [vmem:[%s12263_s5 + $0x20] sm:$0xff]  ;;  %v101_v6 = vld [vmem:[%s12259_s1 + $0x18] sm:$0xff]  ;;  %v3037_v8 = vld [vmem:[%s12263_s5 + $0x30] sm:$0xff] }
  0x58   :  { %7095 = vmatpush3.msra.mxu1 %v1081_v55  ;;  %v3038_v7 = vld [vmem:[%s12263_s5 + $0x38] sm:$0xff]  ;;  %v102_v9 = vld [vmem:[%s12259_s1 + $0x20] sm:$0xff]  ;;  %v103_v12 = vld [vmem:[%s12259_s1 + $0x28] sm:$0xff] }
  0x59   :  { %7096 = vmatprep.subr.mxu1 %v1080_v60  ;;  %v3040_v13 = vld [vmem:[%s12263_s5 + $0x48] sm:$0xff]  ;;  %v3039_v14 = vld [vmem:[%s12263_s5 + $0x40] sm:$0xff]  ;;  %v104_v15 = vld [vmem:[%s12259_s1 + $0x30] sm:$0xff] }
  0x5a   :  { %7069 = vmatmul.mubr.msk.f32.gmra.mxu0 %vm173_vm0, %v83_v30  ;;  %2922 = vperm.xlu1 %7505, %v2684_v31   ;;  %v105_v18 = vld [vmem:[%s12259_s1 + $0x38] sm:$0xff]  ;;  %v3041_v20 = vld [vmem:[%s12263_s5 + $0x50] sm:$0xff]  ;;  %v106_v21 = vld [vmem:[%s12259_s1 + $0x40] sm:$0xff] }
  0x5b   :  { %2917 = vperm.xlu0 %7504, %v2683_v32   ;;  %7071 = vmatprep.mubr.msk.f32.mxu0 %vm173_vm0, %v84_v33  ;;  %v3042_v19 = vld [vmem:[%s12263_s5 + $0x58] sm:$0xff]  ;;  %v107_v24 = vld [vmem:[%s12259_s1 + $0x48] sm:$0xff]  ;;  %v3043_v26 = vld [vmem:[%s12263_s5 + $0x60] sm:$0xff] }
  0x5c   :  { %7097 = vmatpush3.msra.mxu1 %v1080_v60  ;;  %v3044_v25 = vld [vmem:[%s12263_s5 + $0x68] sm:$0xff]  ;;  %v108_v27 = vld [vmem:[%s12259_s1 + $0x50] sm:$0xff]  ;;  %v109_v30 = vld [vmem:[%s12259_s1 + $0x58] sm:$0xff] }
  0x5d   :  { %7098 = vmatprep.subr.mxu1 %v1079_v1  ;;  %v3046_v31 = vld [vmem:[%s12263_s5 + $0x78] sm:$0xff]  ;;  %v3045_v32 = vld [vmem:[%s12263_s5 + $0x70] sm:$0xff]  ;;  %v110_v33 = vld [vmem:[%s12259_s1 + $0x60] sm:$0xff] }
  0x5e   :  { %7072 = vmatmul.mubr.msk.f32.gmra.mxu0 %vm173_vm0, %v85_v34  ;;  %2932 = vperm.xlu1 %7505, %v2686_v35   ;;  %v3051_v50 = vld [vmem:[%s12263_s5 + $0xa0] sm:$0xff]  ;;  %v3054_v55 = vld [vmem:[%s12263_s5 + $0xb8] sm:$0xff]  ;;  %v119_v60 = vld [vmem:[%s12259_s1 + $0xa8] sm:$0xff] }
  0x5f   :  { %2927 = vperm.xlu0 %7504, %v2685_v36   ;;  %7074 = vmatprep.mubr.msk.f32.mxu0 %vm173_vm0, %v86_v37  ;;  %v111_v36 = vld [vmem:[%s12259_s1 + $0x68] sm:$0xff] }
  0x60   :  { %7099 = vmatpush3.msra.mxu1 %v1079_v1  ;;  %v3048_v37 = vld [vmem:[%s12263_s5 + $0x88] sm:$0xff] }
  0x62   :  { %7075 = vmatmul.mubr.msk.f32.gmra.mxu0 %vm173_vm0, %v87_v38  ;;  %2942 = vperm.xlu1 %7505, %v2688_v39   ;;  %v3047_v38 = vld [vmem:[%s12263_s5 + $0x80] sm:$0xff]  ;;  %v112_v39 = vld [vmem:[%s12259_s1 + $0x70] sm:$0xff] }
  0x63   :  { %2937 = vperm.xlu0 %7504, %v2687_v40   ;;  %7077 = vmatprep.mubr.msk.f32.mxu0 %vm173_vm0, %v88_v41 }
  0x66   :  { %7078 = vmatmul.mubr.msk.f32.gmra.mxu0 %vm173_vm0, %v89_v42  ;;  %2952 = vperm.xlu1 %7505, %v2690_v43   ;;  %v113_v42 = vld [vmem:[%s12259_s1 + $0x78] sm:$0xff] }
  0x67   :  { %2947 = vperm.xlu0 %7504, %v2689_v44   ;;  %7080 = vmatprep.mubr.msk.f32.mxu0 %vm173_vm0, %v90_v45  ;;  %v3050_v43 = vld [vmem:[%s12263_s5 + $0x98] sm:$0xff]  ;;  %v3049_v44 = vld [vmem:[%s12263_s5 + $0x90] sm:$0xff]  ;;  %v114_v45 = vld [vmem:[%s12259_s1 + $0x80] sm:$0xff] }
  0x6a   :  { %7081 = vmatmul.mubr.msk.f32.gmra.mxu0 %vm173_vm0, %v91_v46  ;;  %2962 = vperm.xlu1 %7505, %v2692_v47  }
  0x6b   :  { %2957 = vperm.xlu0 %7504, %v2691_v48   ;;  %7083 = vmatprep.mubr.msk.f32.mxu0 %vm173_vm0, %v92_v49  ;;  %v115_v48 = vld [vmem:[%s12259_s1 + $0x88] sm:$0xff] }
  0x6c   :  { %v3052_v49 = vld [vmem:[%s12263_s5 + $0xa8] sm:$0xff] }
  0x6e   :  { %7084 = vmatmul.mubr.msk.f32.gmra.mxu0 %vm173_vm0, %v93_v51  ;;  %2972 = vperm.xlu1 %7505, %v2694_v52   ;;  %v116_v51 = vld [vmem:[%s12259_s1 + $0x90] sm:$0xff] }
  0x6f   :  { %2967 = vperm.xlu0 %7504, %v2693_v53   ;;  %7086 = vmatprep.mubr.msk.f32.mxu0 %vm173_vm0, %v94_v54  ;;  %v117_v54 = vld [vmem:[%s12259_s1 + $0x98] sm:$0xff] }
  0x72   :  { %7087 = vmatmul.mubr.msk.f32.gmra.mxu0 %vm173_vm0, %v95_v56  ;;  %3102 = vperm.xlu1 %7505, %v3032_v57   ;;  %v3053_v56 = vld [vmem:[%s12263_s5 + $0xb0] sm:$0xff]  ;;  %v118_v57 = vld [vmem:[%s12259_s1 + $0xa0] sm:$0xff] }
  0x73   :  { %3097 = vperm.xlu0 %7504, %v3031_v58   ;;  %7089 = vmatprep.mubr.msk.f32.mxu0 %vm173_vm0, %v96_v59 }
  0x76   :  { %7090 = vmatmul.mubr.msk.f32.gmra.mxu0 %vm173_vm0, %v97_v61  ;;  %3112 = vperm.xlu1 %7505, %v3034_v62   ;;  %v3056_v61 = vld [vmem:[%s12263_s5 + $0xc8] sm:$0xff]  ;;  %v3055_v62 = vld [vmem:[%s12263_s5 + $0xc0] sm:$0xff] }
  0x77   :  { %3107 = vperm.xlu0 %7504, %v3033_v63   ;;  %7192 = vmatprep.mubr.msk.f32.mxu0 %vm173_vm0, %v98_v0  ;;  %v120_v63 = vld [vmem:[%s12259_s1 + $0xb0] sm:$0xff] }
  0x7a   :  { %7193 = vmatmul.mubr.msk.f32.vlgmr.msra.gmra.mxu0 %vm173_vm0, %v99_v2  ;;  %3122 = vperm.xlu1 %7505, %v3036_v3   ;;  %v121_v2 = vld [vmem:[%s12259_s1 + $0xb8] sm:$0xff] }
  0x7b   :  { %3117 = vperm.xlu0 %7504, %v3035_v4   ;;  %7195 = vmatprep.mubr.msk.f32.mxu0 %vm173_vm0, %v100_v5  ;;  %v3058_v3 = vld [vmem:[%s12263_s5 + $0xd8] sm:$0xff]  ;;  %v3057_v4 = vld [vmem:[%s12263_s5 + $0xd0] sm:$0xff]  ;;  %v122_v5 = vld [vmem:[%s12259_s1 + $0xc0] sm:$0xff] }
  0x7d   :  { %v8650_v10 = vpop.permute.xlu1 %2707 }
  0x7e   :  { %12291 = vst [vmem:[#allocation5_spill] sm:$0xff] %v8650_v10  ;;  %v8652_v11 = vpop.permute.xlu0 %2697  ;;  %7196 = vmatmul.mubr.msk.f32.gmra.mxu0 %vm173_vm0, %v101_v6  ;;  %3132 = vperm.xlu1 %7505, %v3038_v7  }
  0x7f   :  { %12292 = vst [vmem:[#allocation6_spill] sm:$0xff] %v8652_v11  ;;  %3127 = vperm.xlu0 %7504, %v3037_v8   ;;  %7198 = vmatprep.mubr.msk.f32.mxu0 %vm173_vm0, %v102_v9  ;;  %v123_v8 = vld [vmem:[%s12259_s1 + $0xc8] sm:$0xff] }
  0x80   :  { %v3060_v9 = vld [vmem:[%s12263_s5 + $0xe8] sm:$0xff] }
  0x81   :  { %v8668_v16 = vpop.permute.xlu1 %2712 }
  0x82   :  { %12293 = vst [vmem:[#allocation7_spill] sm:$0xff] %v8668_v16  ;;  %v8670_v17 = vpop.permute.xlu0 %2702  ;;  %7199 = vmatmul.mubr.msk.f32.gmra.mxu0 %vm173_vm0, %v103_v12  ;;  %3142 = vperm.xlu1 %7505, %v3040_v13   ;;  %v3059_v12 = vld [vmem:[%s12263_s5 + $0xe0] sm:$0xff]  ;;  %v124_v13 = vld [vmem:[%s12259_s1 + $0xd0] sm:$0xff] }
  0x83   :  { %12294 = vst [vmem:[#allocation8_spill] sm:$0xff] %v8670_v17  ;;  %3137 = vperm.xlu0 %7504, %v3039_v14   ;;  %7201 = vmatprep.mubr.msk.f32.mxu0 %vm173_vm0, %v104_v15 }
  0x85   :  { %v8686_v22 = vpop.permute.xlu1 %2722 }
  0x86   :  { %12295 = vst [vmem:[#allocation9_spill] sm:$0xff] %v8686_v22  ;;  %v8688_v23 = vpop.permute.xlu0 %2717  ;;  %7202 = vmatmul.mubr.msk.f32.gmra.mxu0 %vm173_vm0, %v105_v18  ;;  %3152 = vperm.xlu1 %7505, %v3042_v19   ;;  %v125_v18 = vld [vmem:[%s12259_s1 + $0xd8] sm:$0xff] }
  0x87   :  { %12296 = vst [vmem:[#allocation10_spill] sm:$0xff] %v8688_v23  ;;  %3147 = vperm.xlu0 %7504, %v3041_v20   ;;  %7204 = vmatprep.mubr.msk.f32.mxu0 %vm173_vm0, %v106_v21  ;;  %v3062_v19 = vld [vmem:[%s12263_s5 + $0xf8] sm:$0xff]  ;;  %v3061_v20 = vld [vmem:[%s12263_s5 + $0xf0] sm:$0xff]  ;;  %v126_v21 = vld [vmem:[%s12259_s1 + $0xe0] sm:$0xff] }
  0x89   :  { %v8704_v28 = vpop.permute.xlu1 %2732 }
  0x8a   :  { %12297 = vst [vmem:[#allocation11_spill] sm:$0xff] %v8704_v28  ;;  %v8706_v29 = vpop.permute.xlu0 %2727  ;;  %7205 = vmatmul.mubr.msk.f32.gmra.mxu0 %vm173_vm0, %v107_v24  ;;  %3162 = vperm.xlu1 %7505, %v3044_v25  }
  0x8b   :  { %12298 = vst [vmem:[#allocation12_spill] sm:$0xff] %v8706_v29  ;;  %3157 = vperm.xlu0 %7504, %v3043_v26   ;;  %7207 = vmatprep.mubr.msk.f32.mxu0 %vm173_vm0, %v108_v27  ;;  %v127_v26 = vld [vmem:[%s12259_s1 + $0xe8] sm:$0xff] }
  0x8c   :  { %v3064_v27 = vld [vmem:[%s12263_s5 + $0x108] sm:$0xff] }
  0x8d   :  { %v8722_v34 = vpop.permute.xlu1 %2742 }
  0x8e   :  { %12299 = vst [vmem:[#allocation13_spill] sm:$0xff] %v8722_v34  ;;  %v8724_v35 = vpop.permute.xlu0 %2737  ;;  %7208 = vmatmul.mubr.msk.f32.gmra.mxu0 %vm173_vm0, %v109_v30  ;;  %3172 = vperm.xlu1 %7505, %v3046_v31   ;;  %v3063_v30 = vld [vmem:[%s12263_s5 + $0x100] sm:$0xff]  ;;  %v128_v31 = vld [vmem:[%s12259_s1 + $0xf0] sm:$0xff] }
  0x8f   :  { %12300 = vst [vmem:[#allocation14_spill] sm:$0xff] %v8724_v35  ;;  %3167 = vperm.xlu0 %7504, %v3045_v32   ;;  %7210 = vmatprep.mubr.msk.f32.mxu0 %vm173_vm0, %v110_v33 }
  0x91   :  { %v8740_v40 = vpop.permute.xlu1 %2752 }
  0x92   :  { %12301 = vst [vmem:[#allocation15_spill] sm:$0xff] %v8740_v40  ;;  %v8742_v41 = vpop.permute.xlu0 %2747  ;;  %7211 = vmatmul.mubr.msk.f32.gmra.mxu0 %vm173_vm0, %v111_v36  ;;  %3182 = vperm.xlu1 %7505, %v3048_v37   ;;  %v129_v36 = vld [vmem:[%s12259_s1 + $0xf8] sm:$0xff] }
  0x93   :  { %12302 = vst [vmem:[#allocation16_spill] sm:$0xff] %v8742_v41  ;;  %3177 = vperm.xlu0 %7504, %v3047_v38   ;;  %7213 = vmatprep.mubr.msk.f32.mxu0 %vm173_vm0, %v112_v39  ;;  %v3066_v37 = vld [vmem:[%s12263_s5 + $0x118] sm:$0xff]  ;;  %v3065_v38 = vld [vmem:[%s12263_s5 + $0x110] sm:$0xff]  ;;  %v130_v39 = vld [vmem:[%s12259_s1 + $0x100] sm:$0xff] }
  0x95   :  { %v8758_v46 = vpop.permute.xlu1 %2762 }
  0x96   :  { %12303 = vst [vmem:[#allocation17_spill] sm:$0xff] %v8758_v46  ;;  %v8760_v47 = vpop.permute.xlu0 %2757  ;;  %7214 = vmatmul.mubr.msk.f32.gmra.mxu0 %vm173_vm0, %v113_v42  ;;  %3192 = vperm.xlu1 %7505, %v3050_v43  }
  0x97   :  { %12304 = vst [vmem:[#allocation18_spill] sm:$0xff] %v8760_v47  ;;  %3187 = vperm.xlu0 %7504, %v3049_v44   ;;  %7216 = vmatprep.mubr.msk.f32.mxu0 %vm173_vm0, %v114_v45  ;;  %v131_v44 = vld [vmem:[%s12259_s1 + $0x108] sm:$0xff] }
  0x98   :  { %v3068_v45 = vld [vmem:[%s12263_s5 + $0x128] sm:$0xff] }
  0x99   :  { %v8776_v52 = vpop.permute.xlu1 %2772 }
  0x9a   :  { %12305 = vst [vmem:[#allocation19_spill] sm:$0xff] %v8776_v52  ;;  %v8778_v53 = vpop.permute.xlu0 %2767  ;;  %7217 = vmatmul.mubr.msk.f32.gmra.mxu0 %vm173_vm0, %v115_v48  ;;  %3202 = vperm.xlu1 %7505, %v3052_v49   ;;  %v3067_v48 = vld [vmem:[%s12263_s5 + $0x120] sm:$0xff]  ;;  %v132_v49 = vld [vmem:[%s12259_s1 + $0x110] sm:$0xff] }
  0x9b   :  { %12306 = vst [vmem:[#allocation20_spill] sm:$0xff] %v8778_v53  ;;  %3197 = vperm.xlu0 %7504, %v3051_v50   ;;  %7219 = vmatprep.mubr.msk.f32.mxu0 %vm173_vm0, %v116_v51 }
  0x9d   :  { %v8794_v58 = vpop.permute.xlu1 %2782 }
  0x9e   :  { %12307 = vst [vmem:[#allocation21_spill] sm:$0xff] %v8794_v58  ;;  %v8796_v59 = vpop.permute.xlu0 %2777  ;;  %7220 = vmatmul.mubr.msk.f32.gmra.mxu0 %vm173_vm0, %v117_v54  ;;  %3212 = vperm.xlu1 %7505, %v3054_v55   ;;  %v133_v54 = vld [vmem:[%s12259_s1 + $0x118] sm:$0xff] }
  0x9f   :  { %12308 = vst [vmem:[#allocation22_spill] sm:$0xff] %v8796_v59  ;;  %3207 = vperm.xlu0 %7504, %v3053_v56   ;;  %7222 = vmatprep.mubr.msk.f32.mxu0 %vm173_vm0, %v118_v57  ;;  %v3070_v55 = vld [vmem:[%s12263_s5 + $0x138] sm:$0xff]  ;;  %v3069_v56 = vld [vmem:[%s12263_s5 + $0x130] sm:$0xff]  ;;  %v134_v57 = vld [vmem:[%s12259_s1 + $0x120] sm:$0xff] }
  0xa1   :  { %v8812_v0 = vpop.permute.xlu1 %2792 }
  0xa2   :  { %12309 = vst [vmem:[#allocation23_spill] sm:$0xff] %v8812_v0  ;;  %v8814_v1 = vpop.permute.xlu0 %2787  ;;  %7223 = vmatmul.mubr.msk.f32.gmra.mxu0 %vm173_vm0, %v119_v60  ;;  %3222 = vperm.xlu1 %7505, %v3056_v61  }
  0xa3   :  { %12310 = vst [vmem:[#allocation24_spill] sm:$0xff] %v8814_v1  ;;  %3217 = vperm.xlu0 %7504, %v3055_v62   ;;  %7225 = vmatprep.mubr.msk.f32.mxu0 %vm173_vm0, %v120_v63  ;;  %v135_v62 = vld [vmem:[%s12259_s1 + $0x128] sm:$0xff] }
  0xa4   :  { %v3072_v63 = vld [vmem:[%s12263_s5 + $0x148] sm:$0xff] }
  0xa5   :  { %v8830_v6 = vpop.permute.xlu1 %2802 }
  0xa6   :  { %12311 = vst [vmem:[#allocation25_spill] sm:$0xff] %v8830_v6  ;;  %v8832_v7 = vpop.permute.xlu0 %2797  ;;  %7226 = vmatmul.mubr.msk.f32.gmra.mxu0 %vm173_vm0, %v121_v2  ;;  %3232 = vperm.xlu1 %7505, %v3058_v3   ;;  %v3071_v2 = vld [vmem:[%s12263_s5 + $0x140] sm:$0xff]  ;;  %v136_v3 = vld [vmem:[%s12259_s1 + $0x130] sm:$0xff] }
  0xa7   :  { %12312 = vst [vmem:[#allocation26_spill] sm:$0xff] %v8832_v7  ;;  %3227 = vperm.xlu0 %7504, %v3057_v4   ;;  %7228 = vmatprep.mubr.msk.f32.mxu0 %vm173_vm0, %v122_v5 }
  0xa9   :  { %v8848_v14 = vpop.permute.xlu1 %2812 }
  0xaa   :  { %12313 = vst [vmem:[#allocation27_spill] sm:$0xff] %v8848_v14  ;;  %v8850_v15 = vpop.permute.xlu0 %2807  ;;  %7229 = vmatmul.mubr.msk.f32.gmra.mxu0 %vm173_vm0, %v123_v8  ;;  %3242 = vperm.xlu1 %7505, %v3060_v9   ;;  %v137_v8 = vld [vmem:[%s12259_s1 + $0x138] sm:$0xff] }
  0xab   :  { %12314 = vst [vmem:[#allocation28_spill] sm:$0xff] %v8850_v15  ;;  %3237 = vperm.xlu0 %7504, %v3059_v12   ;;  %7231 = vmatprep.mubr.msk.f32.mxu0 %vm173_vm0, %v124_v13  ;;  %v3074_v9 = vld [vmem:[%s12263_s5 + $0x158] sm:$0xff]  ;;  %v3073_v12 = vld [vmem:[%s12263_s5 + $0x150] sm:$0xff]  ;;  %v138_v13 = vld [vmem:[%s12259_s1 + $0x140] sm:$0xff] }
  0xad   :  { %v8866_v24 = vpop.permute.xlu1 %2822 }
  0xae   :  { %12315 = vst [vmem:[#allocation29_spill] sm:$0xff] %v8866_v24  ;;  %v8868_v25 = vpop.permute.xlu0 %2817  ;;  %7232 = vmatmul.mubr.msk.f32.gmra.mxu0 %vm173_vm0, %v125_v18  ;;  %3252 = vperm.xlu1 %7505, %v3062_v19  }
  0xaf   :  { %12316 = vst [vmem:[#allocation30_spill] sm:$0xff] %v8868_v25  ;;  %3247 = vperm.xlu0 %7504, %v3061_v20   ;;  %7234 = vmatprep.mubr.msk.f32.mxu0 %vm173_vm0, %v126_v21  ;;  %v139_v20 = vld [vmem:[%s12259_s1 + $0x148] sm:$0xff] }
  0xb0   :  { %v3076_v21 = vld [vmem:[%s12263_s5 + $0x168] sm:$0xff] }
  0xb1   :  { %v8884_v32 = vpop.permute.xlu1 %2832 }
  0xb2   :  { %12317 = vst [vmem:[#allocation31_spill] sm:$0xff] %v8884_v32  ;;  %v8886_v33 = vpop.permute.xlu0 %2827  ;;  %7235 = vmatmul.mubr.msk.f32.gmra.mxu0 %vm173_vm0, %v127_v26  ;;  %3262 = vperm.xlu1 %7505, %v3064_v27   ;;  %v8989_v26 = vld [vmem:[%s12265_s7] ss:$0 sm:$0xff] }
  0xb3   :  { %12318 = vst [vmem:[#allocation32_spill] sm:$0xff] %v8886_v33  ;;  %3257 = vperm.xlu0 %7504, %v3063_v30   ;;  %7237 = vmatprep.mubr.msk.f32.mxu0 %vm173_vm0, %v128_v31  ;;  %v3075_v27 = vld [vmem:[%s12263_s5 + $0x160] sm:$0xff]  ;;  %v140_v30 = vld [vmem:[%s12259_s1 + $0x150] sm:$0xff] }
  0xb5   :  { %v8902_v42 = vpop.permute.xlu1 %2842 }
  0xb6   :  { %12319 = vst [vmem:[#allocation33_spill] sm:$0xff] %v8902_v42  ;;  %v8904_v43 = vpop.permute.xlu0 %2837  ;;  %7238 = vmatmul.mubr.msk.f32.gmra.mxu0 %vm173_vm0, %v129_v36  ;;  %3272 = vperm.xlu1 %7505, %v3066_v37  }
  0xb7   :  { %12320 = vst [vmem:[#allocation34_spill] sm:$0xff] %v8904_v43  ;;  %3267 = vperm.xlu0 %7504, %v3065_v38   ;;  %7240 = vmatprep.mubr.msk.f32.mxu0 %vm173_vm0, %v130_v39  ;;  %v141_v39 = vld [vmem:[%s12259_s1 + $0x158] sm:$0xff] }
  0xb9   :  { %v8920_v50 = vpop.permute.xlu1 %2852 }
  0xba   :  { %12321 = vst [vmem:[#allocation35_spill] sm:$0xff] %v8920_v50  ;;  %v8922_v51 = vpop.permute.xlu0 %2847  ;;  %7241 = vmatmul.mubr.msk.f32.gmra.mxu0 %vm173_vm0, %v131_v44  ;;  %3282 = vperm.xlu1 %7505, %v3068_v45   ;;  %v3078_v44 = vld [vmem:[%s12263_s5 + $0x178] sm:$0xff] }
  0xbb   :  { %12322 = vst [vmem:[#allocation36_spill] sm:$0xff] %v8922_v51  ;;  %3277 = vperm.xlu0 %7504, %v3067_v48   ;;  %7243 = vmatprep.mubr.msk.f32.mxu0 %vm173_vm0, %v132_v49  ;;  %v3077_v48 = vld [vmem:[%s12263_s5 + $0x170] sm:$0xff]  ;;  %v142_v49 = vld [vmem:[%s12259_s1 + $0x160] sm:$0xff] }
  0xbd   :  { %v8938_v60 = vpop.permute.xlu1 %2862 }
  0xbe   :  { %12323 = vst [vmem:[#allocation37_spill] sm:$0xff] %v8938_v60  ;;  %v8940_v61 = vpop.permute.xlu0 %2857  ;;  %7244 = vmatmul.mubr.msk.f32.gmra.mxu0 %vm173_vm0, %v133_v54  ;;  %3292 = vperm.xlu1 %7505, %v3070_v55  }
  0xbf   :  { %12324 = vst [vmem:[#allocation38_spill] sm:$0xff] %v8940_v61  ;;  %3287 = vperm.xlu0 %7504, %v3069_v56   ;;  %7246 = vmatprep.mubr.msk.f32.mxu0 %vm173_vm0, %v134_v57 }
  0xc1   :  { %v8956_v4 = vpop.permute.xlu1 %2872 }
  0xc2   :  { %12325 = vst [vmem:[#allocation39_spill] sm:$0xff] %v8956_v4  ;;  %v8958_v5 = vpop.permute.xlu0 %2867  ;;  %7247 = vmatmul.mubr.msk.f32.gmra.mxu0 %vm173_vm0, %v135_v62  ;;  %3302 = vperm.xlu1 %7505, %v3072_v63  }
  0xc3   :  { %12326 = vst [vmem:[#allocation40_spill] sm:$0xff] %v8958_v5  ;;  %3297 = vperm.xlu0 %7504, %v3071_v2   ;;  %7249 = vmatprep.mubr.msk.f32.mxu0 %vm173_vm0, %v136_v3  ;;  %v143_v3 = vld [vmem:[%s12259_s1 + $0x168] sm:$0xff] }
  0xc5   :  { %v8974_v18 = vpop.permute.xlu1 %2882 }
  0xc6   :  { %12327 = vst [vmem:[#allocation41_spill] sm:$0xff] %v8974_v18  ;;  %v8976_v19 = vpop.permute.xlu0 %2877  ;;  %7250 = vmatmul.mubr.msk.f32.gmra.mxu0 %vm173_vm0, %v137_v8  ;;  %3312 = vperm.xlu1 %7505, %v3074_v9   ;;  %v3080_v8 = vld [vmem:[%s12263_s5 + $0x188] sm:$0xff] }
  0xc7   :  { %12328 = vst [vmem:[#allocation42_spill] sm:$0xff] %v8976_v19  ;;  %3307 = vperm.xlu0 %7504, %v3073_v12   ;;  %7252 = vmatprep.mubr.msk.f32.mxu0 %vm173_vm0, %v138_v13  ;;  %v3079_v12 = vld [vmem:[%s12263_s5 + $0x180] sm:$0xff]  ;;  %v144_v13 = vld [vmem:[%s12259_s1 + $0x170] sm:$0xff] }
  0xc9   :  { %v8997_v31 = vpop.permute.xlu1 %2892 }
  0xca   :  { %12329 = vst [vmem:[#allocation43_spill] sm:$0xff] %v8997_v31  ;;  %v8999_v36 = vpop.permute.xlu0 %2887  ;;  %v7010_v37 = vpop.f32.mrf.mxu0  ;;  %7253 = vmatmul.mubr.msk.f32.gmra.mxu0 %vm173_vm0, %v139_v20  ;;  %3322 = vperm.xlu1 %7505, %v3076_v21  }
  0xcb   :  { %12330 = vst [vmem:[#allocation44_spill] sm:$0xff] %v8999_v36  ;;  %v9003_v38 = vadd.f32 %v7010_v37, %v8989_v26  ;;  %3317 = vperm.xlu0 %7504, %v3075_v27   ;;  %7255 = vmatprep.mubr.msk.f32.mxu0 %vm173_vm0, %v140_v30 }
  0xcc   :  { %v408_v45 = vpop.f32.mrf.mxu0 }
  0xcd   :  { %v6331_v54 = vmul.f32 -1.442695, %v9003_v38  ;;  %v9020_v55 = vadd.f32 %v8989_v26, %v408_v45  ;;  %v9022_v56 = vpop.permute.xlu1 %2902  ;;  %v145_v45 = vld [vmem:[%s12259_s1 + $0x178] sm:$0xff] }
  0xce   :  { %12331 = vst [vmem:[#allocation45_spill] sm:$0xff] %v9022_v56  ;;  %v9024_v57 = vpop.permute.xlu0 %2897  ;;  %v7013_v62 = vpop.f32.mrf.mxu0  ;;  %7256 = vmatmul.mubr.msk.f32.gmra.mxu0 %vm173_vm0, %v141_v39  ;;  %3332 = vperm.xlu1 %7505, %v3078_v44  }
  0xcf   :  { %12332 = vst [vmem:[#allocation46_spill] sm:$0xff] %v9024_v57  ;;  %7510 = vpow2.f32 %v6331_v54  ;;  %v6330_v63 = vmul.f32 -1.442695, %v9020_v55  ;;  %v9029_v2 = vadd.f32 %v7013_v62, %v8989_v26  ;;  %3327 = vperm.xlu0 %7504, %v3077_v48   ;;  %7258 = vmatprep.mubr.msk.f32.mxu0 %vm173_vm0, %v142_v49  ;;  %v3082_v48 = vld [vmem:[%s12263_s5 + $0x198] sm:$0xff]  ;;  %v3081_v54 = vld [vmem:[%s12263_s5 + $0x190] sm:$0xff]  ;;  %v146_v62 = vld [vmem:[%s12259_s1 + $0x180] sm:$0xff] }
  0xd0   :  { %v418_v9 = vpop.f32.mrf.mxu0 }
  0xd1   :  { %7512 = vpow2.f32 %v6330_v63  ;;  %v6333_v20 = vmul.f32 -1.442695, %v9029_v2  ;;  %v9046_v21 = vadd.f32 %v8989_v26, %v418_v9  ;;  %v9048_v27 = vpop.permute.xlu1 %2912 }
  0xd2   :  { %12333 = vst [vmem:[#allocation47_spill] sm:$0xff] %v9048_v27  ;;  %v9050_v30 = vpop.permute.xlu0 %2907  ;;  %v7016_v37 = vpop.f32.mrf.mxu0  ;;  %7259 = vmatmul.mubr.msk.f32.gmra.mxu0 %vm173_vm0, %v143_v3  ;;  %3342 = vperm.xlu1 %7505, %v3080_v8  }
  0xd3   :  { %12334 = vst [vmem:[#allocation48_spill] sm:$0xff] %v9050_v30  ;;  %7514 = vpow2.f32 %v6333_v20  ;;  %v6332_v39 = vmul.f32 -1.442695, %v9046_v21  ;;  %v9055_v44 = vadd.f32 %v7016_v37, %v8989_v26  ;;  %3337 = vperm.xlu0 %7504, %v3079_v12   ;;  %7261 = vmatprep.mubr.msk.f32.mxu0 %vm173_vm0, %v144_v13  ;;  %v147_v37 = vld [vmem:[%s12259_s1 + $0x188] sm:$0xff] }
  0xd4   :  { %v428_v49 = vpop.f32.mrf.mxu0 }
  0xd5   :  { %7516 = vpow2.f32 %v6332_v39  ;;  %v6335_v63 = vmul.f32 -1.442695, %v9055_v44  ;;  %v9072_v3 = vadd.f32 %v8989_v26, %v428_v49  ;;  %v9074_v8 = vpop.permute.xlu1 %2922  ;;  %v3084_v39 = vld [vmem:[%s12263_s5 + $0x1a8] sm:$0xff] }
  0xd6   :  { %12335 = vst [vmem:[#allocation49_spill] sm:$0xff] %v9074_v8  ;;  %v9076_v9 = vpop.permute.xlu0 %2917  ;;  %v7019_v12 = vpop.f32.mrf.mxu0  ;;  %7262 = vmatmul.mubr.msk.f32.gmra.mxu0 %vm173_vm0, %v145_v45  ;;  %3352 = vperm.xlu1 %7505, %v3082_v48   ;;  %v3083_v45 = vld [vmem:[%s12263_s5 + $0x1a0] sm:$0xff]  ;;  %v148_v48 = vld [vmem:[%s12259_s1 + $0x190] sm:$0xff] }
  0xd7   :  { %12336 = vst [vmem:[#allocation50_spill] sm:$0xff] %v9076_v9  ;;  %7518 = vpow2.f32 %v6335_v63  ;;  %v6334_v13 = vmul.f32 -1.442695, %v9072_v3  ;;  %v9081_v20 = vadd.f32 %v7019_v12, %v8989_v26  ;;  %3347 = vperm.xlu0 %7504, %v3081_v54   ;;  %7264 = vmatprep.mubr.msk.f32.mxu0 %vm173_vm0, %v146_v62 }
  0xd8   :  { %v438_v49 = vpop.f32.mrf.mxu0 }
  0xd9   :  { %7520 = vpow2.f32 %v6334_v13  ;;  %v6337_v54 = vmul.f32 -1.442695, %v9081_v20  ;;  %v9098_v62 = vadd.f32 %v8989_v26, %v438_v49  ;;  %v9100_v63 = vpop.permute.xlu1 %2932  ;;  %v149_v13 = vld [vmem:[%s12259_s1 + $0x198] sm:$0xff] }
  0xda   :  { %12337 = vst [vmem:[#allocation51_spill] sm:$0xff] %v9100_v63  ;;  %v9102_v12 = vpop.permute.xlu0 %2927  ;;  %v7022_v8 = vpop.f32.mrf.mxu0  ;;  %7265 = vmatmul.mubr.msk.f32.gmra.mxu0 %vm173_vm0, %v147_v37  ;;  %3362 = vperm.xlu1 %7505, %v3084_v39   ;;  %v3086_v49 = vld [vmem:[%s12263_s5 + $0x1b8] sm:$0xff]  ;;  %v3085_v39 = vld [vmem:[%s12263_s5 + $0x1b0] sm:$0xff] }
  0xdb   :  { %12338 = vst [vmem:[#allocation52_spill] sm:$0xff] %v9102_v12  ;;  %7522 = vpow2.f32 %v6337_v54  ;;  %v6336_v9 = vmul.f32 -1.442695, %v9098_v62  ;;  %v9107_v27 = vadd.f32 %v7022_v8, %v8989_v26  ;;  %3357 = vperm.xlu0 %7504, %v3083_v45   ;;  %7267 = vmatprep.mubr.msk.f32.mxu0 %vm173_vm0, %v148_v48  ;;  %v150_v8 = vld [vmem:[%s12259_s1 + $0x1a0] sm:$0xff] }
  0xdc   :  { %v7511_v63 = vpop.eup %7510  ;;  %v448_v37 = vpop.f32.mrf.mxu0 }
  0xdd   :  { %v856_v45 = vadd.f32 1.0, %v7511_v63  ;;  %7524 = vpow2.f32 %v6336_v9  ;;  %v6339_v48 = vmul.f32 -1.442695, %v9107_v27  ;;  %v9124_v54 = vadd.f32 %v8989_v26, %v448_v37  ;;  %v9126_v12 = vpop.permute.xlu1 %2942  ;;  %v151_v63 = vld [vmem:[%s12259_s1 + $0x1a8] sm:$0xff] }
  0xde   :  { %12339 = vst [vmem:[#allocation53_spill] sm:$0xff] %v9126_v12  ;;  %v7513_v30 = vpop.eup %7512  ;;  %v9128_v56 = vpop.permute.xlu0 %2937  ;;  %7268 = vmatmul.mubr.msk.f32.gmra.mxu0 %vm173_vm0, %v149_v13  ;;  %3372 = vperm.xlu1 %7505, %v3086_v49   ;;  %v3088_v37 = vld [vmem:[%s12263_s5 + $0x1c8] sm:$0xff] }
  0xdf   :  { %12340 = vst [vmem:[#allocation54_spill] sm:$0xff] %v9128_v56  ;;  %v7025_v32 = vpop.f32.mrf.mxu0  ;;  %7526 = vrcp.f32 %v856_v45  ;;  %v855_v57 = vadd.f32 1.0, %v7513_v30  ;;  %v6338_v31 = vmul.f32 -1.442695, %v9124_v54  ;;  %3367 = vperm.xlu0 %7504, %v3085_v39   ;;  %7270 = vmatprep.mubr.msk.f32.mxu0 %vm173_vm0, %v150_v8  ;;  %v3087_v30 = vld [vmem:[%s12263_s5 + $0x1c0] sm:$0xff] }
  0xe0   :  { %v9133_v9 = vadd.f32 %v7025_v32, %v8989_v26  ;;  %v7515_v13 = vpop.eup %7514  ;;  %7528 = vpow2.f32 %v6339_v48  ;;  %v152_v32 = vld [vmem:[%s12259_s1 + $0x1b0] sm:$0xff] }
  0xe1   :  { %v458_v49 = vpop.f32.mrf.mxu0  ;;  %7530 = vrcp.f32 %v855_v57  ;;  %v858_v39 = vadd.f32 1.0, %v7515_v13  ;;  %v9152_v12 = vpop.permute.xlu1 %2952 }
  0xe2   :  { %v6341_v8 = vmul.f32 -1.442695, %v9133_v9  ;;  %v9150_v45 = vadd.f32 %v8989_v26, %v458_v49  ;;  %12341 = vst [vmem:[#allocation55_spill] sm:$0xff] %v9152_v12  ;;  %v7517_v56 = vpop.eup %7516  ;;  %7532 = vpow2.f32 %v6338_v31  ;;  %v9154_v48 = vpop.permute.xlu0 %2947  ;;  %7271 = vmatmul.mubr.msk.f32.gmra.mxu0 %vm173_vm0, %v151_v63  ;;  %3382 = vperm.xlu1 %7505, %v3088_v37   ;;  %v153_v31 = vld [vmem:[%s12259_s1 + $0x1b8] sm:$0xff] }
  0xe3   :  { %12342 = vst [vmem:[#allocation56_spill] sm:$0xff] %v9154_v48  ;;  %v7028_v33 = vpop.f32.mrf.mxu0  ;;  %7534 = vrcp.f32 %v858_v39  ;;  %v857_v24 = vadd.f32 1.0, %v7517_v56  ;;  %3377 = vperm.xlu0 %7504, %v3087_v30   ;;  %7273 = vmatprep.mubr.msk.f32.mxu0 %vm173_vm0, %v152_v32  ;;  %v3090_v49 = vld [vmem:[%s12263_s5 + $0x1d8] sm:$0xff]  ;;  %v3089_v56 = vld [vmem:[%s12263_s5 + $0x1d0] sm:$0xff] }
  0xe4   :  { %v6340_v57 = vmul.f32 -1.442695, %v9150_v45  ;;  %v9159_v13 = vadd.f32 %v7028_v33, %v8989_v26  ;;  %v7519_v63 = vpop.eup %7518  ;;  %7536 = vpow2.f32 %v6341_v8  ;;  %v154_v33 = vld [vmem:[%s12259_s1 + $0x1c0] sm:$0xff] }
  0xe5   :  { %v468_v37 = vpop.f32.mrf.mxu0  ;;  %7538 = vrcp.f32 %v857_v24  ;;  %v860_v30 = vadd.f32 1.0, %v7519_v63  ;;  %v9178_v12 = vpop.permute.xlu1 %2962 }
  0xe6   :  { %v6343_v32 = vmul.f32 -1.442695, %v9159_v13  ;;  %v9176_v39 = vadd.f32 %v8989_v26, %v468_v37  ;;  %12343 = vst [vmem:[#allocation57_spill] sm:$0xff] %v9178_v12  ;;  %v7521_v48 = vpop.eup %7520  ;;  %7540 = vpow2.f32 %v6340_v57  ;;  %v9180_v8 = vpop.permute.xlu0 %2957  ;;  %7274 = vmatmul.mubr.msk.f32.gmra.mxu0 %vm173_vm0, %v153_v31  ;;  %3392 = vperm.xlu1 %7505, %v3090_v49   ;;  %v155_v57 = vld [vmem:[%s12259_s1 + $0x1c8] sm:$0xff] }
  0xe7   :  { %12344 = vst [vmem:[#allocation58_spill] sm:$0xff] %v9180_v8  ;;  %v7031_v36 = vpop.f32.mrf.mxu0  ;;  %7542 = vrcp.f32 %v860_v30  ;;  %v859_v18 = vadd.f32 1.0, %v7521_v48  ;;  %3387 = vperm.xlu0 %7504, %v3089_v56   ;;  %7276 = vmatprep.mubr.msk.f32.mxu0 %vm173_vm0, %v154_v33  ;;  %v3092_v37 = vld [vmem:[%s12263_s5 + $0x1e8] sm:$0xff]  ;;  %v3091_v48 = vld [vmem:[%s12263_s5 + $0x1e0] sm:$0xff] }
  0xe8   :  { %v6342_v24 = vmul.f32 -1.442695, %v9176_v39  ;;  %v9185_v63 = vadd.f32 %v7031_v36, %v8989_v26  ;;  %v7523_v31 = vpop.eup %7522  ;;  %7544 = vpow2.f32 %v6343_v32  ;;  %v156_v36 = vld [vmem:[%s12259_s1 + $0x1d0] sm:$0xff] }
  0xe9   :  { %v478_v49 = vpop.f32.mrf.mxu0  ;;  %7546 = vrcp.f32 %v859_v18  ;;  %v862_v56 = vadd.f32 1.0, %v7523_v31  ;;  %v9204_v12 = vpop.permute.xlu1 %2972 }
  0xea   :  { %v6345_v33 = vmul.f32 -1.442695, %v9185_v63  ;;  %v9202_v30 = vadd.f32 %v8989_v26, %v478_v49  ;;  %12345 = vst [vmem:[#allocation59_spill] sm:$0xff] %v9204_v12  ;;  %v7525_v8 = vpop.eup %7524  ;;  %7548 = vpow2.f32 %v6342_v24  ;;  %v9206_v32 = vpop.permute.xlu0 %2967  ;;  %7277 = vmatmul.mubr.msk.f32.gmra.mxu0 %vm173_vm0, %v155_v57  ;;  %3402 = vperm.xlu1 %7505, %v3092_v37   ;;  %v157_v24 = vld [vmem:[%s12259_s1 + $0x1d8] sm:$0xff] }
  0xeb   :  { %12346 = vst [vmem:[#allocation60_spill] sm:$0xff] %v9206_v32  ;;  %v7034_v25 = vpop.f32.mrf.mxu0  ;;  %7550 = vrcp.f32 %v862_v56  ;;  %v861_v14 = vadd.f32 1.0, %v7525_v8  ;;  %3397 = vperm.xlu0 %7504, %v3091_v48   ;;  %7279 = vmatprep.mubr.msk.f32.mxu0 %vm173_vm0, %v156_v36  ;;  %v3094_v49 = vld [vmem:[%s12263_s5 + $0x1f8] sm:$0xff]  ;;  %v3093_v8 = vld [vmem:[%s12263_s5 + $0x1f0] sm:$0xff] }
  0xec   :  { %v6344_v18 = vmul.f32 -1.442695, %v9202_v30  ;;  %v9211_v31 = vadd.f32 %v7034_v25, %v8989_v26  ;;  %v7527_v57 = vpop.eup %7526  ;;  %7552 = vpow2.f32 %v6345_v33  ;;  %v158_v25 = vld [vmem:[%s12259_s1 + $0x1e0] sm:$0xff] }
  0xed   :  { %v488_v37 = vpop.f32.mrf.mxu0  ;;  %v7529_v48 = vpop.eup %7528  ;;  %7554 = vrcp.f32 %v861_v14 }
  0xee   :  { %v6347_v36 = vmul.f32 -1.442695, %v9211_v31  ;;  %v9228_v56 = vadd.f32 %v8989_v26, %v488_v37  ;;  %v9230_v12 = vpop.permute.xlu1 %3102  ;;  %v7531_v32 = vpop.eup %7530  ;;  %v864_v33 = vadd.f32 1.0, %v7529_v48  ;;  %7556 = vpow2.f32 %v6344_v18  ;;  %7280 = vmatmul.mubr.msk.f32.gmra.mxu0 %vm173_vm0, %v157_v24  ;;  %3412 = vperm.xlu1 %7505, %v3094_v49   ;;  %v159_v18 = vld [vmem:[%s12259_s1 + $0x1e8] sm:$0xff] }
  0xef   :  { %v9232_v19 = vpop.permute.xlu0 %3097  ;;  %v7037_v4 = vpop.f32.mrf.mxu0  ;;  %3407 = vperm.xlu0 %7504, %v3093_v8   ;;  %v1023_v37 = vmul.f32 %v7531_v32, %v9020_v55  ;;  %7282 = vmatprep.mubr.msk.f32.mxu0 %vm173_vm0, %v158_v25  ;;  %v1024_v24 = vmul.f32 %v7527_v57, %v9003_v38  ;;  %v4379_v55 = vld [vmem:[%s12260_s2] sm:$0xff] }
  0xf0   :  { %v7533_v15 = vpop.eup %7532  ;;  %7558 = vpow2.f32 %v6347_v36  ;;  %v6346_v14 = vmul.f32 -1.442695, %v9228_v56  ;;  %v9237_v6 = vadd.f32 %v7037_v4, %v8989_v26  ;;  %v4380_v4 = vld [vmem:[%s12260_s2 + $0x8] sm:$0xff] }
  0xf1   :  { %v7535_v48 = vpop.eup %7534  ;;  %7560 = vrcp.f32 %v864_v33  ;;  %v863_v49 = vadd.f32 1.0, %v7533_v15  ;;  %v498_v36 = vpop.f32.mrf.mxu0  ;;  %7100 = vmatprep.mubr.msk.f32.mxu1 %vm173_vm0, %v1023_v37  ;;  %v160_v15 = vld [vmem:[%s12259_s1 + $0x1f0] sm:$0xff] }
  0xf2   :  { %v7537_v32 = vpop.eup %7536  ;;  %7562 = vpow2.f32 %v6346_v14  ;;  %v6349_v8 = vmul.f32 -1.442695, %v9237_v6  ;;  %v9253_v25 = vadd.f32 %v8989_v26, %v498_v36  ;;  %v9256_v38 = vpop.permute.xlu1 %3112  ;;  %7101 = vmatmul.mubr.msk.f32.vlgmr.msra.gmra.mxu1 %vm173_vm0, %v1024_v24  ;;  %7283 = vmatmul.mubr.msk.f32.gmra.mxu0 %vm173_vm0, %v159_v18  ;;  %v1026_v24 = vmul.f32 %v7535_v48, %v9029_v2 }
  0xf3   :  { %v7539_v57 = vpop.eup %7538  ;;  %7564 = vrcp.f32 %v863_v49  ;;  %v866_v33 = vadd.f32 1.0, %v7537_v32  ;;  %v9261_v5 = vpop.permute.xlu0 %3107  ;;  %4446 = vperm.xlu1 %7505, %v4380_v4   ;;  %4441 = vperm.xlu0 %7504, %v4379_v55   ;;  %v161_v49 = vld [vmem:[%s12259_s1 + $0x1f8] sm:$0xff] }
  0xf4   :  { %v7040_v60 = vpop.f32.mrf.mxu0  ;;  %v7541_v14 = vpop.eup %7540  ;;  %v1025_v36 = vmul.f32 %v7539_v57, %v9046_v21  ;;  %7566 = vpow2.f32 %v6349_v8  ;;  %v6348_v37 = vmul.f32 -1.442695, %v9253_v25  ;;  %7285 = vmatprep.mubr.msk.f32.mxu0 %vm173_vm0, %v160_v15  ;;  %v4382_v21 = vld [vmem:[%s12260_s2 + $0x18] sm:$0xff] }
  0xf5   :  { %v9268_v7 = vadd.f32 %v7040_v60, %v8989_v26  ;;  %v7543_v32 = vpop.eup %7542  ;;  %7568 = vrcp.f32 %v866_v33  ;;  %v865_v18 = vadd.f32 1.0, %v7541_v14  ;;  %v4381_v60 = vld [vmem:[%s12260_s2 + $0x10] sm:$0xff] }
  0xf6   :  { %v508_v0 = vpop.f32.mrf.mxu0  ;;  %v7545_v4 = vpop.eup %7544  ;;  %7570 = vpow2.f32 %v6348_v37  ;;  %7103 = vmatprep.mubr.msk.f32.mxu1 %vm173_vm0, %v1025_v36  ;;  %7286 = vmatmul.mubr.msk.f32.gmra.mxu0 %vm173_vm0, %v161_v49  ;;  %v4384_v49 = vld [vmem:[%s12260_s2 + $0x28] sm:$0xff] }
  0xf7   :  { %v6351_v55 = vmul.f32 -1.442695, %v9268_v7  ;;  %v9283_v8 = vadd.f32 %v8989_v26, %v508_v0  ;;  %v9286_v2 = vpop.permute.xlu1 %3122  ;;  %v7547_v48 = vpop.eup %7546  ;;  %7572 = vrcp.f32 %v865_v18  ;;  %v868_v15 = vadd.f32 1.0, %v7545_v4  ;;  %7104 = vmatmul.mubr.msk.f32.gmra.mxu1 %vm173_vm0, %v1026_v24  ;;  %4456 = vperm.xlu1 %7505, %v4382_v21  }
  0xf8   :  { %v9288_v57 = vpop.permute.xlu0 %3117  ;;  %v7043_v33 = vpop.f32.mrf.mxu0  ;;  %v1027_v37 = vmul.f32 %v7547_v48, %v9072_v3  ;;  %4451 = vperm.xlu0 %7504, %v4381_v60   ;;  %v1028_v4 = vmul.f32 %v7543_v32, %v9055_v44  ;;  %v4383_v3 = vld [vmem:[%s12260_s2 + $0x20] sm:$0xff] }
  0xf9   :  { %v7549_v14 = vpop.eup %7548  ;;  %7574 = vpow2.f32 %v6351_v55  ;;  %v6350_v0 = vmul.f32 -1.442695, %v9283_v8  ;;  %v9295_v36 = vadd.f32 %v7043_v33, %v8989_v26 }
  0xfa   :  { %v7551_v18 = vpop.eup %7550  ;;  %7576 = vrcp.f32 %v868_v15  ;;  %v867_v61 = vadd.f32 1.0, %v7549_v14  ;;  %v518_v50 = vpop.f32.mrf.mxu0  ;;  %7106 = vmatprep.mubr.msk.f32.mxu1 %vm173_vm0, %v1027_v37 }
  0xfb   :  { %v7553_v24 = vpop.eup %7552  ;;  %7578 = vpow2.f32 %v6350_v0  ;;  %v6353_v55 = vmul.f32 -1.442695, %v9295_v36  ;;  %v9306_v21 = vadd.f32 %v8989_v26, %v518_v50  ;;  %v9309_v44 = vpop.permute.xlu1 %3132  ;;  %7107 = vmatmul.mubr.msk.f32.gmra.mxu1 %vm173_vm0, %v1028_v4  ;;  %4466 = vperm.xlu1 %7505, %v4384_v49   ;;  %v4386_v4 = vld [vmem:[%s12260_s2 + $0x38] sm:$0xff] }
  0xfc   :  { %v7555_v32 = vpop.eup %7554  ;;  %7580 = vrcp.f32 %v867_v61  ;;  %v870_v60 = vadd.f32 1.0, %v7553_v24  ;;  %v9311_v48 = vpop.permute.xlu0 %3127  ;;  %4461 = vperm.xlu0 %7504, %v4383_v3   ;;  %v1030_v61 = vmul.f32 %v7551_v18, %v9081_v20 }
  0xfd   :  { %v7046_v15 = vpop.f32.mrf.mxu0  ;;  %v7557_v33 = vpop.eup %7556  ;;  %v1029_v14 = vmul.f32 %v7555_v32, %v9098_v62  ;;  %7582 = vpow2.f32 %v6353_v55  ;;  %v6352_v0 = vmul.f32 -1.442695, %v9306_v21  ;;  %v4385_v62 = vld [vmem:[%s12260_s2 + $0x30] sm:$0xff] }
  0xfe   :  { %v9317_v50 = vadd.f32 %v7046_v15, %v8989_v26  ;;  %v7559_v37 = vpop.eup %7558  ;;  %7584 = vrcp.f32 %v870_v60  ;;  %v869_v24 = vadd.f32 1.0, %v7557_v33 }
  0xff   :  { %v528_v1 = vpop.f32.mrf.mxu0  ;;  %v7561_v55 = vpop.eup %7560  ;;  %v872_v32 = vadd.f32 1.0, %v7559_v37  ;;  %7586 = vpow2.f32 %v6352_v0  ;;  %7109 = vmatprep.mubr.msk.f32.mxu1 %vm173_vm0, %v1029_v14  ;;  %4476 = vperm.xlu1 %7505, %v4386_v4  }
 0x100   :  { %v6355_v49 = vmul.f32 -1.442695, %v9317_v50  ;;  %v9328_v3 = vadd.f32 %v8989_v26, %v528_v1  ;;  %v9331_v20 = vpop.permute.xlu1 %3142  ;;  %v7563_v18 = vpop.eup %7562  ;;  %7588 = vrcp.f32 %v869_v24  ;;  %7110 = vmatmul.mubr.msk.f32.gmra.mxu1 %vm173_vm0, %v1030_v61  ;;  %4471 = vperm.xlu0 %7504, %v4385_v62   ;;  %v1032_v14 = vmul.f32 %v7561_v55, %v9107_v27  ;;  %v4388_v61 = vld [vmem:[%s12260_s2 + $0x48] sm:$0xff]  ;;  %v4387_v27 = vld [vmem:[%s12260_s2 + $0x40] sm:$0xff] }
 0x101   :  { %v9333_v60 = vpop.permute.xlu0 %3137  ;;  %v7049_v15 = vpop.f32.mrf.mxu0  ;;  %7590 = vrcp.f32 %v872_v32  ;;  %v871_v37 = vadd.f32 1.0, %v7563_v18 }
 0x102   :  { %v7565_v33 = vpop.eup %7564  ;;  %v6354_v0 = vmul.f32 -1.442695, %v9328_v3  ;;  %v9338_v58 = vadd.f32 %v7049_v15, %v8989_v26  ;;  %7592 = vpow2.f32 %v6355_v49 }
 0x103   :  { %v7567_v1 = vpop.eup %7566  ;;  %v1031_v24 = vmul.f32 %v7565_v33, %v9124_v54  ;;  %v538_v51 = vpop.f32.mrf.mxu0  ;;  %7594 = vrcp.f32 %v871_v37  ;;  %4486 = vperm.xlu1 %7505, %v4388_v61  }
 0x104   :  { %v7569_v32 = vpop.eup %7568  ;;  %v874_v18 = vadd.f32 1.0, %v7567_v1  ;;  %v6357_v59 = vmul.f32 -1.442695, %v9338_v58  ;;  %v9347_v15 = vadd.f32 %v8989_v26, %v538_v51  ;;  %v9349_v4 = vpop.permute.xlu1 %3152  ;;  %7596 = vpow2.f32 %v6354_v0  ;;  %4481 = vperm.xlu0 %7504, %v4387_v27  }
 0x105   :  { %v7571_v54 = vpop.eup %7570  ;;  %7112 = vmatprep.mubr.msk.f32.mxu1 %vm173_vm0, %v1031_v24  ;;  %v9355_v62 = vpop.permute.xlu0 %3147  ;;  %v1034_v42 = vmul.f32 %v7569_v32, %v9133_v9 }
 0x106   :  { %v7052_v55 = vpop.f32.mrf.mxu0  ;;  %v7573_v49 = vpop.eup %7572  ;;  %7598 = vrcp.f32 %v874_v18  ;;  %v873_v33 = vadd.f32 1.0, %v7571_v54  ;;  %v6356_v37 = vmul.f32 -1.442695, %v9347_v15  ;;  %7113 = vmatmul.mubr.msk.f32.gmra.mxu1 %vm173_vm0, %v1032_v14  ;;  %v4390_v18 = vld [vmem:[%s12260_s2 + $0x58] sm:$0xff] }
 0x107   :  { %v9359_v51 = vadd.f32 %v7052_v55, %v8989_v26  ;;  %v7575_v1 = vpop.eup %7574  ;;  %v1033_v0 = vmul.f32 %v7573_v49, %v9150_v45  ;;  %7600 = vpow2.f32 %v6357_v59  ;;  %v4389_v59 = vld [vmem:[%s12260_s2 + $0x50] sm:$0xff]  ;;  %4496 = vperm.xlu1 %7505, %v4390_v18  }
 0x108   :  { %v548_v24 = vpop.f32.mrf.mxu0  ;;  %v7577_v54 = vpop.eup %7576  ;;  %7602 = vrcp.f32 %v873_v33  ;;  %v876_v52 = vadd.f32 1.0, %v7575_v1  ;;  %4491 = vperm.xlu0 %7504, %v4389_v59  }
 0x109   :  { %v6359_v55 = vmul.f32 -1.442695, %v9359_v51  ;;  %v9369_v14 = vadd.f32 %v8989_v26, %v548_v24  ;;  %v9371_v61 = vpop.permute.xlu1 %3162  ;;  %v7579_v9 = vpop.eup %7578  ;;  %7604 = vpow2.f32 %v6356_v37  ;;  %7115 = vmatprep.mubr.msk.f32.mxu1 %vm173_vm0, %v1033_v0  ;;  %v1036_v43 = vmul.f32 %v7577_v54, %v9159_v13  ;;  %v4391_v13 = vld [vmem:[%s12260_s2 + $0x60] sm:$0xff] }
 0x10a   :  { %v9377_v45 = vpop.permute.xlu0 %3157  ;;  %v7055_v32 = vpop.f32.mrf.mxu0  ;;  %7606 = vrcp.f32 %v876_v52  ;;  %v875_v49 = vadd.f32 1.0, %v7579_v9  ;;  %7116 = vmatmul.mubr.msk.f32.gmra.mxu1 %vm173_vm0, %v1034_v42  ;;  %v4392_v52 = vld [vmem:[%s12260_s2 + $0x68] sm:$0xff] }
 0x10b   :  { %v7581_v27 = vpop.eup %7580  ;;  %v6358_v33 = vmul.f32 -1.442695, %v9369_v14  ;;  %v9381_v1 = vadd.f32 %v7055_v32, %v8989_v26  ;;  %7608 = vpow2.f32 %v6359_v55  ;;  %4506 = vperm.xlu1 %7505, %v4392_v52  }
 0x10c   :  { %v7583_v24 = vpop.eup %7582  ;;  %v1035_v37 = vmul.f32 %v7581_v27, %v9176_v39  ;;  %v558_v0 = vpop.f32.mrf.mxu0  ;;  %7610 = vrcp.f32 %v875_v49  ;;  %4501 = vperm.xlu0 %7504, %v4391_v13  }
 0x10d   :  { %v7585_v9 = vpop.eup %7584  ;;  %v878_v46 = vadd.f32 1.0, %v7583_v24  ;;  %v6361_v32 = vmul.f32 -1.442695, %v9381_v1  ;;  %v9391_v42 = vadd.f32 %v8989_v26, %v558_v0  ;;  %v9393_v18 = vpop.permute.xlu1 %3172  ;;  %7612 = vpow2.f32 %v6358_v33 }
 0x10e   :  { %v7587_v39 = vpop.eup %7586  ;;  %7118 = vmatprep.mubr.msk.f32.mxu1 %vm173_vm0, %v1035_v37  ;;  %v9399_v54 = vpop.permute.xlu0 %3167  ;;  %v4394_v37 = vld [vmem:[%s12260_s2 + $0x78] sm:$0xff] }
 0x10f   :  { %v7058_v55 = vpop.f32.mrf.mxu0  ;;  %v7589_v59 = vpop.eup %7588  ;;  %7614 = vrcp.f32 %v878_v46  ;;  %v877_v27 = vadd.f32 1.0, %v7587_v39  ;;  %v6360_v49 = vmul.f32 -1.442695, %v9391_v42  ;;  %7119 = vmatmul.mubr.msk.f32.gmra.mxu1 %vm173_vm0, %v1036_v43  ;;  %v1038_v39 = vmul.f32 %v7585_v9, %v9185_v63  ;;  %4516 = vperm.xlu1 %7505, %v4394_v37  }
 0x110   :  { %v9403_v24 = vadd.f32 %v7058_v55, %v8989_v26  ;;  %v7591_v0 = vpop.eup %7590  ;;  %v1037_v53 = vmul.f32 %v7589_v59, %v9202_v30  ;;  %7616 = vpow2.f32 %v6361_v32  ;;  %v4393_v30 = vld [vmem:[%s12260_s2 + $0x70] sm:$0xff] }
 0x111   :  { %v568_v33 = vpop.f32.mrf.mxu0  ;;  %v7593_v46 = vpop.eup %7592  ;;  %7618 = vrcp.f32 %v877_v27  ;;  %4511 = vperm.xlu0 %7504, %v4393_v30  }
 0x112   :  { %v6363_v55 = vmul.f32 -1.442695, %v9403_v24  ;;  %v9413_v40 = vadd.f32 %v8989_v26, %v568_v33  ;;  %v9415_v43 = vpop.permute.xlu1 %3182  ;;  %v7595_v52 = vpop.eup %7594  ;;  %v880_v32 = vadd.f32 1.0, %v7593_v46  ;;  %7620 = vpow2.f32 %v6360_v49  ;;  %7121 = vmatprep.mubr.msk.f32.mxu1 %vm173_vm0, %v1037_v53  ;;  %v4396_v46 = vld [vmem:[%s12260_s2 + $0x88] sm:$0xff] }
 0x113   :  { %12347 = vst [vmem:[#allocation61_spill] sm:$0xff] %v9415_v43  ;;  %v9421_v13 = vpop.permute.xlu0 %3177  ;;  %v7061_v63 = vpop.f32.mrf.mxu0  ;;  %v1039_v59 = vmul.f32 %v7595_v52, %v9228_v56  ;;  %7122 = vmatmul.mubr.msk.f32.gmra.mxu1 %vm173_vm0, %v1038_v39  ;;  %v1040_v56 = vmul.f32 %v7591_v0, %v9211_v31  ;;  %v4395_v39 = vld [vmem:[%s12260_s2 + $0x80] sm:$0xff]  ;;  %4526 = vperm.xlu1 %7505, %v4396_v46  }
 0x114   :  { %12348 = vst [vmem:[#allocation62_spill] sm:$0xff] %v9421_v13  ;;  %v7597_v9 = vpop.eup %7596  ;;  %7622 = vpow2.f32 %v6363_v55  ;;  %v6362_v27 = vmul.f32 -1.442695, %v9413_v40  ;;  %v9426_v33 = vadd.f32 %v7061_v63, %v8989_v26 }
 0x115   :  { %v7599_v43 = vpop.eup %7598  ;;  %7624 = vrcp.f32 %v880_v32  ;;  %v879_v49 = vadd.f32 1.0, %v7597_v9  ;;  %v578_v53 = vpop.f32.mrf.mxu0  ;;  %7124 = vmatprep.mubr.msk.f32.mxu1 %vm173_vm0, %v1039_v59  ;;  %4521 = vperm.xlu0 %7504, %v4395_v39  }
 0x116   :  { %v7601_v13 = vpop.eup %7600  ;;  %7626 = vpow2.f32 %v6362_v27  ;;  %v6365_v55 = vmul.f32 -1.442695, %v9426_v33  ;;  %v9435_v52 = vadd.f32 %v8989_v26, %v578_v53  ;;  %v9438_v37 = vpop.permute.xlu1 %3192 }
 0x117   :  { %12349 = vst [vmem:[#allocation63_spill] sm:$0xff] %v9438_v37  ;;  %v7603_v30 = vpop.eup %7602  ;;  %7628 = vrcp.f32 %v879_v49  ;;  %v882_v32 = vadd.f32 1.0, %v7601_v13  ;;  %v9443_v63 = vpop.permute.xlu0 %3187  ;;  %7125 = vmatmul.mubr.msk.f32.gmra.mxu1 %vm173_vm0, %v1040_v56  ;;  %v4398_v49 = vld [vmem:[%s12260_s2 + $0x98] sm:$0xff]  ;;  %v4397_v56 = vld [vmem:[%s12260_s2 + $0x90] sm:$0xff] }
 0x118   :  { %12350 = vst [vmem:[#allocation64_spill] sm:$0xff] %v9443_v63  ;;  %v7064_v31 = vpop.f32.mrf.mxu0  ;;  %v7605_v0 = vpop.eup %7604  ;;  %v1041_v9 = vmul.f32 %v7603_v30, %v9253_v25  ;;  %7630 = vpow2.f32 %v6365_v55  ;;  %v6364_v27 = vmul.f32 -1.442695, %v9435_v52  ;;  %v1042_v25 = vmul.f32 %v7599_v43, %v9237_v6  ;;  %4536 = vperm.xlu1 %7505, %v4398_v49  }
 0x119   :  { %v9448_v59 = vadd.f32 %v7064_v31, %v8989_v26  ;;  %v7607_v53 = vpop.eup %7606  ;;  %7632 = vrcp.f32 %v882_v32  ;;  %v881_v37 = vadd.f32 1.0, %v7605_v0  ;;  %4531 = vperm.xlu0 %7504, %v4397_v56  }
 0x11a   :  { %v588_v13 = vpop.f32.mrf.mxu0  ;;  %v7609_v63 = vpop.eup %7608  ;;  %7634 = vpow2.f32 %v6364_v27  ;;  %7127 = vmatprep.mubr.msk.f32.mxu1 %vm173_vm0, %v1041_v9 }
 0x11b   :  { %v6367_v55 = vmul.f32 -1.442695, %v9448_v59  ;;  %v9457_v30 = vadd.f32 %v8989_v26, %v588_v13  ;;  %v9460_v46 = vpop.permute.xlu1 %3202  ;;  %v7611_v39 = vpop.eup %7610  ;;  %7636 = vrcp.f32 %v881_v37  ;;  %v884_v32 = vadd.f32 1.0, %v7609_v63  ;;  %7128 = vmatmul.mubr.msk.f32.gmra.mxu1 %vm173_vm0, %v1042_v25  ;;  %v4400_v63 = vld [vmem:[%s12260_s2 + $0xa8] sm:$0xff]  ;;  %v4399_v25 = vld [vmem:[%s12260_s2 + $0xa0] sm:$0xff] }
 0x11c   :  { %12351 = vst [vmem:[#allocation65_spill] sm:$0xff] %v9460_v46  ;;  %v9465_v31 = vpop.permute.xlu0 %3197  ;;  %v7067_v6 = vpop.f32.mrf.mxu0  ;;  %v1043_v0 = vmul.f32 %v7611_v39, %v9283_v8  ;;  %v1044_v8 = vmul.f32 %v7607_v53, %v9268_v7  ;;  %4546 = vperm.xlu1 %7505, %v4400_v63  }
 0x11d   :  { %12352 = vst [vmem:[#allocation66_spill] sm:$0xff] %v9465_v31  ;;  %v7613_v43 = vpop.eup %7612  ;;  %7638 = vpow2.f32 %v6367_v55  ;;  %v6366_v27 = vmul.f32 -1.442695, %v9457_v30  ;;  %v9470_v9 = vadd.f32 %v7067_v6, %v8989_v26  ;;  %4541 = vperm.xlu0 %7504, %v4399_v25  }
 0x11e   :  { %v7615_v13 = vpop.eup %7614  ;;  %7640 = vrcp.f32 %v884_v32  ;;  %v883_v46 = vadd.f32 1.0, %v7613_v43  ;;  %v598_v37 = vpop.f32.mrf.mxu0  ;;  %7130 = vmatprep.mubr.msk.f32.mxu1 %vm173_vm0, %v1043_v0 }
 0x11f   :  { %v7617_v31 = vpop.eup %7616  ;;  %7642 = vpow2.f32 %v6366_v27  ;;  %v6369_v55 = vmul.f32 -1.442695, %v9470_v9  ;;  %v9479_v39 = vadd.f32 %v8989_v26, %v598_v37  ;;  %v9482_v49 = vpop.permute.xlu1 %3212  ;;  %7131 = vmatmul.mubr.msk.f32.gmra.mxu1 %vm173_vm0, %v1044_v8 }
 0x120   :  { %12353 = vst [vmem:[#allocation67_spill] sm:$0xff] %v9482_v49  ;;  %v7619_v56 = vpop.eup %7618  ;;  %7644 = vrcp.f32 %v883_v46  ;;  %v886_v32 = vadd.f32 1.0, %v7617_v31  ;;  %v9487_v6 = vpop.permute.xlu0 %3207  ;;  %v1046_v49 = vmul.f32 %v7615_v13, %v9295_v36  ;;  %v4401_v36 = vld [vmem:[%s12260_s2 + $0xb0] sm:$0xff] }
 0x121   :  { %12354 = vst [vmem:[#allocation68_spill] sm:$0xff] %v9487_v6  ;;  %v7070_v7 = vpop.f32.mrf.mxu0  ;;  %v7621_v53 = vpop.eup %7620  ;;  %v1045_v43 = vmul.f32 %v7619_v56, %v9306_v21  ;;  %7646 = vpow2.f32 %v6369_v55  ;;  %v6368_v27 = vmul.f32 -1.442695, %v9479_v39  ;;  %v4402_v21 = vld [vmem:[%s12260_s2 + $0xb8] sm:$0xff]  ;;  %4551 = vperm.xlu0 %7504, %v4401_v36  }
 0x122   :  { %v9492_v0 = vadd.f32 %v7070_v7, %v8989_v26  ;;  %v7623_v37 = vpop.eup %7622  ;;  %7648 = vrcp.f32 %v886_v32  ;;  %v885_v46 = vadd.f32 1.0, %v7621_v53  ;;  %4556 = vperm.xlu1 %7505, %v4402_v21  }
 0x123   :  { %v608_v31 = vpop.f32.mrf.mxu0  ;;  %v7625_v55 = vpop.eup %7624  ;;  %v888_v56 = vadd.f32 1.0, %v7623_v37  ;;  %7650 = vpow2.f32 %v6368_v27  ;;  %7133 = vmatprep.mubr.msk.f32.mxu1 %vm173_vm0, %v1045_v43 }
 0x124   :  { %v6371_v7 = vmul.f32 -1.442695, %v9492_v0  ;;  %v9501_v6 = vadd.f32 %v8989_v26, %v608_v31  ;;  %v9504_v63 = vpop.permute.xlu1 %3222  ;;  %v7627_v13 = vpop.eup %7626  ;;  %7652 = vrcp.f32 %v885_v46  ;;  %v9515_v26 = vld [vmem:[%s12265_s7] ss:$0 sm:$0xff]  ;;  %7134 = vmatmul.mubr.msk.f32.gmra.mxu1 %vm173_vm0, %v1046_v49  ;;  %v1048_v46 = vmul.f32 %v7625_v55, %v9317_v50 }
 0x125   :  { %12355 = vst [vmem:[#allocation69_spill] sm:$0xff] %v9504_v63  ;;  %v9509_v8 = vpop.permute.xlu0 %3217  ;;  %v7073_v25 = vpop.f32.mrf.mxu0  ;;  %7654 = vrcp.f32 %v888_v56  ;;  %v887_v53 = vadd.f32 1.0, %v7627_v13  ;;  %v4404_v13 = vld [vmem:[%s12260_s2 + $0xc8] sm:$0xff]  ;;  %v4403_v50 = vld [vmem:[%s12260_s2 + $0xc0] sm:$0xff] }
 0x126   :  { %12356 = vst [vmem:[#allocation70_spill] sm:$0xff] %v9509_v8  ;;  %v7629_v32 = vpop.eup %7628  ;;  %v6370_v27 = vmul.f32 -1.442695, %v9501_v6  ;;  %v9518_v43 = vadd.f32 %v9515_v26, %v7073_v25  ;;  %7656 = vpow2.f32 %v6371_v7  ;;  %4566 = vperm.xlu1 %7505, %v4404_v13   ;;  %4561 = vperm.xlu0 %7504, %v4403_v50  }
 0x127   :  { %v7631_v37 = vpop.eup %7630  ;;  %v1047_v31 = vmul.f32 %v7629_v32, %v9328_v3  ;;  %v618_v56 = vpop.f32.mrf.mxu0  ;;  %7658 = vrcp.f32 %v887_v53 }
 0x128   :  { %v7633_v8 = vpop.eup %7632  ;;  %v890_v63 = vadd.f32 1.0, %v7631_v37  ;;  %v6373_v25 = vmul.f32 -1.442695, %v9518_v43  ;;  %v9528_v49 = vadd.f32 %v9515_v26, %v618_v56  ;;  %v9530_v21 = vpop.permute.xlu1 %3232  ;;  %7660 = vpow2.f32 %v6370_v27 }
 0x129   :  { %12357 = vst [vmem:[#allocation71_spill] sm:$0xff] %v9530_v21  ;;  %v7635_v3 = vpop.eup %7634  ;;  %7136 = vmatprep.mubr.msk.f32.mxu1 %vm173_vm0, %v1047_v31  ;;  %v9536_v55 = vpop.permute.xlu0 %3227  ;;  %v1050_v47 = vmul.f32 %v7633_v8, %v9338_v58  ;;  %v4405_v58 = vld [vmem:[%s12260_s2 + $0xd0] sm:$0xff] }
 0x12a   :  { %12358 = vst [vmem:[#allocation72_spill] sm:$0xff] %v9536_v55  ;;  %v7076_v7 = vpop.f32.mrf.mxu0  ;;  %v7637_v36 = vpop.eup %7636  ;;  %7662 = vrcp.f32 %v890_v63  ;;  %v889_v32 = vadd.f32 1.0, %v7635_v3  ;;  %v6372_v53 = vmul.f32 -1.442695, %v9528_v49  ;;  %7137 = vmatmul.mubr.msk.f32.gmra.mxu1 %vm173_vm0, %v1048_v46  ;;  %v4406_v63 = vld [vmem:[%s12260_s2 + $0xd8] sm:$0xff]  ;;  %4571 = vperm.xlu0 %7504, %v4405_v58  }
 0x12b   :  { %v9540_v37 = vadd.f32 %v9515_v26, %v7076_v7  ;;  %v7639_v56 = vpop.eup %7638  ;;  %v1049_v27 = vmul.f32 %v7637_v36, %v9347_v15  ;;  %7664 = vpow2.f32 %v6373_v25  ;;  %4576 = vperm.xlu1 %7505, %v4406_v63  }
 0x12c   :  { %v628_v31 = vpop.f32.mrf.mxu0  ;;  %v7641_v3 = vpop.eup %7640  ;;  %7666 = vrcp.f32 %v889_v32  ;;  %v892_v41 = vadd.f32 1.0, %v7639_v56 }
 0x12d   :  { %v6375_v7 = vmul.f32 -1.442695, %v9540_v37  ;;  %v9550_v46 = vadd.f32 %v9515_v26, %v628_v31  ;;  %v9552_v13 = vpop.permute.xlu1 %3242  ;;  %v7643_v15 = vpop.eup %7642  ;;  %7668 = vpow2.f32 %v6372_v53  ;;  %7139 = vmatprep.mubr.msk.f32.mxu1 %vm173_vm0, %v1049_v27  ;;  %v1052_v34 = vmul.f32 %v7641_v3, %v9359_v51  ;;  %v4407_v51 = vld [vmem:[%s12260_s2 + $0xe0] sm:$0xff] }
 0x12e   :  { %12359 = vst [vmem:[#allocation73_spill] sm:$0xff] %v9552_v13  ;;  %v9558_v8 = vpop.permute.xlu0 %3237  ;;  %v7079_v25 = vpop.f32.mrf.mxu0  ;;  %7670 = vrcp.f32 %v892_v41  ;;  %v891_v36 = vadd.f32 1.0, %v7643_v15  ;;  %7140 = vmatmul.mubr.msk.f32.gmra.mxu1 %vm173_vm0, %v1050_v47  ;;  %v4408_v41 = vld [vmem:[%s12260_s2 + $0xe8] sm:$0xff]  ;;  %4581 = vperm.xlu0 %7504, %v4407_v51  }
 0x12f   :  { %12360 = vst [vmem:[#allocation74_spill] sm:$0xff] %v9558_v8  ;;  %v7645_v50 = vpop.eup %7644  ;;  %v6374_v32 = vmul.f32 -1.442695, %v9550_v46  ;;  %v9562_v56 = vadd.f32 %v9515_v26, %v7079_v25  ;;  %7672 = vpow2.f32 %v6375_v7  ;;  %4586 = vperm.xlu1 %7505, %v4408_v41  }
 0x130   :  { %v7647_v31 = vpop.eup %7646  ;;  %v1051_v53 = vmul.f32 %v7645_v50, %v9369_v14  ;;  %v638_v27 = vpop.f32.mrf.mxu0  ;;  %7674 = vrcp.f32 %v891_v36 }
 0x131   :  { %v7649_v15 = vpop.eup %7648  ;;  %v894_v55 = vadd.f32 1.0, %v7647_v31  ;;  %v6377_v25 = vmul.f32 -1.442695, %v9562_v56  ;;  %v9572_v47 = vadd.f32 %v9515_v26, %v638_v27  ;;  %v9574_v63 = vpop.permute.xlu1 %3252  ;;  %7676 = vpow2.f32 %v6374_v32 }
 0x132   :  { %12361 = vst [vmem:[#allocation75_spill] sm:$0xff] %v9574_v63  ;;  %v7651_v14 = vpop.eup %7650  ;;  %7142 = vmatprep.mubr.msk.f32.mxu1 %vm173_vm0, %v1051_v53  ;;  %v9580_v3 = vpop.permute.xlu0 %3247  ;;  %v4410_v53 = vld [vmem:[%s12260_s2 + $0xf8] sm:$0xff] }
 0x133   :  { %12362 = vst [vmem:[#allocation76_spill] sm:$0xff] %v9580_v3  ;;  %v7082_v7 = vpop.f32.mrf.mxu0  ;;  %v7653_v58 = vpop.eup %7652  ;;  %7678 = vrcp.f32 %v894_v55  ;;  %v893_v50 = vadd.f32 1.0, %v7651_v14  ;;  %v6376_v36 = vmul.f32 -1.442695, %v9572_v47  ;;  %7143 = vmatmul.mubr.msk.f32.gmra.mxu1 %vm173_vm0, %v1052_v34  ;;  %v1054_v14 = vmul.f32 %v7649_v15, %v9381_v1  ;;  %4596 = vperm.xlu1 %7505, %v4410_v53  }
 0x134   :  { %v9584_v31 = vadd.f32 %v9515_v26, %v7082_v7  ;;  %v7655_v27 = vpop.eup %7654  ;;  %v1053_v35 = vmul.f32 %v7653_v58, %v9391_v42  ;;  %7680 = vpow2.f32 %v6377_v25  ;;  %v9601_v42 = vld [vmem:[%s12260_s2 + $0xf0] sm:$0xff] }
 0x135   :  { %v648_v32 = vpop.f32.mrf.mxu0  ;;  %v7657_v55 = vpop.eup %7656  ;;  %7682 = vrcp.f32 %v893_v50  ;;  %4591 = vperm.xlu0 %7504, %v9601_v42  }
 0x136   :  { %v6379_v7 = vmul.f32 -1.442695, %v9584_v31  ;;  %v9594_v28 = vadd.f32 %v9515_v26, %v648_v32  ;;  %v9596_v34 = vpop.permute.xlu1 %3262  ;;  %v7659_v41 = vpop.eup %7658  ;;  %v896_v25 = vadd.f32 1.0, %v7657_v55  ;;  %7684 = vpow2.f32 %v6376_v36  ;;  %7145 = vmatprep.mubr.msk.f32.mxu1 %vm173_vm0, %v1053_v35  ;;  %v4412_v55 = vld [vmem:[%s12260_s2 + $0x108] sm:$0xff] }
 0x137   :  { %12363 = vst [vmem:[#allocation77_spill] sm:$0xff] %v9596_v34  ;;  %v9604_v51 = vpop.permute.xlu0 %3257  ;;  %v7085_v1 = vpop.f32.mrf.mxu0  ;;  %v1055_v58 = vmul.f32 %v7659_v41, %v9413_v40  ;;  %7146 = vmatmul.mubr.msk.f32.gmra.mxu1 %vm173_vm0, %v1054_v14  ;;  %v9627_v14 = vld [vmem:[%s12260_s2 + $0x100] sm:$0xff]  ;;  %4606 = vperm.xlu1 %7505, %v4412_v55  }
 0x138   :  { %12364 = vst [vmem:[#allocation78_spill] sm:$0xff] %v9604_v51  ;;  %v7661_v15 = vpop.eup %7660  ;;  %7686 = vpow2.f32 %v6379_v7  ;;  %v6378_v50 = vmul.f32 -1.442695, %v9594_v28  ;;  %v9609_v32 = vadd.f32 %v9515_v26, %v7085_v1  ;;  %v1056_v7 = vmul.f32 %v7655_v27, %v9403_v24 }
 0x139   :  { %v7663_v34 = vpop.eup %7662  ;;  %7688 = vrcp.f32 %v896_v25  ;;  %v895_v36 = vadd.f32 1.0, %v7661_v15  ;;  %v658_v35 = vpop.f32.mrf.mxu0  ;;  %7148 = vmatprep.mubr.msk.f32.mxu1 %vm173_vm0, %v1055_v58  ;;  %4601 = vperm.xlu0 %7504, %v9627_v14  }
 0x13a   :  { %v7665_v40 = vpop.eup %7664  ;;  %7690 = vpow2.f32 %v6378_v50  ;;  %v6381_v41 = vmul.f32 -1.442695, %v9609_v32  ;;  %v9619_v1 = vadd.f32 %v9515_v26, %v658_v35  ;;  %v9622_v53 = vpop.permute.xlu1 %3272 }
 0x13b   :  { %12365 = vst [vmem:[#allocation79_spill] sm:$0xff] %v9622_v53  ;;  %v7667_v25 = vpop.eup %7666  ;;  %7692 = vrcp.f32 %v895_v36  ;;  %v898_v15 = vadd.f32 1.0, %v7665_v40  ;;  %v9629_v51 = vpop.permute.xlu0 %3267  ;;  %7149 = vmatmul.mubr.msk.f32.gmra.mxu1 %vm173_vm0, %v1056_v7  ;;  %v9641_v40 = vld [vmem:[%s12260_s2 + $0x118] sm:$0xff] }
 0x13c   :  { %12366 = vst [vmem:[#allocation80_spill] sm:$0xff] %v9629_v51  ;;  %v7088_v24 = vpop.f32.mrf.mxu0  ;;  %v7669_v27 = vpop.eup %7668  ;;  %v1057_v50 = vmul.f32 %v7667_v25, %v9435_v52  ;;  %7694 = vpow2.f32 %v6381_v41  ;;  %v6380_v35 = vmul.f32 -1.442695, %v9619_v1  ;;  %v1058_v41 = vmul.f32 %v7663_v34, %v9426_v33  ;;  %4616 = vperm.xlu1 %7505, %v9641_v40  }
 0x13d   :  { %v9634_v58 = vadd.f32 %v9515_v26, %v7088_v24  ;;  %v7671_v53 = vpop.eup %7670  ;;  %7696 = vrcp.f32 %v898_v15  ;;  %v897_v21 = vadd.f32 1.0, %v7669_v27  ;;  %v9654_v15 = vld [vmem:[%s12260_s2 + $0x110] sm:$0xff] }
 0x13e   :  { %v668_v36 = vpop.f32.mrf.mxu0  ;;  %v7673_v52 = vpop.eup %7672  ;;  %7698 = vpow2.f32 %v6380_v35  ;;  %7151 = vmatprep.mubr.msk.f32.mxu1 %vm173_vm0, %v1057_v50  ;;  %4611 = vperm.xlu0 %7504, %v9654_v15  }
 0x13f   :  { %v6383_v25 = vmul.f32 -1.442695, %v9634_v58  ;;  %v9646_v7 = vadd.f32 %v9515_v26, %v668_v36  ;;  %v9649_v55 = vpop.permute.xlu1 %3282  ;;  %v7675_v24 = vpop.eup %7674  ;;  %7700 = vrcp.f32 %v897_v21  ;;  %v900_v27 = vadd.f32 1.0, %v7673_v52  ;;  %7152 = vmatmul.mubr.msk.f32.gmra.mxu1 %vm173_vm0, %v1058_v41 }
 0x140   :  { %12367 = vst [vmem:[#allocation81_spill] sm:$0xff] %v9649_v55  ;;  %v9656_v51 = vpop.permute.xlu0 %3277  ;;  %v7091_v33 = vpop.f32.mrf.mxu0  ;;  %v1059_v35 = vmul.f32 %v7675_v24, %v9457_v30  ;;  %v9669_v30 = vld [vmem:[%s12260_s2 + $0x128] sm:$0xff]  ;;  %v1060_v24 = vmul.f32 %v7671_v53, %v9448_v59 }
 0x141   :  { %12368 = vst [vmem:[#allocation82_spill] sm:$0xff] %v9656_v51  ;;  %v7677_v34 = vpop.eup %7676  ;;  %7702 = vpow2.f32 %v6383_v25  ;;  %v6382_v36 = vmul.f32 -1.442695, %v9646_v7  ;;  %v9661_v50 = vadd.f32 %v9515_v26, %v7091_v33  ;;  %4626 = vperm.xlu1 %7505, %v9669_v30  }
 0x142   :  { %v7679_v55 = vpop.eup %7678  ;;  %7704 = vrcp.f32 %v900_v27  ;;  %v899_v21 = vadd.f32 1.0, %v7677_v34  ;;  %v678_v52 = vpop.f32.mrf.mxu0  ;;  %7154 = vmatprep.mubr.msk.f32.mxu1 %vm173_vm0, %v1059_v35  ;;  %v9682_v34 = vld [vmem:[%s12260_s2 + $0x120] sm:$0xff] }
 0x143   :  { %v7681_v25 = vpop.eup %7680  ;;  %7706 = vpow2.f32 %v6382_v36  ;;  %v6385_v33 = vmul.f32 -1.442695, %v9661_v50  ;;  %v9674_v41 = vadd.f32 %v9515_v26, %v678_v52  ;;  %v9677_v27 = vpop.permute.xlu1 %3292  ;;  %7155 = vmatmul.mubr.msk.f32.gmra.mxu1 %vm173_vm0, %v1060_v24  ;;  %4621 = vperm.xlu0 %7504, %v9682_v34  }
 0x144   :  { %12369 = vst [vmem:[#allocation83_spill] sm:$0xff] %v9677_v27  ;;  %v7683_v51 = vpop.eup %7682  ;;  %7708 = vrcp.f32 %v899_v21  ;;  %v902_v29 = vadd.f32 1.0, %v7681_v25  ;;  %v9684_v22 = vpop.permute.xlu0 %3287  ;;  %v9698_v25 = vld [vmem:[%s12260_s2 + $0x138] sm:$0xff] }
 0x145   :  { %12370 = vst [vmem:[#allocation84_spill] sm:$0xff] %v9684_v22  ;;  %v9686_v59 = vpop.f32.mrf.mxu0  ;;  %v7685_v53 = vpop.eup %7684  ;;  %v1061_v26 = vmul.f32 %v7683_v51, %v9479_v39  ;;  %7710 = vpow2.f32 %v6385_v33  ;;  %v6384_v35 = vmul.f32 -1.442695, %v9674_v41  ;;  %v1062_v51 = vmul.f32 %v7679_v55, %v9470_v9  ;;  %4636 = vperm.xlu1 %7505, %v9698_v25  }
 0x146   :  { %v7687_v36 = vpop.eup %7686  ;;  %7712 = vrcp.f32 %v902_v29  ;;  %v901_v52 = vadd.f32 1.0, %v7685_v53  ;;  %v9707_v29 = vld [vmem:[%s12260_s2 + $0x130] sm:$0xff] }
 0x147   :  { %v9693_v21 = vpop.f32.mrf.mxu0  ;;  %v7689_v39 = vpop.eup %7688  ;;  %v904_v33 = vadd.f32 1.0, %v7687_v36  ;;  %7714 = vpow2.f32 %v6384_v35  ;;  %7157 = vmatprep.mubr.msk.f32.mxu1 %vm173_vm0, %v1061_v26  ;;  %4631 = vperm.xlu0 %7504, %v9707_v29   ;;  %v9722_v35 = vld [vmem:[%s12260_s2 + $0x148] sm:$0xff] }
 0x148   :  { %v9702_v24 = vpop.permute.xlu1 %3302  ;;  %v7691_v53 = vpop.eup %7690  ;;  %7716 = vrcp.f32 %v901_v52  ;;  %7158 = vmatmul.mubr.msk.f32.gmra.mxu1 %vm173_vm0, %v1062_v51  ;;  %12373 = vst [vmem:[#allocation87_spill] sm:$0xff] %v9722_v35  ;;  %v1064_v52 = vmul.f32 %v7689_v39, %v9492_v0 }
 0x149   :  { %12371 = vst [vmem:[#allocation85_spill] sm:$0xff] %v9702_v24  ;;  %v9709_v22 = vpop.permute.xlu0 %3297  ;;  %v9711_v27 = vpop.f32.mrf.mxu0  ;;  %v903_v8 = vadd.f32 1.0, %v7691_v53  ;;  %7718 = vrcp.f32 %v904_v33  ;;  %4646 = vperm.xlu1 %7505, %v9722_v35  }
 0x14a   :  { %12372 = vst [vmem:[#allocation86_spill] sm:$0xff] %v9709_v22  ;;  %v7693_v23 = vpop.eup %7692 }
 0x14b   :  { %v7695_v9 = vpop.eup %7694  ;;  %v1063_v55 = vmul.f32 %v7693_v23, %v9501_v6  ;;  %v9717_v26 = vpop.f32.mrf.mxu0  ;;  %7720 = vrcp.f32 %v903_v8  ;;  %v9730_v23 = vld [vmem:[%s12260_s2 + $0x140] sm:$0xff] }
 0x14c   :  { %v7697_v36 = vpop.eup %7696  ;;  %v906_v51 = vadd.f32 1.0, %v7695_v9  ;;  %v9725_v53 = vpop.permute.xlu1 %3312  ;;  %12375 = vst [vmem:[#allocation89_spill] sm:$0xff] %v9730_v23  ;;  %4641 = vperm.xlu0 %7504, %v9730_v23   ;;  %v9746_v9 = vld [vmem:[%s12260_s2 + $0x158] sm:$0xff] }
 0x14d   :  { %12374 = vst [vmem:[#allocation88_spill] sm:$0xff] %v9725_v53  ;;  %v7699_v6 = vpop.eup %7698  ;;  %7160 = vmatprep.mubr.msk.f32.mxu1 %vm173_vm0, %v1063_v55  ;;  %v9733_v33 = vpop.permute.xlu0 %3307  ;;  %12377 = vst [vmem:[#allocation91_spill] sm:$0xff] %v9746_v9  ;;  %4656 = vperm.xlu1 %7505, %v9746_v9  }
 0x14e   :  { %12376 = vst [vmem:[#allocation90_spill] sm:$0xff] %v9733_v33  ;;  %v9735_v22 = vpop.f32.mrf.mxu0  ;;  %v7701_v24 = vpop.eup %7700  ;;  %v905_v16 = vadd.f32 1.0, %v7699_v6  ;;  %7161 = vmatmul.mubr.msk.f32.gmra.mxu1 %vm173_vm0, %v1064_v52  ;;  %7722 = vrcp.f32 %v906_v51  ;;  %v1066_v6 = vmul.f32 %v7697_v36, %v9518_v43 }
 0x14f   :  { %v7703_v0 = vpop.eup %7702  ;;  %v1065_v8 = vmul.f32 %v7701_v24, %v9528_v49  ;;  %v9754_v49 = vld [vmem:[%s12260_s2 + $0x150] sm:$0xff] }
 0x150   :  { %v9741_v39 = vpop.f32.mrf.mxu0  ;;  %v7705_v55 = vpop.eup %7704  ;;  %7724 = vrcp.f32 %v905_v16  ;;  %v908_v52 = vadd.f32 1.0, %v7703_v0  ;;  %12379 = vst [vmem:[#allocation93_spill] sm:$0xff] %v9754_v49  ;;  %4651 = vperm.xlu0 %7504, %v9754_v49   ;;  %v9770_v0 = vld [vmem:[%s12260_s2 + $0x168] sm:$0xff] }
 0x151   :  { %v9749_v33 = vpop.permute.xlu1 %3322  ;;  %v7707_v24 = vpop.eup %7706  ;;  %7163 = vmatprep.mubr.msk.f32.mxu1 %vm173_vm0, %v1065_v8  ;;  %12381 = vst [vmem:[#allocation95_spill] sm:$0xff] %v9770_v0  ;;  %4666 = vperm.xlu1 %7505, %v9770_v0  }
 0x152   :  { %12378 = vst [vmem:[#allocation92_spill] sm:$0xff] %v9749_v33  ;;  %v9757_v51 = vpop.permute.xlu0 %3317  ;;  %v9759_v53 = vpop.f32.mrf.mxu0  ;;  %v907_v13 = vadd.f32 1.0, %v7707_v24  ;;  %7164 = vmatmul.mubr.msk.f32.gmra.mxu1 %vm173_vm0, %v1066_v6  ;;  %7726 = vrcp.f32 %v908_v52  ;;  %v1068_v24 = vmul.f32 %v7705_v55, %v9540_v37  ;;  %v9794_v55 = vld [vmem:[%s12260_s2 + $0x178] sm:$0xff] }
 0x153   :  { %12380 = vst [vmem:[#allocation94_spill] sm:$0xff] %v9757_v51  ;;  %v7709_v10 = vpop.eup %7708  ;;  %12385 = vst [vmem:[#allocation99_spill] sm:$0xff] %v9794_v55 }
 0x154   :  { %v7711_v16 = vpop.eup %7710  ;;  %v1067_v43 = vmul.f32 %v7709_v10, %v9550_v46  ;;  %v9765_v36 = vpop.f32.mrf.mxu0  ;;  %7728 = vrcp.f32 %v907_v13  ;;  %v9778_v10 = vld [vmem:[%s12260_s2 + $0x160] sm:$0xff] }
 0x155   :  { %v7713_v8 = vpop.eup %7712  ;;  %v910_v6 = vadd.f32 1.0, %v7711_v16  ;;  %v9773_v51 = vpop.permute.xlu1 %3332  ;;  %12383 = vst [vmem:[#allocation97_spill] sm:$0xff] %v9778_v10  ;;  %4661 = vperm.xlu0 %7504, %v9778_v10   ;;  %4676 = vperm.xlu1 %7505, %v9794_v55  }
 0x156   :  { %12382 = vst [vmem:[#allocation96_spill] sm:$0xff] %v9773_v51  ;;  %v7715_v46 = vpop.eup %7714  ;;  %7166 = vmatprep.mubr.msk.f32.mxu1 %vm173_vm0, %v1067_v43  ;;  %v9781_v52 = vpop.permute.xlu0 %3327  ;;  %v1070_v43 = vmul.f32 %v7713_v8, %v9562_v56  ;;  %v4428_v56 = vld [vmem:[%s12260_s2 + $0x188] sm:$0xff] }
 0x157   :  { %12384 = vst [vmem:[#allocation98_spill] sm:$0xff] %v9781_v52  ;;  %v9783_v33 = vpop.f32.mrf.mxu0  ;;  %v7717_v3 = vpop.eup %7716  ;;  %v909_v17 = vadd.f32 1.0, %v7715_v46  ;;  %7167 = vmatmul.mubr.msk.f32.gmra.mxu1 %vm173_vm0, %v1068_v24  ;;  %7730 = vrcp.f32 %v910_v6 }
 0x158   :  { %v1069_v37 = vmul.f32 %v7717_v3, %v9572_v47  ;;  %v7719_v16 = vpop.eup %7718  ;;  %v9802_v47 = vld [vmem:[%s12260_s2 + $0x170] sm:$0xff] }
 0x159   :  { %v9789_v13 = vpop.f32.mrf.mxu0  ;;  %7732 = vrcp.f32 %v909_v17  ;;  %v9797_v46 = vpop.permute.xlu1 %3342  ;;  %12387 = vst [vmem:[#allocation101_spill] sm:$0xff] %v9802_v47  ;;  %4671 = vperm.xlu0 %7504, %v9802_v47   ;;  %4686 = vperm.xlu1 %7505, %v4428_v56  }
 0x15a   :  { %12386 = vst [vmem:[#allocation100_spill] sm:$0xff] %v9797_v46  ;;  %v7721_v3 = vpop.eup %7720  ;;  %7169 = vmatprep.mubr.msk.f32.mxu1 %vm173_vm0, %v1069_v37  ;;  %v9805_v24 = vpop.permute.xlu0 %3337  ;;  %v1072_v46 = vmul.f32 %v7719_v16, %v9584_v31  ;;  %v4430_v16 = vld [vmem:[%s12260_s2 + $0x198] sm:$0xff] }
 0x15b   :  { %12388 = vst [vmem:[#allocation102_spill] sm:$0xff] %v9805_v24  ;;  %v7209_v6 = vpop.f32.mrf.mxu0  ;;  %v1071_v52 = vmul.f32 %v7721_v3, %v9594_v28  ;;  %7170 = vmatmul.mubr.msk.f32.gmra.mxu1 %vm173_vm0, %v1070_v43  ;;  %v7723_v8 = vpop.eup %7722  ;;  %v4427_v28 = vld [vmem:[%s12260_s2 + $0x180] sm:$0xff] }
 0x15c   :  { %v9824_v3 = vld [vmem:[%s12269_s11] ss:$0 sm:$0xff]  ;;  %v1074_v51 = vmul.f32 %v7723_v8, %v9609_v32 }
 0x15d   :  { %v1922_v17 = vpop.f32.mrf.mxu0  ;;  %7172 = vmatprep.mubr.msk.f32.mxu1 %vm173_vm0, %v1071_v52  ;;  %v9816_v37 = vpop.permute.xlu1 %3352  ;;  %4681 = vperm.xlu0 %7504, %v4427_v28  }
 0x15e   :  { %12389 = vst [vmem:[#allocation103_spill] sm:$0xff] %v9816_v37  ;;  %v7725_v43 = vpop.eup %7724  ;;  %v9826_v24 = vpop.permute.xlu0 %3347  ;;  %4696 = vperm.xlu1 %7505, %v4430_v16   ;;  %v4431_v16 = vld [vmem:[%s12260_s2 + $0x1a0] sm:$0xff] }
 0x15f   :  { %12390 = vst [vmem:[#allocation104_spill] sm:$0xff] %v9826_v24  ;;  %v7212_v11 = vpop.f32.mrf.mxu0  ;;  %v1073_v55 = vmul.f32 %v7725_v43, %v9619_v1  ;;  %7173 = vmatmul.mubr.msk.f32.gmra.mxu1 %vm173_vm0, %v1072_v46  ;;  %v7727_v37 = vpop.eup %7726 }
 0x160   :  { %v9831_v31 = vadd.f32 %v7212_v11, %v9824_v3  ;;  %v4429_v11 = vld [vmem:[%s12260_s2 + $0x190] sm:$0xff] }
 0x161   :  { %v1932_v52 = vpop.f32.mrf.mxu0  ;;  %7175 = vmatprep.mubr.msk.f32.mxu1 %vm173_vm0, %v1073_v55  ;;  %v9842_v1 = vpop.permute.xlu1 %3362  ;;  %4691 = vperm.xlu0 %7504, %v4429_v11  }
 0x162   :  { %v6521_v24 = vmul.f32 -1.442695, %v9831_v31  ;;  %v9839_v47 = vadd.f32 %v9824_v3, %v1932_v52  ;;  %12391 = vst [vmem:[#allocation105_spill] sm:$0xff] %v9842_v1  ;;  %v7729_v46 = vpop.eup %7728  ;;  %v9847_v56 = vpop.permute.xlu0 %3357  ;;  %v4432_v52 = vld [vmem:[%s12260_s2 + $0x1a8] sm:$0xff] }
 0x163   :  { %12392 = vst [vmem:[#allocation106_spill] sm:$0xff] %v9847_v56  ;;  %v7215_v28 = vpop.f32.mrf.mxu0  ;;  %v1075_v43 = vmul.f32 %v7729_v46, %v9646_v7  ;;  %7176 = vmatmul.mubr.msk.f32.gmra.mxu1 %vm173_vm0, %v1074_v51  ;;  %v1076_v56 = vmul.f32 %v7727_v37, %v9634_v58  ;;  %v9860_v7 = vadd.f32 %v7209_v6, %v9824_v3 }
 0x164   :  { %v9852_v32 = vadd.f32 %v7215_v28, %v9824_v3  ;;  %7734 = vpow2.f32 %v6521_v24  ;;  %v6520_v55 = vmul.f32 -1.442695, %v9839_v47  ;;  %v7731_v1 = vpop.eup %7730  ;;  %4706 = vperm.xlu1 %7505, %v4432_v52  }
 0x165   :  { %v1942_v8 = vpop.f32.mrf.mxu0  ;;  %7178 = vmatprep.mubr.msk.f32.mxu1 %vm173_vm0, %v1075_v43  ;;  %v9867_v24 = vpop.permute.xlu1 %3372  ;;  %4701 = vperm.xlu0 %7504, %v4431_v16  }
 0x166   :  { %v6523_v51 = vmul.f32 -1.442695, %v9852_v32  ;;  %v9864_v46 = vadd.f32 %v9824_v3, %v1942_v8  ;;  %12393 = vst [vmem:[#allocation107_spill] sm:$0xff] %v9867_v24  ;;  %v7733_v11 = vpop.eup %7732  ;;  %v9872_v28 = vpop.permute.xlu0 %3367  ;;  %v4434_v8 = vld [vmem:[%s12260_s2 + $0x1b8] sm:$0xff]  ;;  %v6519_v24 = vmul.f32 -1.442695, %v9860_v7 }
 0x167   :  { %12394 = vst [vmem:[#allocation108_spill] sm:$0xff] %v9872_v28  ;;  %v9874_v58 = vpop.f32.mrf.mxu0  ;;  %v1077_v6 = vmul.f32 %v7733_v11, %v9674_v41  ;;  %7179 = vmatmul.mubr.msk.f32.gmra.mxu1 %vm173_vm0, %v1076_v56  ;;  %v1078_v28 = vmul.f32 %v7731_v1, %v9661_v50  ;;  %v9887_v41 = vadd.f32 %v9824_v3, %v1922_v17 }
 0x168   :  { %12395 = vst [vmem:[#allocation109_spill] sm:$0xff] %v9874_v58  ;;  %7736 = vpow2.f32 %v6523_v51  ;;  %v6522_v37 = vmul.f32 -1.442695, %v9864_v46  ;;  %4716 = vperm.xlu1 %7505, %v4434_v8   ;;  %v9904_v17 = vadd.f32 %v9783_v33, %v9824_v3  ;;  %v9911_v11 = vadd.f32 %v9824_v3, %v9789_v13  ;;  %v7991_v33 = vld [vmem:[%s12260_s2 + $0x8] sm:$0xff]  ;;  %v7992_v13 = vld [vmem:[%s12260_s2] sm:$0xff] }
 0x169   :  { %7738 = vpow2.f32 %v6520_v55  ;;  %v9879_v43 = vpop.f32.mrf.mxu0  ;;  %7181 = vmatprep.mubr.msk.f32.mxu1 %vm173_vm0, %v1077_v6  ;;  %v9890_v56 = vpop.permute.xlu1 %3382  ;;  %v4433_v55 = vld [vmem:[%s12260_s2 + $0x1b0] sm:$0xff]  ;;  %v6518_v1 = vmul.f32 -1.442695, %v9887_v41 }
 0x16a   :  { %12396 = vst [vmem:[#allocation110_spill] sm:$0xff] %v9879_v43  ;;  %7740 = vpow2.f32 %v6522_v37  ;;  %12397 = vst [vmem:[#allocation111_spill] sm:$0xff] %v9890_v56  ;;  %v9895_v52 = vpop.permute.xlu0 %3377  ;;  %4711 = vperm.xlu0 %7504, %v4433_v55   ;;  %v8112_v37 = vmov 1   ;;  %v6517_v55 = vmul.f32 -1.442695, %v9904_v17 }
 0x16b   :  { %12398 = vst [vmem:[#allocation112_spill] sm:$0xff] %v9895_v52  ;;  %v9897_v51 = vpop.f32.mrf.mxu0  ;;  %7182 = vmatmul.mubr.msk.f32.gmra.mxu1 %vm173_vm0, %v1078_v28  ;;  %7742 = vpow2.f32 %v6519_v24 }
 0x16c   :  { %12399 = vst [vmem:[#allocation113_spill] sm:$0xff] %v9897_v51  ;;  %7507 = vset.pattern.permute.xlu1 %v8112_v37  ;;  %7744 = vpow2.f32 %v6518_v1  ;;  %v7993_v1 = vld [vmem:[%s12260_s2 + $0x10] sm:$0xff] }
 0x16d   :  { %v9900_v50 = vpop.f32.mrf.mxu0  ;;  %v9907_v16 = vpop.permute.xlu1 %3392  ;;  %4852 = vperm.xlu1 %7507, %v7991_v33   ;;  %7746 = vpow2.f32 %v6517_v55  ;;  %v9954_v55 = vadd.f32 %v9824_v3, %v9765_v36 }
 0x16e   :  { %12400 = vst [vmem:[#allocation114_spill] sm:$0xff] %v9900_v50  ;;  %12401 = vst [vmem:[#allocation115_spill] sm:$0xff] %v9907_v16  ;;  %v9913_v6 = vpop.permute.xlu0 %3387  ;;  %7506 = vset.pattern.permute.xlu0 %v8112_v37  ;;  %v6516_v37 = vmul.f32 -1.442695, %v9911_v11  ;;  %v9935_v16 = vadd.f32 %v9759_v53, %v9824_v3 }
 0x16f   :  { %12402 = vst [vmem:[#allocation116_spill] sm:$0xff] %v9913_v6  ;;  %v9915_v28 = vpop.f32.mrf.mxu0  ;;  %4848 = vperm.xlu0 %7506, %v7992_v13  }
 0x170   :  { %12403 = vst [vmem:[#allocation117_spill] sm:$0xff] %v9915_v28  ;;  %7748 = vpow2.f32 %v6516_v37  ;;  %v6515_v0 = vmul.f32 -1.442695, %v9935_v16 }
 0x171   :  { %v9920_v24 = vpop.f32.mrf.mxu0  ;;  %v7735_v8 = vpop.eup %7734  ;;  %4856 = vperm.xlu1 %7507, %v7993_v1  }
 0x172   :  { %12404 = vst [vmem:[#allocation118_spill] sm:$0xff] %v9920_v24  ;;  %v9926_v52 = vpop.permute.xlu1 %3402  ;;  %v9929_v56 = vpop.permute.xlu0 %3397  ;;  %v2396_v43 = vadd.f32 1.0, %v7735_v8 }
 0x173   :  { %12405 = vst [vmem:[#allocation119_spill] sm:$0xff] %v9926_v52  ;;  %12406 = vst [vmem:[#allocation120_spill] sm:$0xff] %v9929_v56  ;;  %v9931_v6 = vpop.f32.mrf.mxu0  ;;  %v7994_v56 = vld [vmem:[%s12260_s2 + $0x18] sm:$0xff] }
 0x174   :  { %4860 = vperm.xlu0 %7506, %v7994_v56   ;;  %v7995_v56 = vld [vmem:[%s12260_s2 + $0x20] sm:$0xff] }
 0x175   :  { %v7737_v33 = vpop.eup %7736  ;;  %v9940_v13 = vpop.f32.mrf.mxu0  ;;  %4864 = vperm.xlu1 %7507, %v7995_v56  }
 0x176   :  { %12407 = vst [vmem:[#allocation121_spill] sm:$0xff] %v9940_v13  ;;  %v7739_v52 = vpop.eup %7738  ;;  %v2398_v58 = vadd.f32 1.0, %v7737_v33  ;;  %v9945_v24 = vpop.permute.xlu1 %3412  ;;  %v8002_v13 = vld [vmem:[%s12260_s2 + $0x58] sm:$0xff] }
 0x177   :  { %12408 = vst [vmem:[#allocation122_spill] sm:$0xff] %v9945_v24  ;;  %v7741_v53 = vpop.eup %7740  ;;  %v9947_v8 = vpop.permute.xlu0 %3407  ;;  %v2395_v37 = vadd.f32 1.0, %v7739_v52  ;;  %v9972_v24 = vadd.f32 %v9735_v22, %v9824_v3  ;;  %v6514_v52 = vmul.f32 -1.442695, %v9954_v55 }
 0x178   :  { %12409 = vst [vmem:[#allocation123_spill] sm:$0xff] %v9947_v8  ;;  %v9949_v50 = vpop.f32.mrf.mxu0  ;;  %7750 = vrcp.f32 %v2398_v58  ;;  %v2397_v1 = vadd.f32 1.0, %v7741_v53  ;;  %v7996_v58 = vld [vmem:[%s12260_s2 + $0x28] sm:$0xff]  ;;  %v7743_v53 = vpop.eup %7742 }
 0x179   :  { %7752 = vrcp.f32 %v2396_v43  ;;  %4868 = vperm.xlu0 %7506, %v7996_v58   ;;  %v2394_v56 = vadd.f32 1.0, %v7743_v53  ;;  %v7998_v58 = vld [vmem:[%s12260_s2 + $0x38] sm:$0xff]  ;;  %v6513_v28 = vmul.f32 -1.442695, %v9972_v24  ;;  %v9992_v53 = vadd.f32 %v9824_v3, %v9741_v39 }
 0x17a   :  { %v9959_v33 = vpop.f32.mrf.mxu0  ;;  %7754 = vrcp.f32 %v2397_v1  ;;  %v9964_v8 = vpop.permute.xlu1 %4446  ;;  %v7997_v1 = vld [vmem:[%s12260_s2 + $0x30] sm:$0xff] }
 0x17b   :  { %12410 = vst [vmem:[#allocation124_spill] sm:$0xff] %v9964_v8  ;;  %v9966_v36 = vpop.permute.xlu0 %4441  ;;  %7756 = vpow2.f32 %v6515_v0  ;;  %4872 = vperm.xlu1 %7507, %v7997_v1   ;;  %v7745_v8 = vpop.eup %7744 }
 0x17c   :  { %12411 = vst [vmem:[#allocation125_spill] sm:$0xff] %v9966_v36  ;;  %v9968_v43 = vpop.f32.mrf.mxu0  ;;  %7758 = vrcp.f32 %v2395_v37  ;;  %v7999_v37 = vld [vmem:[%s12260_s2 + $0x40] sm:$0xff]  ;;  %v2393_v1 = vadd.f32 1.0, %v7745_v8  ;;  %v6512_v8 = vmul.f32 -1.442695, %v9992_v53 }
 0x17d   :  { %4876 = vperm.xlu0 %7506, %v7998_v58   ;;  %7760 = vpow2.f32 %v6514_v52  ;;  %v8000_v58 = vld [vmem:[%s12260_s2 + $0x48] sm:$0xff] }
 0x17e   :  { %v9981_v36 = vpop.f32.mrf.mxu0  ;;  %v9983_v22 = vpop.permute.xlu1 %4456  ;;  %7762 = vrcp.f32 %v2394_v56  ;;  %v10010_v56 = vadd.f32 %v9711_v27, %v9824_v3 }
 0x17f   :  { %12412 = vst [vmem:[#allocation126_spill] sm:$0xff] %v9983_v22  ;;  %v9985_v0 = vpop.permute.xlu0 %4451  ;;  %4880 = vperm.xlu1 %7507, %v7999_v37   ;;  %v7747_v22 = vpop.eup %7746  ;;  %7764 = vpow2.f32 %v6513_v28  ;;  %v8001_v37 = vld [vmem:[%s12260_s2 + $0x50] sm:$0xff] }
 0x180   :  { %12413 = vst [vmem:[#allocation127_spill] sm:$0xff] %v9985_v0  ;;  %v9987_v10 = vpop.f32.mrf.mxu0  ;;  %v7749_v52 = vpop.eup %7748  ;;  %7766 = vrcp.f32 %v2393_v1 }
 0x181   :  { %4884 = vperm.xlu0 %7506, %v8000_v58   ;;  %7768 = vpow2.f32 %v6512_v8 }
 0x182   :  { %v10000_v0 = vpop.f32.mrf.mxu0  ;;  %v10002_v9 = vpop.permute.xlu1 %4466 }
 0x183   :  { %12414 = vst [vmem:[#allocation128_spill] sm:$0xff] %v10002_v9  ;;  %v10004_v39 = vpop.permute.xlu0 %4461  ;;  %4888 = vperm.xlu1 %7507, %v8001_v37   ;;  %v2392_v9 = vadd.f32 1.0, %v7747_v22 }
 0x184   :  { %12415 = vst [vmem:[#allocation129_spill] sm:$0xff] %v10004_v39  ;;  %v10006_v63 = vpop.f32.mrf.mxu0 }
 0x185   :  { %v7751_v49 = vpop.eup %7750  ;;  %4892 = vperm.xlu0 %7506, %v8002_v13   ;;  %v8003_v13 = vld [vmem:[%s12260_s2 + $0x60] sm:$0xff]  ;;  %7770 = vrcp.f32 %v2392_v9 }
 0x186   :  { %v7753_v58 = vpop.eup %7752  ;;  %v2590_v39 = vmul.f32 %v7751_v49, %v9852_v32  ;;  %v10020_v27 = vpop.f32.mrf.mxu0  ;;  %v6511_v49 = vmul.f32 -1.442695, %v10010_v56  ;;  %v10033_v32 = vadd.f32 %v9824_v3, %v9717_v26 }
 0x187   :  { %v7755_v28 = vpop.eup %7754  ;;  %v10022_v51 = vpop.permute.xlu1 %4476  ;;  %4896 = vperm.xlu1 %7507, %v8003_v13  }
 0x188   :  { %12416 = vst [vmem:[#allocation130_spill] sm:$0xff] %v10022_v51  ;;  %v10024_v35 = vpop.permute.xlu0 %4471  ;;  %v3430_v23 = vmul.f32 %v9393_v18, %v2590_v39  ;;  %v2589_v37 = vmul.f32 %v7755_v28, %v9864_v46  ;;  %v10028_v22 = vpop.f32.mrf.mxu0  ;;  %v2588_v18 = vmul.f32 %v7753_v58, %v9831_v31  ;;  %v8004_v39 = vld [vmem:[%s12260_s2 + $0x68] sm:$0xff]  ;;  %7772 = vpow2.f32 %v6511_v49  ;;  %v8005_v58 = vld [vmem:[%s12260_s2 + $0x70] sm:$0xff] }
 0x189   :  { %12417 = vst [vmem:[#allocation131_spill] sm:$0xff] %v10024_v35  ;;  %v7757_v1 = vpop.eup %7756  ;;  %v2391_v35 = vadd.f32 1.0, %v7749_v52  ;;  %4900 = vperm.xlu0 %7506, %v8004_v39   ;;  %v6510_v31 = vmul.f32 -1.442695, %v10033_v32 }
 0x18a   :  { %v3429_v46 = vmul.f32 %v9399_v54, %v2589_v37  ;;  %v10043_v26 = vpop.f32.mrf.mxu0  ;;  %7288 = vmatprep.subr.msk.mxu1 %vm173_vm0, %v3430_v23  ;;  %v7759_v8 = vpop.eup %7758  ;;  %v10056_v54 = vadd.f32 %v9686_v59, %v9824_v3  ;;  %v3428_v13 = vmul.f32 %v9371_v61, %v2588_v18  ;;  %v8006_v59 = vld [vmem:[%s12260_s2 + $0x78] sm:$0xff]  ;;  %v8007_v18 = vld [vmem:[%s12260_s2 + $0x80] sm:$0xff] }
 0x18b   :  { %v10046_v28 = vpop.permute.xlu1 %4486  ;;  %7289 = vmatpush3.xpose.msk.msra.mxu1 %vm173_vm0, %v3430_v23  ;;  %4904 = vperm.xlu1 %7507, %v8005_v58   ;;  %v7761_v37 = vpop.eup %7760  ;;  %v2390_v23 = vadd.f32 1.0, %v7757_v1  ;;  %7774 = vrcp.f32 %v2391_v35  ;;  %v2587_v39 = vmul.f32 %v7759_v8, %v9839_v47  ;;  %v10074_v1 = vadd.f32 %v9824_v3, %v9693_v21 }
 0x18c   :  { %12418 = vst [vmem:[#allocation132_spill] sm:$0xff] %v10046_v28  ;;  %v10049_v9 = vpop.permute.xlu0 %4481  ;;  %v10051_v52 = vpop.f32.mrf.mxu0  ;;  %7290 = vmatprep.subr.msk.mxu1 %vm173_vm0, %v3429_v46  ;;  %v6509_v47 = vmul.f32 -1.442695, %v10056_v54  ;;  %7776 = vpow2.f32 %v6510_v31 }
 0x18d   :  { %12419 = vst [vmem:[#allocation133_spill] sm:$0xff] %v10049_v9  ;;  %4908 = vperm.xlu0 %7506, %v8006_v59   ;;  %v7763_v9 = vpop.eup %7762  ;;  %7778 = vrcp.f32 %v2390_v23  ;;  %v3427_v58 = vmul.f32 %v9377_v45, %v2587_v39  ;;  %v8008_v59 = vld [vmem:[%s12260_s2 + $0x88] sm:$0xff] }
 0x18e   :  { %v10067_v49 = vpop.f32.mrf.mxu0  ;;  %v7765_v8 = vpop.eup %7764  ;;  %v2586_v21 = vmul.f32 %v7763_v9, %v9860_v7  ;;  %7780 = vpow2.f32 %v6509_v47  ;;  %v8009_v7 = vld [vmem:[%s12260_s2 + $0x90] sm:$0xff]  ;;  %v8010_v47 = vld [vmem:[%s12260_s2 + $0x98] sm:$0xff] }
 0x18f   :  { %v10069_v28 = vpop.permute.xlu1 %4496  ;;  %7291 = vmatpush3.xpose.msk.msra.mxu1 %vm173_vm0, %v3429_v46  ;;  %4912 = vperm.xlu1 %7507, %v8007_v18   ;;  %v2389_v46 = vadd.f32 1.0, %v7761_v37  ;;  %v7767_v31 = vpop.eup %7766  ;;  %v6508_v18 = vmul.f32 -1.442695, %v10074_v1  ;;  %v2388_v45 = vadd.f32 1.0, %v7765_v8 }
 0x190   :  { %12420 = vst [vmem:[#allocation134_spill] sm:$0xff] %v10069_v28  ;;  %v10076_v35 = vpop.permute.xlu0 %4491  ;;  %v10078_v61 = vpop.f32.mrf.mxu0  ;;  %7292 = vmatprep.subr.msk.mxu1 %vm173_vm0, %v3428_v13  ;;  %v3426_v39 = vmul.f32 %v9349_v4, %v2586_v21 }
 0x191   :  { %12421 = vst [vmem:[#allocation135_spill] sm:$0xff] %v10076_v35  ;;  %4916 = vperm.xlu0 %7506, %v8008_v59   ;;  %v7769_v9 = vpop.eup %7768  ;;  %7782 = vrcp.f32 %v2389_v46  ;;  %v10108_v59 = vadd.f32 %v10006_v63, %v9824_v3  ;;  %v8011_v46 = vld [vmem:[%s12260_s2 + $0xa0] sm:$0xff] }
 0x192   :  { %v10090_v35 = vpop.f32.mrf.mxu0  ;;  %7784 = vpow2.f32 %v6508_v18  ;;  %v2387_v63 = vadd.f32 1.0, %v7769_v9  ;;  %v8012_v18 = vld [vmem:[%s12260_s2 + $0xa8] sm:$0xff] }
 0x193   :  { %v10092_v28 = vpop.permute.xlu1 %4506  ;;  %7293 = vmatpush3.xpose.msk.msra.mxu1 %vm173_vm0, %v3428_v13  ;;  %4920 = vperm.xlu1 %7507, %v8009_v7   ;;  %v2585_v13 = vmul.f32 %v7767_v31, %v9887_v41  ;;  %7786 = vrcp.f32 %v2388_v45 }
 0x194   :  { %12422 = vst [vmem:[#allocation136_spill] sm:$0xff] %v10092_v28  ;;  %v10096_v23 = vpop.permute.xlu0 %4501  ;;  %v10098_v37 = vpop.f32.mrf.mxu0  ;;  %7294 = vmatprep.subr.msk.mxu1 %vm173_vm0, %v3427_v58  ;;  %7788 = vrcp.f32 %v2387_v63 }
 0x195   :  { %12423 = vst [vmem:[#allocation137_spill] sm:$0xff] %v10096_v23  ;;  %4924 = vperm.xlu0 %7506, %v8010_v47   ;;  %v7771_v23 = vpop.eup %7770  ;;  %v3425_v7 = vmul.f32 %v9355_v62, %v2585_v13  ;;  %v8013_v62 = vld [vmem:[%s12260_s2 + $0xb0] sm:$0xff] }
 0x196   :  { %v10113_v8 = vpop.f32.mrf.mxu0  ;;  %v7773_v21 = vpop.eup %7772  ;;  %v2584_v31 = vmul.f32 %v7771_v23, %v9904_v17 }
 0x197   :  { %v10115_v28 = vpop.permute.xlu1 %4516  ;;  %7295 = vmatpush3.xpose.msk.msra.mxu1 %vm173_vm0, %v3427_v58  ;;  %4928 = vperm.xlu1 %7507, %v8011_v46   ;;  %v6539_v58 = vmul.f32 -1.442695, %v10108_v59  ;;  %v2386_v23 = vadd.f32 1.0, %v7773_v21  ;;  %v10157_v21 = vadd.f32 %v9824_v3, %v10020_v27  ;;  %v8016_v27 = vld [vmem:[%s12260_s2 + $0xc8] sm:$0xff] }
 0x198   :  { %12424 = vst [vmem:[#allocation138_spill] sm:$0xff] %v10115_v28  ;;  %v10118_v4 = vpop.permute.xlu0 %4511  ;;  %v10120_v41 = vpop.f32.mrf.mxu0  ;;  %7296 = vmatprep.subr.msk.mxu1 %vm173_vm0, %v3426_v39  ;;  %v3424_v13 = vmul.f32 %v9331_v20, %v2584_v31  ;;  %v8015_v31 = vld [vmem:[%s12260_s2 + $0xc0] sm:$0xff] }
 0x199   :  { %12425 = vst [vmem:[#allocation139_spill] sm:$0xff] %v10118_v4  ;;  %4932 = vperm.xlu0 %7506, %v8012_v18   ;;  %v7775_v45 = vpop.eup %7774  ;;  %7790 = vpow2.f32 %v6539_v58 }
 0x19a   :  { %v10132_v47 = vpop.f32.mrf.mxu0  ;;  %v7777_v17 = vpop.eup %7776  ;;  %v2583_v18 = vmul.f32 %v7775_v45, %v9911_v11  ;;  %7792 = vrcp.f32 %v2386_v23 }
 0x19b   :  { %v10134_v9 = vpop.permute.xlu1 %4526  ;;  %7297 = vmatpush3.xpose.msk.msra.mxu1 %vm173_vm0, %v3426_v39  ;;  %4936 = vperm.xlu1 %7507, %v8013_v62   ;;  %v8014_v39 = vld [vmem:[%s12260_s2 + $0xb8] sm:$0xff]  ;;  %v7779_v63 = vpop.eup %7778  ;;  %v2385_v45 = vadd.f32 1.0, %v7777_v17  ;;  %v6538_v17 = vmul.f32 -1.442695, %v10157_v21 }
 0x19c   :  { %12426 = vst [vmem:[#allocation140_spill] sm:$0xff] %v10134_v9  ;;  %v10137_v46 = vpop.permute.xlu0 %4521  ;;  %v10139_v4 = vpop.f32.mrf.mxu0  ;;  %7298 = vmatprep.subr.msk.mxu1 %vm173_vm0, %v3425_v7  ;;  %v2582_v62 = vmul.f32 %v7779_v63, %v9935_v16  ;;  %v8017_v63 = vld [vmem:[%s12260_s2 + $0xd0] sm:$0xff] }
 0x19d   :  { %12427 = vst [vmem:[#allocation141_spill] sm:$0xff] %v10137_v46  ;;  %4940 = vperm.xlu0 %7506, %v8014_v39   ;;  %v7781_v58 = vpop.eup %7780  ;;  %7794 = vrcp.f32 %v2385_v45 }
 0x19e   :  { %v10150_v46 = vpop.f32.mrf.mxu0  ;;  %7796 = vpow2.f32 %v6538_v17 }
 0x19f   :  { %v10152_v9 = vpop.permute.xlu1 %4536  ;;  %7299 = vmatpush3.xpose.msk.msra.mxu1 %vm173_vm0, %v3425_v7  ;;  %4944 = vperm.xlu1 %7507, %v8015_v31   ;;  %v3423_v7 = vmul.f32 %v9333_v60, %v2583_v18  ;;  %v2384_v18 = vadd.f32 1.0, %v7781_v58  ;;  %v3422_v31 = vmul.f32 %v9309_v44, %v2582_v62 }
 0x1a0   :  { %12428 = vst [vmem:[#allocation142_spill] sm:$0xff] %v10152_v9  ;;  %v10159_v20 = vpop.permute.xlu0 %4531  ;;  %v7260_v11 = vpop.f32.mrf.mxu0  ;;  %7300 = vmatprep.subr.msk.mxu1 %vm173_vm0, %v3424_v13  ;;  %v10172_v9 = vadd.f32 %v9987_v10, %v9824_v3 }
 0x1a1   :  { %12429 = vst [vmem:[#allocation143_spill] sm:$0xff] %v10159_v20  ;;  %4948 = vperm.xlu0 %7506, %v8016_v27   ;;  %v7783_v20 = vpop.eup %7782  ;;  %v10187_v27 = vadd.f32 %v7260_v11, %v9824_v3  ;;  %7798 = vrcp.f32 %v2384_v18 }
 0x1a2   :  { %v2092_v39 = vpop.f32.mrf.mxu0  ;;  %v7785_v23 = vpop.eup %7784 }
 0x1a3   :  { %v10174_v28 = vpop.permute.xlu1 %4546  ;;  %7301 = vmatpush3.xpose.msk.msra.mxu1 %vm173_vm0, %v3424_v13  ;;  %4952 = vperm.xlu1 %7507, %v8017_v63   ;;  %v7787_v10 = vpop.eup %7786  ;;  %v2581_v13 = vmul.f32 %v7783_v20, %v9954_v55  ;;  %v10195_v63 = vadd.f32 %v9824_v3, %v10000_v0  ;;  %v6553_v44 = vmul.f32 -1.442695, %v10187_v27  ;;  %v2383_v11 = vadd.f32 1.0, %v7785_v23  ;;  %v8019_v0 = vld [vmem:[%s12260_s2 + $0xe0] sm:$0xff]  ;;  %v8020_v23 = vld [vmem:[%s12260_s2 + $0xe8] sm:$0xff] }
 0x1a4   :  { %12430 = vst [vmem:[#allocation144_spill] sm:$0xff] %v10174_v28  ;;  %v10178_v16 = vpop.permute.xlu0 %4541  ;;  %v7263_v60 = vpop.f32.mrf.mxu0  ;;  %7302 = vmatprep.subr.msk.mxu1 %vm173_vm0, %v3423_v7  ;;  %v6537_v28 = vmul.f32 -1.442695, %v10172_v9  ;;  %v2580_v62 = vmul.f32 %v7787_v10, %v9972_v24 }
 0x1a5   :  { %12431 = vst [vmem:[#allocation145_spill] sm:$0xff] %v10178_v16  ;;  %v8018_v16 = vld [vmem:[%s12260_s2 + $0xd8] sm:$0xff]  ;;  %v3421_v17 = vmul.f32 %v9311_v48, %v2581_v13  ;;  %v6536_v10 = vmul.f32 -1.442695, %v10195_v63 }
 0x1a6   :  { %4956 = vperm.xlu0 %7506, %v8018_v16   ;;  %v2102_v58 = vpop.f32.mrf.mxu0  ;;  %v10208_v16 = vadd.f32 %v9824_v3, %v2092_v39  ;;  %7800 = vpow2.f32 %v6537_v28  ;;  %v3420_v28 = vmul.f32 %v9286_v2, %v2580_v62 }
 0x1a7   :  { %v10197_v45 = vpop.permute.xlu1 %4556  ;;  %7303 = vmatpush3.xpose.msk.msra.mxu1 %vm173_vm0, %v3423_v7  ;;  %4960 = vperm.xlu1 %7507, %v8019_v0   ;;  %v7789_v7 = vpop.eup %7788  ;;  %7802 = vpow2.f32 %v6553_v44  ;;  %v10229_v18 = vadd.f32 %v9824_v3, %v2102_v58  ;;  %v10237_v0 = vadd.f32 %v9968_v43, %v9824_v3  ;;  %v10249_v43 = vadd.f32 %v10139_v4, %v9824_v3 }
 0x1a8   :  { %12432 = vst [vmem:[#allocation146_spill] sm:$0xff] %v10197_v45  ;;  %v10201_v55 = vpop.permute.xlu0 %4551  ;;  %v10203_v20 = vpop.f32.mrf.mxu0  ;;  %7304 = vmatprep.subr.msk.mxu1 %vm173_vm0, %v3422_v31  ;;  %v6552_v48 = vmul.f32 -1.442695, %v10208_v16  ;;  %7804 = vrcp.f32 %v2383_v11  ;;  %v8021_v11 = vld [vmem:[%s12260_s2 + $0xf8] sm:$0xff]  ;;  %v10263_v4 = vadd.f32 %v9949_v50, %v9824_v3 }
 0x1a9   :  { %12433 = vst [vmem:[#allocation147_spill] sm:$0xff] %v10201_v55  ;;  %12434 = vst [vmem:[#allocation148_spill] sm:$0xff] %v10203_v20  ;;  %v10215_v55 = vadd.f32 %v7263_v60, %v9824_v3  ;;  %v7791_v39 = vpop.eup %7790  ;;  %v6554_v58 = vmul.f32 -1.442695, %v10229_v18  ;;  %v6535_v62 = vmul.f32 -1.442695, %v10237_v0 }
 0x1aa   :  { %4964 = vperm.xlu0 %7506, %v8020_v23   ;;  %v10220_v24 = vpop.f32.mrf.mxu0  ;;  %v2414_v44 = vadd.f32 1.0, %v7791_v39  ;;  %v7793_v2 = vpop.eup %7792 }
 0x1ab   :  { %12435 = vst [vmem:[#allocation149_spill] sm:$0xff] %v10220_v24  ;;  %v10223_v45 = vpop.permute.xlu1 %4566  ;;  %7305 = vmatpush3.xpose.msk.msra.mxu1 %vm173_vm0, %v3422_v31  ;;  %v6555_v60 = vmul.f32 -1.442695, %v10215_v55  ;;  %4968 = vperm.xlu1 %7507, %v9601_v42   ;;  %v2579_v31 = vmul.f32 %v7789_v7, %v9992_v53  ;;  %v2578_v7 = vmul.f32 %v7793_v2, %v10010_v56  ;;  %v6551_v56 = vmul.f32 -1.442695, %v10249_v43 }
 0x1ac   :  { %12436 = vst [vmem:[#allocation150_spill] sm:$0xff] %v10223_v45  ;;  %v10231_v13 = vpop.permute.xlu0 %4561  ;;  %7306 = vmatprep.subr.msk.mxu1 %vm173_vm0, %v3421_v17  ;;  %v10242_v23 = vpop.f32.mrf.mxu0 }
 0x1ad   :  { %12437 = vst [vmem:[#allocation151_spill] sm:$0xff] %v10231_v13  ;;  %7806 = vpow2.f32 %v6555_v60  ;;  %12438 = vst [vmem:[#allocation152_spill] sm:$0xff] %v10242_v23  ;;  %v3419_v39 = vmul.f32 %v9288_v57, %v2579_v31  ;;  %v10283_v31 = vadd.f32 %v9824_v3, %v10150_v46  ;;  %v12473_v23 = vld [vmem:[#allocation99_spill] sm:$0xff] }
 0x1ae   :  { %4972 = vperm.xlu0 %7506, %v8021_v11   ;;  %7808 = vpow2.f32 %v6536_v10  ;;  %v8022_v10 = vld [vmem:[%s12260_s2 + $0x108] sm:$0xff] }
 0x1af   :  { %v10251_v42 = vpop.permute.xlu1 %4576  ;;  %7307 = vmatpush3.xpose.msk.msra.mxu1 %vm173_vm0, %v3421_v17  ;;  %7810 = vpow2.f32 %v6552_v48  ;;  %4976 = vperm.xlu1 %7507, %v9627_v14   ;;  %v10265_v17 = vpop.f32.mrf.mxu0  ;;  %v10272_v14 = vadd.f32 %v9824_v3, %v9981_v36  ;;  %v3418_v36 = vmul.f32 %v9256_v38, %v2578_v7 }
 0x1b0   :  { %12439 = vst [vmem:[#allocation153_spill] sm:$0xff] %v10251_v42  ;;  %v10254_v53 = vpop.permute.xlu0 %4571  ;;  %7308 = vmatprep.subr.msk.mxu1 %vm173_vm0, %v3420_v28  ;;  %7812 = vpow2.f32 %v6554_v58  ;;  %12441 = vst [vmem:[#allocation155_spill] sm:$0xff] %v10265_v17  ;;  %v7795_v48 = vpop.eup %7794  ;;  %v6533_v58 = vmul.f32 -1.442695, %v10263_v4 }
 0x1b1   :  { %12440 = vst [vmem:[#allocation154_spill] sm:$0xff] %v10254_v53  ;;  %7814 = vrcp.f32 %v2414_v44  ;;  %v7797_v60 = vpop.eup %7796  ;;  %v2577_v44 = vmul.f32 %v7795_v48, %v10033_v32  ;;  %v10289_v11 = vpop.f32.mrf.mxu0  ;;  %v6534_v2 = vmul.f32 -1.442695, %v10272_v14  ;;  %v6550_v32 = vmul.f32 -1.442695, %v10283_v31  ;;  %v12467_v53 = vld [vmem:[#allocation114_spill] sm:$0xff] }
 0x1b2   :  { %4980 = vperm.xlu0 %7506, %v8022_v10   ;;  %7816 = vpow2.f32 %v6535_v62  ;;  %12444 = vst [vmem:[#allocation158_spill] sm:$0xff] %v10289_v11  ;;  %v10421_v42 = vadd.f32 %v9824_v3, %v12467_v53 }
 0x1b3   :  { %v10275_v57 = vpop.permute.xlu1 %4586  ;;  %7309 = vmatpush3.xpose.msk.msra.mxu1 %vm173_vm0, %v3420_v28  ;;  %4984 = vperm.xlu1 %7507, %v9654_v15   ;;  %v7799_v28 = vpop.eup %7798  ;;  %7818 = vpow2.f32 %v6551_v56  ;;  %v2413_v15 = vadd.f32 1.0, %v7797_v60  ;;  %v3417_v48 = vmul.f32 %v9261_v5, %v2577_v44 }
 0x1b4   :  { %12442 = vst [vmem:[#allocation156_spill] sm:$0xff] %v10275_v57  ;;  %v10278_v50 = vpop.permute.xlu0 %4581  ;;  %7310 = vmatprep.subr.msk.mxu1 %vm173_vm0, %v3419_v39  ;;  %v7801_v46 = vpop.eup %7800  ;;  %v2576_v7 = vmul.f32 %v7799_v28, %v10056_v54  ;;  %7820 = vpow2.f32 %v6533_v58 }
 0x1b5   :  { %12443 = vst [vmem:[#allocation157_spill] sm:$0xff] %v10278_v50  ;;  %v7803_v38 = vpop.eup %7802  ;;  %v10307_v56 = vpop.f32.mrf.mxu0  ;;  %7822 = vpow2.f32 %v6534_v2 }
 0x1b6   :  { %4988 = vperm.xlu0 %7506, %v9641_v40   ;;  %v7805_v40 = vpop.eup %7804  ;;  %12447 = vst [vmem:[#allocation161_spill] sm:$0xff] %v10307_v56  ;;  %7824 = vrcp.f32 %v2413_v15  ;;  %v2428_v54 = vadd.f32 1.0, %v7803_v38 }
 0x1b7   :  { %v10293_v62 = vpop.permute.xlu1 %4596  ;;  %7311 = vmatpush3.xpose.msk.msra.mxu1 %vm173_vm0, %v3419_v39  ;;  %4992 = vperm.xlu1 %7507, %v9682_v34   ;;  %v10305_v39 = vadd.f32 %v10120_v41, %v9824_v3  ;;  %v2575_v58 = vmul.f32 %v7805_v40, %v10074_v1  ;;  %7826 = vpow2.f32 %v6550_v32  ;;  %v10329_v1 = vadd.f32 %v9824_v3, %v10132_v47  ;;  %v12452_v40 = vld [vmem:[#allocation89_spill] sm:$0xff] }
 0x1b8   :  { %12445 = vst [vmem:[#allocation159_spill] sm:$0xff] %v10293_v62  ;;  %v10296_v10 = vpop.permute.xlu0 %4591  ;;  %7312 = vmatprep.subr.msk.mxu1 %vm173_vm0, %v3418_v36 }
 0x1b9   :  { %12446 = vst [vmem:[#allocation160_spill] sm:$0xff] %v10296_v10  ;;  %v2412_v10 = vadd.f32 1.0, %v7801_v46  ;;  %v6549_v2 = vmul.f32 -1.442695, %v10305_v39  ;;  %v10324_v46 = vpop.f32.mrf.mxu0  ;;  %v3415_v47 = vmul.f32 %v9232_v19, %v2575_v58  ;;  %v6548_v19 = vmul.f32 -1.442695, %v10329_v1 }
 0x1ba   :  { %4996 = vperm.xlu0 %7506, %v9669_v30   ;;  %v7807_v60 = vpop.eup %7806  ;;  %v10319_v30 = vadd.f32 %v9824_v3, %v9959_v33 }
 0x1bb   :  { %v10310_v62 = vpop.permute.xlu1 %4606  ;;  %7313 = vmatpush3.xpose.msk.msra.mxu1 %vm173_vm0, %v3418_v36  ;;  %v7809_v34 = vpop.eup %7808  ;;  %v2430_v5 = vadd.f32 1.0, %v7807_v60  ;;  %5000 = vperm.xlu1 %7507, %v9707_v29   ;;  %v3416_v36 = vmul.f32 %v9230_v12, %v2576_v7  ;;  %v10338_v12 = vadd.f32 %v9931_v6, %v9824_v3 }
 0x1bc   :  { %12448 = vst [vmem:[#allocation162_spill] sm:$0xff] %v10310_v62  ;;  %v10313_v44 = vpop.permute.xlu0 %4601  ;;  %7314 = vmatprep.subr.msk.mxu1 %vm173_vm0, %v3417_v48  ;;  %v7811_v41 = vpop.eup %7810  ;;  %v2411_v60 = vadd.f32 1.0, %v7809_v34 }
 0x1bd   :  { %12449 = vst [vmem:[#allocation163_spill] sm:$0xff] %v10313_v44  ;;  %v7813_v28 = vpop.eup %7812  ;;  %7828 = vrcp.f32 %v2430_v5  ;;  %v10333_v29 = vpop.f32.mrf.mxu1  ;;  %v2427_v32 = vadd.f32 1.0, %v7811_v41  ;;  %v12454_v41 = vld [vmem:[#allocation87_spill] sm:$0xff] }
 0x1be   :  { %5004 = vperm.xlu0 %7506, %v9698_v25   ;;  %v7815_v15 = vpop.eup %7814  ;;  %7830 = vrcp.f32 %v2412_v10  ;;  %v2429_v33 = vadd.f32 1.0, %v7813_v28  ;;  %v6532_v10 = vmul.f32 -1.442695, %v10319_v30  ;;  %v10353_v5 = vpop.f32.mrf.mxu0 }
 0x1bf   :  { %v10331_v38 = vpop.permute.xlu1 %4616  ;;  %7315 = vmatpush3.xpose.msk.msra.mxu1 %vm173_vm0, %v3417_v48  ;;  %7832 = vrcp.f32 %v2428_v54  ;;  %5008 = vperm.xlu1 %7507, %v12452_v40   ;;  %v10346_v7 = vpop.f32.mrf.mxu1  ;;  %v2606_v6 = vmul.f32 %v7815_v15, %v10108_v59  ;;  %v10351_v54 = vadd.f32 %v10098_v37, %v9824_v3  ;;  %12453 = vst [vmem:[#allocation89_spill] sm:$0xff] %v10353_v5  ;;  %v12456_v59 = vld [vmem:[#allocation113_spill] sm:$0xff]  ;;  %v6531_v37 = vmul.f32 -1.442695, %v10338_v12 }
 0x1c0   :  { %12450 = vst [vmem:[#allocation164_spill] sm:$0xff] %v10331_v38  ;;  %v10340_v25 = vpop.permute.xlu0 %4611  ;;  %7316 = vmatprep.subr.msk.mxu1 %vm173_vm0, %v3416_v36  ;;  %7834 = vrcp.f32 %v2429_v33  ;;  %v7817_v48 = vpop.eup %7816  ;;  %v10364_v15 = vadd.f32 %v12456_v59, %v9824_v3  ;;  %v12458_v33 = vld [vmem:[#allocation121_spill] sm:$0xff]  ;;  %v12460_v59 = vld [vmem:[#allocation75_spill] sm:$0xff] }
 0x1c1   :  { %12451 = vst [vmem:[#allocation165_spill] sm:$0xff] %v10340_v25  ;;  %7836 = vpow2.f32 %v6549_v2  ;;  %v10359_v28 = vpop.f32.mrf.mxu1  ;;  %v7819_v34 = vpop.eup %7818  ;;  %v10372_v40 = vadd.f32 %v9824_v3, %v12458_v33  ;;  %v10378_v25 = vmul.f32 %v12460_v59, %v2606_v6  ;;  %v12461_v33 = vld [vmem:[#allocation91_spill] sm:$0xff]  ;;  %v12463_v59 = vld [vmem:[#allocation117_spill] sm:$0xff] }
 0x1c2   :  { %5012 = vperm.xlu0 %7506, %v12454_v41   ;;  %7838 = vrcp.f32 %v2427_v32  ;;  %v2410_v41 = vadd.f32 1.0, %v7817_v48  ;;  %v6547_v32 = vmul.f32 -1.442695, %v10351_v54  ;;  %v10385_v38 = vpop.f32.mrf.mxu0  ;;  %v2426_v48 = vadd.f32 1.0, %v7819_v34 }
 0x1c3   :  { %v10357_v58 = vpop.permute.xlu1 %4626  ;;  %7317 = vmatpush3.xpose.msk.msra.mxu1 %vm173_vm0, %v3416_v36  ;;  %7840 = vpow2.f32 %v6532_v10  ;;  %v10375_v36 = vpop.f32.mrf.mxu1  ;;  %v6527_v6 = vmul.f32 -1.442695, %v10364_v15  ;;  %v6530_v34 = vmul.f32 -1.442695, %v10372_v40 }
 0x1c4   :  { %12455 = vst [vmem:[#allocation87_spill] sm:$0xff] %v10357_v58  ;;  %v10367_v2 = vpop.permute.xlu0 %4621  ;;  %7318 = vmatprep.subr.msk.mxu1 %vm173_vm0, %v3415_v47  ;;  %v12459_v58 = vld [vmem:[#allocation93_spill] sm:$0xff]  ;;  %7842 = vrcp.f32 %v2411_v60  ;;  %v7821_v10 = vpop.eup %7820 }
 0x1c5   :  { %12457 = vst [vmem:[#allocation113_spill] sm:$0xff] %v10367_v2  ;;  %5016 = vperm.xlu1 %7507, %v12459_v58   ;;  %v10383_v2 = vadd.f32 %v9824_v3, %v10113_v8  ;;  %7844 = vpow2.f32 %v6548_v19  ;;  %v10390_v44 = vpop.f32.mrf.mxu1  ;;  %v7823_v60 = vpop.eup %7822  ;;  %v10396_v8 = vadd.f32 %v12463_v59, %v9824_v3 }
 0x1c6   :  { %5020 = vperm.xlu0 %7506, %v12461_v33   ;;  %7846 = vpow2.f32 %v6531_v37  ;;  %v7825_v19 = vpop.eup %7824  ;;  %v12465_v33 = vld [vmem:[#allocation97_spill] sm:$0xff]  ;;  %v10413_v37 = vadd.f32 %v10078_v61, %v9824_v3  ;;  %v10416_v50 = vpop.f32.mrf.mxu0  ;;  %v2409_v45 = vadd.f32 1.0, %v7823_v60 }
 0x1c7   :  { %v10388_v58 = vpop.permute.xlu1 %4636  ;;  %7319 = vmatpush3.xpose.msk.msra.mxu1 %vm173_vm0, %v3415_v47  ;;  %7848 = vrcp.f32 %v2410_v41  ;;  %v10406_v47 = vld [vmem:[%s12267_s9] ss:$0 sm:$0xff]  ;;  %v7827_v59 = vpop.eup %7826  ;;  %v12466_v41 = vld [vmem:[#allocation95_spill] sm:$0xff]  ;;  %v6529_v24 = vmul.f32 -1.442695, %v10396_v8 }
 0x1c8   :  { %12462 = vst [vmem:[#allocation121_spill] sm:$0xff] %v10388_v58  ;;  %v10398_v62 = vpop.permute.xlu0 %4631  ;;  %7341 = vmatprep.subr.msk.mxu1 %vm173_vm0, %v10378_v25  ;;  %v10409_v58 = vpop.f32.mrf.mxu1  ;;  %7850 = vpow2.f32 %v6547_v32  ;;  %v1330_v53 = vadd.f32 %v10333_v29, %v10406_v47  ;;  %v2425_v60 = vadd.f32 1.0, %v7827_v59  ;;  %v6545_v29 = vmul.f32 -1.442695, %v10413_v37 }
 0x1c9   :  { %12464 = vst [vmem:[#allocation93_spill] sm:$0xff] %v10398_v62  ;;  %5024 = vperm.xlu1 %7507, %v12465_v33   ;;  %v6546_v62 = vmul.f32 -1.442695, %v10383_v2  ;;  %v12468_v33 = vld [vmem:[#allocation118_spill] sm:$0xff]  ;;  %7852 = vrcp.f32 %v2426_v48  ;;  %v10439_v48 = vadd.f32 %v9824_v3, %v10090_v35  ;;  %v10452_v56 = vpop.f32.mrf.mxu0 }
 0x1ca   :  { %5028 = vperm.xlu0 %7506, %v12466_v41   ;;  %v7829_v57 = vpop.eup %7828  ;;  %v10425_v13 = vadd.f32 %v9824_v3, %v12468_v33  ;;  %v10429_v32 = vpop.f32.mrf.mxu1  ;;  %7854 = vpow2.f32 %v6527_v6  ;;  %v1325_v33 = vadd.f32 %v10406_v47, %v10346_v7  ;;  %v12471_v6 = vld [vmem:[#allocation101_spill] sm:$0xff] }
 0x1cb   :  { %v10427_v61 = vpop.permute.xlu1 %4646  ;;  %v7831_v51 = vpop.eup %7830  ;;  %v2622_v41 = vmul.f32 %v7829_v57, %v10215_v55  ;;  %7856 = vpow2.f32 %v6530_v34  ;;  %v2605_v57 = vmul.f32 %v7825_v19, %v10157_v21  ;;  %v2408_v21 = vadd.f32 1.0, %v7821_v10  ;;  %v12476_v19 = vld [vmem:[#allocation8_spill] sm:$0xff] }
 0x1cc   :  { %12469 = vst [vmem:[#allocation75_spill] sm:$0xff] %v10427_v61  ;;  %v10435_v17 = vpop.permute.xlu0 %4641  ;;  %v7833_v20 = vpop.eup %7832  ;;  %7858 = vpow2.f32 %v6546_v62  ;;  %v6528_v59 = vmul.f32 -1.442695, %v10425_v13 }
 0x1cd   :  { %12470 = vst [vmem:[#allocation91_spill] sm:$0xff] %v10435_v17  ;;  %5032 = vperm.xlu1 %7507, %v12471_v6   ;;  %v10444_v61 = vpop.f32.mrf.mxu1  ;;  %v7835_v55 = vpop.eup %7834  ;;  %v12472_v17 = vld [vmem:[#allocation96_spill] sm:$0xff]  ;;  %7860 = vrcp.f32 %v2409_v45  ;;  %v12474_v6 = vld [vmem:[#allocation6_spill] sm:$0xff]  ;;  %v2620_v62 = vmul.f32 %v7833_v20, %v10187_v27  ;;  %v2604_v20 = vmul.f32 %v7831_v51, %v10172_v9  ;;  %v12480_v51 = vld [vmem:[#allocation109_spill] sm:$0xff] }
 0x1ce   :  { %v3462_v34 = vmul.f32 %v12472_v17, %v2622_v41  ;;  %5036 = vperm.xlu0 %7506, %v12473_v23   ;;  %v7837_v35 = vpop.eup %7836  ;;  %v2621_v7 = vmul.f32 %v7835_v55, %v10229_v18  ;;  %v2975_v11 = vmul.f32 %v12474_v6, %v1325_v33  ;;  %7862 = vpow2.f32 %v6529_v24  ;;  %v12478_v24 = vld [vmem:[#allocation98_spill] sm:$0xff] }
 0x1cf   :  { %v10455_v5 = vpop.permute.xlu1 %4656  ;;  %v2976_v17 = vmul.f32 %v12476_v19, %v1330_v53  ;;  %v10462_v41 = vpop.f32.mrf.mxu1  ;;  %v10466_v18 = vadd.f32 %v10051_v52, %v9824_v3  ;;  %v6544_v33 = vmul.f32 -1.442695, %v10439_v48  ;;  %7864 = vrcp.f32 %v2425_v60  ;;  %v12479_v53 = vld [vmem:[#allocation76_spill] sm:$0xff] }
 0x1d0   :  { %12475 = vst [vmem:[#allocation117_spill] sm:$0xff] %v10455_v5  ;;  %7394 = vmatprep.subr.msk.mxu0 %vm173_vm0, %v3462_v34  ;;  %v10460_v23 = vpop.permute.xlu0 %4651  ;;  %v7839_v45 = vpop.eup %7838  ;;  %v3461_v10 = vmul.f32 %v12478_v24, %v2621_v7  ;;  %7320 = vmatprep.mubr.msk.f32.mxu1 %vm173_vm0, %v2975_v11  ;;  %v3445_v55 = vmul.f32 %v12479_v53, %v2605_v57  ;;  %7866 = vpow2.f32 %v6545_v29  ;;  %v2424_v6 = vadd.f32 1.0, %v7837_v35  ;;  %v8023_v3 = vld [vmem:[%s12260_s2 + $0x180] sm:$0xff] }
 0x1d1   :  { %12477 = vst [vmem:[#allocation97_spill] sm:$0xff] %v10460_v23  ;;  %7395 = vmatpush3.xpose.msk.msra.mxu0 %vm173_vm0, %v3462_v34  ;;  %v7841_v27 = vpop.eup %7840  ;;  %7321 = vmatmul.mubr.msk.f32.vlgmr.msra.gmra.mxu1 %vm173_vm0, %v2976_v17  ;;  %v10478_v52 = vpop.f32.mrf.mxu1  ;;  %v10483_v11 = vld [vmem:[%s12269_s11] ss:$0 sm:$0xff]  ;;  %v6526_v57 = vmul.f32 -1.442695, %v10421_v42  ;;  %7868 = vpow2.f32 %v6528_v59  ;;  %v2619_v17 = vmul.f32 %v7839_v45, %v10208_v16  ;;  %v1340_v24 = vadd.f32 %v10359_v28, %v10406_v47  ;;  %v8025_v59 = vld [vmem:[%s12260_s2 + $0x188] sm:$0xff] }
 0x1d2   :  { %5040 = vperm.xlu1 %7507, %v8023_v3   ;;  %v7843_v60 = vpop.eup %7842  ;;  %v10487_v9 = vadd.f32 %v10483_v11, %v12480_v51  ;;  %v10490_v29 = vpop.f32.mrf.mxu0  ;;  %7342 = vmatpush3.xpose.msk.msra.mxu1 %vm173_vm0, %v10378_v25  ;;  %7870 = vrcp.f32 %v2408_v21  ;;  %v12483_v7 = vld [vmem:[#allocation92_spill] sm:$0xff]  ;;  %v2407_v21 = vadd.f32 1.0, %v7841_v27  ;;  %v1335_v16 = vadd.f32 %v10406_v47, %v10375_v36  ;;  %v12485_v45 = vld [vmem:[#allocation73_spill] sm:$0xff]  ;;  %v12489_v23 = vld [vmem:[#allocation7_spill] sm:$0xff] }
 0x1d3   :  { %7396 = vmatprep.subr.msk.mxu0 %vm173_vm0, %v3461_v10  ;;  %v10495_v34 = vpop.permute.xlu1 %4666  ;;  %v7845_v35 = vpop.eup %7844  ;;  %v3460_v19 = vmul.f32 %v12483_v7, %v2620_v62  ;;  %7343 = vmatprep.subr.msk.mxu1 %vm173_vm0, %v3445_v55  ;;  %v10511_v62 = vadd.f32 %v10483_v11, %v10067_v49  ;;  %7872 = vpow2.f32 %v6544_v33  ;;  %v3444_v51 = vmul.f32 %v12485_v45, %v2604_v20  ;;  %v8026_v49 = vld [vmem:[%s12260_s2 + $0x190] sm:$0xff] }
 0x1d4   :  { %12481 = vst [vmem:[#allocation95_spill] sm:$0xff] %v10487_v9  ;;  %12482 = vst [vmem:[#allocation114_spill] sm:$0xff] %v10495_v34  ;;  %5044 = vperm.xlu0 %7506, %v8025_v59   ;;  %v10505_v25 = vpop.permute.xlu0 %4661  ;;  %v10507_v53 = vpop.f32.mrf.mxu1  ;;  %v2603_v7 = vmul.f32 %v7843_v60, %v10195_v63  ;;  %v6543_v59 = vmul.f32 -1.442695, %v10466_v18  ;;  %7874 = vrcp.f32 %v2424_v6  ;;  %v2423_v27 = vadd.f32 1.0, %v7845_v35  ;;  %v12486_v63 = vld [vmem:[#allocation5_spill] sm:$0xff] }
 0x1d5   :  { %12484 = vst [vmem:[#allocation118_spill] sm:$0xff] %v10505_v25  ;;  %v7847_v3 = vpop.eup %7846  ;;  %7397 = vmatpush3.xpose.msk.msra.mxu0 %vm173_vm0, %v3461_v10  ;;  %v10526_v10 = vmul.f32 -1.442695, %v10487_v9  ;;  %7876 = vpow2.f32 %v6526_v57  ;;  %v10528_v20 = vpop.f32.mrf.mxu0  ;;  %v2977_v60 = vmul.f32 %v12486_v63, %v1335_v16  ;;  %v12488_v34 = vld [vmem:[#allocation94_spill] sm:$0xff]  ;;  %v2978_v5 = vmul.f32 %v12489_v23, %v1340_v24  ;;  %v8027_v57 = vld [vmem:[%s12260_s2 + $0x198] sm:$0xff] }
 0x1d6   :  { %v7849_v28 = vpop.eup %7848  ;;  %7398 = vmatprep.subr.msk.mxu0 %vm173_vm0, %v3460_v19  ;;  %5048 = vperm.xlu1 %7507, %v8026_v49   ;;  %v10523_v33 = vpop.f32.mrf.mxu1  ;;  %v2406_v25 = vadd.f32 1.0, %v7847_v3  ;;  %v3459_v49 = vmul.f32 %v12488_v34, %v2619_v17  ;;  %v1350_v9 = vadd.f32 %v10390_v44, %v10406_v47  ;;  %7878 = vrcp.f32 %v2407_v21  ;;  %v12492_v24 = vld [vmem:[#allocation110_spill] sm:$0xff] }
 0x1d7   :  { %v7851_v36 = vpop.eup %7850  ;;  %7344 = vmatpush3.xpose.msk.msra.mxu1 %vm173_vm0, %v3445_v55  ;;  %v10532_v6 = vpop.permute.xlu1 %4676  ;;  %v10550_v23 = vadd.f32 %v10483_v11, %v10028_v22  ;;  %v6542_v44 = vmul.f32 -1.442695, %v10511_v62  ;;  %v1345_v34 = vadd.f32 %v10406_v47, %v10409_v58  ;;  %7323 = vmatprep.mubr.msk.f32.mxu1 %vm173_vm0, %v2977_v60  ;;  %v10559_v3 = vadd.f32 %v10483_v11, %v12492_v24  ;;  %v12493_v63 = vld [vmem:[#allocation74_spill] sm:$0xff] }
 0x1d8   :  { %12487 = vst [vmem:[#allocation101_spill] sm:$0xff] %v10532_v6  ;;  %v7853_v45 = vpop.eup %7852  ;;  %7345 = vmatprep.subr.msk.mxu1 %vm173_vm0, %v3444_v51  ;;  %5052 = vperm.xlu0 %7506, %v8027_v57   ;;  %v10542_v35 = vpop.permute.xlu0 %4671  ;;  %v3443_v21 = vmul.f32 %v12493_v63, %v2603_v7  ;;  %7880 = vpow2.f32 %v6543_v59  ;;  %v2422_v57 = vadd.f32 1.0, %v7851_v36  ;;  %v2602_v60 = vmul.f32 %v7849_v28, %v10237_v0  ;;  %v12494_v24 = vld [vmem:[#allocation10_spill] sm:$0xff]  ;;  %v12496_v36 = vld [vmem:[#allocation9_spill] sm:$0xff] }
 0x1d9   :  { %12490 = vst [vmem:[#allocation96_spill] sm:$0xff] %v10542_v35  ;;  %v10544_v55 = vpop.f32.mrf.mxu1  ;;  %v10546_v16 = vpop.eup %7854  ;;  %12491 = vst [vmem:[#allocation99_spill] sm:$0xff] %v10550_v23  ;;  %7399 = vmatpush3.xpose.msk.msra.mxu0 %vm173_vm0, %v3460_v19  ;;  %7324 = vmatmul.mubr.msk.f32.gmra.mxu1 %vm173_vm0, %v2978_v5  ;;  %7882 = vrcp.f32 %v2423_v27  ;;  %v2618_v19 = vmul.f32 %v7853_v45, %v10249_v43  ;;  %v2979_v6 = vmul.f32 %v12494_v24, %v1345_v34  ;;  %v8028_v5 = vld [vmem:[%s12260_s2 + $0x1a0] sm:$0xff] }
 0x1da   :  { %v7857_v17 = vpop.eup %7856  ;;  %7400 = vmatprep.subr.msk.mxu0 %vm173_vm0, %v3459_v49  ;;  %v10568_v35 = vpop.f32.mrf.mxu0  ;;  %5056 = vperm.xlu1 %7507, %v8028_v5   ;;  %7884 = vrcp.f32 %v2406_v25  ;;  %v2980_v0 = vmul.f32 %v12496_v36, %v1350_v9  ;;  %v1360_v43 = vadd.f32 %v10429_v32, %v10406_v47  ;;  %v1355_v28 = vadd.f32 %v10406_v47, %v10444_v61  ;;  %v12499_v24 = vld [vmem:[#allocation12_spill] sm:$0xff] }
 0x1db   :  { %v10564_v22 = vpop.f32.mrf.mxu1  ;;  %v7859_v58 = vpop.eup %7858  ;;  %7346 = vmatpush3.xpose.msk.msra.mxu1 %vm173_vm0, %v3444_v51  ;;  %v8029_v51 = vld [vmem:[%s12260_s2 + $0x1a8] sm:$0xff]  ;;  %v6541_v9 = vmul.f32 -1.442695, %v10550_v23  ;;  %v10593_v32 = vadd.f32 %v10483_v11, %v10043_v26  ;;  %7886 = vpow2.f32 %v6542_v44  ;;  %7326 = vmatprep.mubr.msk.f32.mxu1 %vm173_vm0, %v2979_v6  ;;  %v6524_v34 = vmul.f32 -1.442695, %v10559_v3  ;;  %v12501_v44 = vld [vmem:[#allocation88_spill] sm:$0xff] }
 0x1dc   :  { %v10575_v7 = vpop.permute.xlu1 %4686  ;;  %v7861_v59 = vpop.eup %7860  ;;  %7347 = vmatprep.subr.msk.mxu1 %vm173_vm0, %v3443_v21  ;;  %5060 = vperm.xlu0 %7506, %v8029_v51   ;;  %7888 = vrcp.f32 %v2422_v57  ;;  %v2421_v63 = vadd.f32 1.0, %v7859_v58  ;;  %v2981_v5 = vmul.f32 %v12499_v24, %v1355_v28  ;;  %v3458_v23 = vmul.f32 %v12501_v44, %v2618_v19 }
 0x1dd   :  { %12495 = vst [vmem:[#allocation6_spill] sm:$0xff] %v10575_v7  ;;  %v10586_v27 = vpop.permute.xlu0 %4681  ;;  %v10588_v45 = vpop.f32.mrf.mxu1  ;;  %7327 = vmatmul.mubr.msk.f32.gmra.mxu1 %vm173_vm0, %v2980_v0  ;;  %v12500_v7 = vld [vmem:[#allocation71_spill] sm:$0xff]  ;;  %v2601_v26 = vmul.f32 %v7861_v59, %v10272_v14  ;;  %7401 = vmatpush3.xpose.msk.msra.mxu0 %vm173_vm0, %v3459_v49  ;;  %7890 = vpow2.f32 %v10526_v10  ;;  %v1365_v14 = vadd.f32 %v10406_v47, %v10478_v52  ;;  %v6540_v19 = vmul.f32 -1.442695, %v10593_v32  ;;  %v12505_v52 = vld [vmem:[#allocation14_spill] sm:$0xff] }
 0x1de   :  { %12497 = vst [vmem:[#allocation8_spill] sm:$0xff] %v10586_v27  ;;  %12498 = vst [vmem:[#allocation98_spill] sm:$0xff] %v10588_v45  ;;  %v7863_v25 = vpop.eup %7862  ;;  %v2405_v27 = vadd.f32 1.0, %v7857_v17  ;;  %v3442_v45 = vmul.f32 %v12500_v7, %v2602_v60  ;;  %v7287_v6 = vpop.f32.mrf.mxu0  ;;  %v12503_v0 = vld [vmem:[#allocation11_spill] sm:$0xff]  ;;  %v1370_v17 = vadd.f32 %v10462_v41, %v10406_v47  ;;  %7329 = vmatprep.mubr.msk.f32.mxu1 %vm173_vm0, %v2981_v5  ;;  %7892 = vpow2.f32 %v6541_v9  ;;  %v12506_v9 = vld [vmem:[#allocation72_spill] sm:$0xff] }
 0x1df   :  { %v7865_v61 = vpop.eup %7864  ;;  %v10599_v36 = vpop.f32.mrf.mxu1  ;;  %7348 = vmatpush3.xpose.msk.msra.mxu1 %vm173_vm0, %v3443_v21  ;;  %v2982_v28 = vmul.f32 %v12503_v0, %v1360_v43  ;;  %7402 = vmatprep.subr.msk.mxu0 %vm173_vm0, %v3458_v23  ;;  %v2404_v7 = vadd.f32 1.0, %v7863_v25  ;;  %7894 = vrcp.f32 %v2421_v63  ;;  %v2983_v43 = vmul.f32 %v12505_v52, %v1365_v14  ;;  %v12508_v0 = vld [vmem:[#allocation13_spill] sm:$0xff]  ;;  %v12511_v14 = vld [vmem:[#allocation16_spill] sm:$0xff] }
 0x1e0   :  { %v7867_v51 = vpop.eup %7866  ;;  %v10606_v57 = vpop.permute.xlu1 %4696  ;;  %v2617_v10 = vmul.f32 %v7865_v61, %v10283_v31  ;;  %7349 = vmatprep.subr.msk.mxu1 %vm173_vm0, %v3442_v45  ;;  %7896 = vrcp.f32 %v2405_v27  ;;  %v3441_v44 = vmul.f32 %v12506_v9, %v2601_v26  ;;  %v10629_v31 = vadd.f32 %v10483_v11, %v7287_v6 }
 0x1e1   :  { %12502 = vst [vmem:[#allocation76_spill] sm:$0xff] %v10606_v57  ;;  %v7869_v58 = vpop.eup %7868  ;;  %v10615_v60 = vpop.permute.xlu0 %4691  ;;  %v2420_v59 = vadd.f32 1.0, %v7867_v51  ;;  %7330 = vmatmul.mubr.msk.f32.gmra.mxu1 %vm173_vm0, %v2982_v28  ;;  %v1375_v61 = vadd.f32 %v10406_v47, %v10523_v33  ;;  %7403 = vmatpush3.xpose.msk.msra.mxu0 %vm173_vm0, %v3458_v23  ;;  %7898 = vpow2.f32 %v6524_v34  ;;  %v2984_v27 = vmul.f32 %v12508_v0, %v1370_v17 }
 0x1e2   :  { %12504 = vst [vmem:[#allocation109_spill] sm:$0xff] %v10615_v60  ;;  %v10617_v21 = vpop.f32.mrf.mxu1  ;;  %v7871_v49 = vpop.eup %7870  ;;  %v2403_v51 = vadd.f32 1.0, %v7869_v58  ;;  %v1380_v26 = vadd.f32 %v10507_v53, %v10406_v47  ;;  %7332 = vmatprep.mubr.msk.f32.mxu1 %vm173_vm0, %v2983_v43  ;;  %7900 = vpow2.f32 %v6540_v19  ;;  %v1385_v34 = vadd.f32 %v10406_v47, %v10564_v22 }
 0x1e3   :  { %v7873_v41 = vpop.eup %7872  ;;  %7350 = vmatpush3.xpose.msk.msra.mxu1 %vm173_vm0, %v3442_v45  ;;  %v12510_v45 = vld [vmem:[#allocation90_spill] sm:$0xff]  ;;  %v2182_v28 = vpop.f32.mrf.mxu0  ;;  %v2985_v52 = vmul.f32 %v12511_v14, %v1375_v61  ;;  %v2600_v53 = vmul.f32 %v7871_v49, %v10263_v4  ;;  %7902 = vrcp.f32 %v2420_v59  ;;  %v6571_v9 = vmul.f32 -1.442695, %v10629_v31 }
 0x1e4   :  { %v10625_v24 = vpop.f32.mrf.mxu1  ;;  %v7875_v5 = vpop.eup %7874  ;;  %v3457_v23 = vmul.f32 %v12510_v45, %v2617_v10  ;;  %7351 = vmatprep.subr.msk.mxu1 %vm173_vm0, %v3441_v44  ;;  %v2419_v17 = vadd.f32 1.0, %v7873_v41  ;;  %7904 = vrcp.f32 %v2404_v7  ;;  %v12512_v61 = vld [vmem:[#allocation18_spill] sm:$0xff]  ;;  %v10664_v49 = vadd.f32 %v10483_v11, %v2182_v28 }
 0x1e5   :  { %v10635_v25 = vpop.permute.xlu1 %4706  ;;  %v10637_v63 = vpop.eup %7876  ;;  %v2616_v43 = vmul.f32 %v7875_v5, %v10305_v39  ;;  %7333 = vmatmul.mubr.msk.f32.gmra.mxu1 %vm173_vm0, %v2984_v27  ;;  %v2987_v0 = vmul.f32 %v12512_v61, %v1385_v34  ;;  %v12514_v39 = vld [vmem:[#allocation15_spill] sm:$0xff]  ;;  %v2402_v45 = vadd.f32 1.0, %v10546_v16  ;;  %7906 = vrcp.f32 %v2403_v51  ;;  %v12516_v34 = vld [vmem:[#allocation69_spill] sm:$0xff] }
 0x1e6   :  { %12507 = vst [vmem:[#allocation92_spill] sm:$0xff] %v10635_v25  ;;  %v10643_v6 = vpop.permute.xlu0 %4701  ;;  %v10645_v33 = vpop.f32.mrf.mxu1  ;;  %7335 = vmatprep.mubr.msk.f32.mxu1 %vm173_vm0, %v2985_v52  ;;  %7404 = vmatprep.subr.msk.mxu0 %vm173_vm0, %v3457_v23  ;;  %v2986_v41 = vmul.f32 %v12514_v39, %v1380_v26  ;;  %v8030_v7 = vld [vmem:[%s12260_s2 + $0x1b0] sm:$0xff]  ;;  %v1390_v14 = vadd.f32 %v10544_v55, %v10406_v47  ;;  %v8031_v26 = vld [vmem:[%s12260_s2 + $0x1b8] sm:$0xff]  ;;  %7908 = vrcp.f32 %v2419_v17  ;;  %v12517_v16 = vld [vmem:[#allocation85_spill] sm:$0xff] }
 0x1e7   :  { %12509 = vst [vmem:[#allocation73_spill] sm:$0xff] %v10643_v6  ;;  %v7879_v58 = vpop.eup %7878  ;;  %5064 = vperm.xlu1 %7507, %v8030_v7   ;;  %5068 = vperm.xlu0 %7506, %v8031_v26   ;;  %v1395_v28 = vadd.f32 %v10406_v47, %v10599_v36  ;;  %v3440_v61 = vmul.f32 %v12516_v34, %v2600_v53  ;;  %7910 = vpow2.f32 %v6571_v9  ;;  %v12518_v53 = vld [vmem:[#allocation20_spill] sm:$0xff]  ;;  %v2401_v34 = vadd.f32 1.0, %v10637_v63 }
 0x1e8   :  { %v10655_v19 = vpop.f32.mrf.mxu1  ;;  %v7881_v10 = vpop.eup %7880  ;;  %7352 = vmatpush3.xpose.msk.msra.mxu1 %vm173_vm0, %v3441_v44  ;;  %v3456_v51 = vmul.f32 %v12517_v16, %v2616_v43  ;;  %7405 = vmatpush3.xpose.msk.msra.mxu0 %vm173_vm0, %v3457_v23  ;;  %v10694_v36 = vadd.f32 %v10483_v11, %v10528_v20  ;;  %v6570_v44 = vmul.f32 -1.442695, %v10664_v49  ;;  %7912 = vrcp.f32 %v2402_v45  ;;  %v12519_v43 = vld [vmem:[#allocation17_spill] sm:$0xff] }
 0x1e9   :  { %v10661_v22 = vpop.permute.xlu1 %4716  ;;  %v7883_v4 = vpop.eup %7882  ;;  %v2418_v39 = vadd.f32 1.0, %v7881_v10  ;;  %7336 = vmatmul.mubr.msk.f32.gmra.mxu1 %vm173_vm0, %v2986_v41  ;;  %v2989_v17 = vmul.f32 %v12518_v53, %v1395_v28  ;;  %7353 = vmatprep.subr.msk.mxu1 %vm173_vm0, %v3440_v61  ;;  %v2988_v23 = vmul.f32 %v12519_v43, %v1390_v14  ;;  %v8113_v10 = vmov 2   ;;  %v8032_v41 = vld [vmem:[%s12260_s2] sm:$0xff]  ;;  %v8033_v45 = vld [vmem:[%s12260_s2 + $0x8] sm:$0xff] }
 0x1ea   :  { %12513 = vst [vmem:[#allocation5_spill] sm:$0xff] %v10661_v22  ;;  %v10670_v59 = vpop.permute.xlu0 %4711  ;;  %v10672_v5 = vpop.f32.mrf.mxu1  ;;  %v2599_v22 = vmul.f32 %v7879_v58, %v10319_v30  ;;  %v2615_v26 = vmul.f32 %v7883_v4, %v10329_v1  ;;  %7338 = vmatprep.mubr.msk.f32.mxu1 %vm173_vm0, %v2987_v0  ;;  %7406 = vmatprep.subr.msk.mxu0 %vm173_vm0, %v3456_v51  ;;  %v6569_v43 = vmul.f32 -1.442695, %v10694_v36 }
 0x1eb   :  { %12515 = vst [vmem:[#allocation94_spill] sm:$0xff] %v10670_v59  ;;  %v7885_v27 = vpop.eup %7884  ;;  %7508 = vset.pattern.permute.xlu1 %v8113_v10  ;;  %7509 = vset.pattern.permute.xlu0 %v8113_v10  ;;  %7914 = vrcp.f32 %v2418_v39  ;;  %v10725_v10 = vadd.f32 %v10483_v11, %v10568_v35 }
 0x1ec   :  { %v7887_v52 = vpop.eup %7886  ;;  %v10686_v55 = vpop.f32.mrf.mxu1  ;;  %5256 = vperm.xlu1 %7508, %v8032_v41   ;;  %5260 = vperm.xlu0 %7509, %v8033_v45   ;;  %v2598_v39 = vmul.f32 %v7885_v27, %v10338_v12  ;;  %7916 = vpow2.f32 %v6570_v44  ;;  %v12522_v44 = vld [vmem:[#allocation83_spill] sm:$0xff] }
 0x1ed   :  { %v7889_v7 = vpop.eup %7888  ;;  %v10702_v1 = vpop.permute.xlu1 %4852  ;;  %v2417_v0 = vadd.f32 1.0, %v7887_v52  ;;  %v12520_v52 = vld [vmem:[#allocation70_spill] sm:$0xff]  ;;  %7339 = vmatmul.mubr.msk.f32.gmra.mxu1 %vm173_vm0, %v2988_v23  ;;  %7407 = vmatpush3.xpose.msk.msra.mxu0 %vm173_vm0, %v3456_v51 }
 0x1ee   :  { %v10700_v30 = vpop.f32.mrf.mxu1  ;;  %v7891_v58 = vpop.eup %7890  ;;  %v2614_v4 = vmul.f32 %v7889_v7, %v10351_v54  ;;  %v3439_v16 = vmul.f32 %v12520_v52, %v2599_v22  ;;  %v12521_v54 = vld [vmem:[#allocation86_spill] sm:$0xff]  ;;  %7354 = vmatpush3.xpose.msk.msra.mxu1 %vm173_vm0, %v3440_v61  ;;  %7373 = vmatprep.mubr.msk.f32.mxu1 %vm173_vm0, %v2989_v17  ;;  %v6568_v52 = vmul.f32 -1.442695, %v10725_v10 }
 0x1ef   :  { %v10705_v20 = vpop.permute.xlu0 %4848  ;;  %v7893_v9 = vpop.eup %7892  ;;  %v3455_v7 = vmul.f32 %v12521_v54, %v2615_v26  ;;  %v2400_v27 = vadd.f32 1.0, %v7891_v58  ;;  %7918 = vrcp.f32 %v2417_v0  ;;  %v8034_v17 = vld [vmem:[%s12260_s2 + $0x10] sm:$0xff]  ;;  %v8035_v58 = vld [vmem:[%s12260_s2 + $0x20] sm:$0xff] }
 0x1f0   :  { %v10714_v14 = vpop.f32.mrf.mxu1  ;;  %v7895_v28 = vpop.eup %7894  ;;  %7355 = vmatprep.subr.msk.mxu1 %vm173_vm0, %v3439_v16  ;;  %v2416_v35 = vadd.f32 1.0, %v7893_v9  ;;  %v3454_v23 = vmul.f32 %v12522_v44, %v2614_v4  ;;  %5264 = vperm.xlu1 %7508, %v8034_v17   ;;  %7920 = vrcp.f32 %v2401_v34  ;;  %v12523_v9 = vld [vmem:[#allocation67_spill] sm:$0xff] }
 0x1f1   :  { %v7897_v53 = vpop.eup %7896  ;;  %v10731_v63 = vpop.permute.xlu1 %4856  ;;  %7408 = vmatprep.subr.msk.mxu0 %vm173_vm0, %v3455_v7  ;;  %v2613_v61 = vmul.f32 %v7895_v28, %v10383_v2  ;;  %5272 = vperm.xlu0 %7509, %v8035_v58   ;;  %v3438_v0 = vmul.f32 %v12523_v9, %v2598_v39  ;;  %v10752_v28 = vadd.f32 %v10483_v11, %v10452_v56  ;;  %7922 = vpow2.f32 %v6569_v43  ;;  %v12524_v43 = vld [vmem:[#allocation84_spill] sm:$0xff] }
 0x1f2   :  { %v10729_v12 = vpop.f32.mrf.mxu1  ;;  %v7899_v22 = vpop.eup %7898  ;;  %v2597_v4 = vmul.f32 %v7897_v53, %v10372_v40  ;;  %7409 = vmatpush3.xpose.msk.msra.mxu0 %vm173_vm0, %v3455_v7  ;;  %7356 = vmatpush3.xpose.msk.msra.mxu1 %vm173_vm0, %v3439_v16  ;;  %7924 = vrcp.f32 %v2400_v27  ;;  %v8036_v16 = vld [vmem:[%s12260_s2 + $0x18] sm:$0xff] }
 0x1f3   :  { %v10735_v51 = vpop.permute.xlu0 %4860  ;;  %v7901_v26 = vpop.eup %7900  ;;  %7410 = vmatprep.subr.msk.mxu0 %vm173_vm0, %v3454_v23  ;;  %v2399_v40 = vadd.f32 1.0, %v7899_v22  ;;  %7357 = vmatprep.subr.msk.mxu1 %vm173_vm0, %v3438_v0  ;;  %7926 = vrcp.f32 %v2416_v35  ;;  %v3453_v44 = vmul.f32 %v12524_v43, %v2613_v61  ;;  %v8037_v22 = vld [vmem:[%s12260_s2 + $0x30] sm:$0xff]  ;;  %v6567_v61 = vmul.f32 -1.442695, %v10752_v28 }
 0x1f4   :  { %v10745_v41 = vpop.f32.mrf.mxu1  ;;  %v7903_v45 = vpop.eup %7902  ;;  %v2415_v56 = vadd.f32 1.0, %v7901_v26  ;;  %5268 = vperm.xlu1 %7508, %v8036_v16   ;;  %v12525_v26 = vld [vmem:[#allocation68_spill] sm:$0xff]  ;;  %7928 = vpow2.f32 %v6568_v52 }
 0x1f5   :  { %v7905_v2 = vpop.eup %7904  ;;  %v10759_v34 = vpop.permute.xlu1 %4864  ;;  %v2612_v53 = vmul.f32 %v7903_v45, %v10413_v37  ;;  %5280 = vperm.xlu0 %7509, %v8037_v22   ;;  %v3437_v58 = vmul.f32 %v12525_v26, %v2597_v4  ;;  %v10780_v45 = vadd.f32 %v10483_v11, %v10490_v29  ;;  %7930 = vrcp.f32 %v2399_v40  ;;  %v12526_v4 = vld [vmem:[#allocation81_spill] sm:$0xff] }
 0x1f6   :  { %v10757_v54 = vpop.f32.mrf.mxu1  ;;  %v7907_v7 = vpop.eup %7906  ;;  %v2596_v35 = vmul.f32 %v7905_v2, %v10396_v8  ;;  %7411 = vmatpush3.xpose.msk.msra.mxu0 %vm173_vm0, %v3454_v23  ;;  %7358 = vmatpush3.xpose.msk.msra.mxu1 %vm173_vm0, %v3438_v0  ;;  %7932 = vrcp.f32 %v2415_v56  ;;  %v8038_v0 = vld [vmem:[%s12260_s2 + $0x28] sm:$0xff]  ;;  %v8039_v52 = vld [vmem:[%s12260_s2 + $0x40] sm:$0xff] }
 0x1f7   :  { %v10762_v39 = vpop.permute.xlu0 %4868  ;;  %v7909_v17 = vpop.eup %7908  ;;  %7412 = vmatprep.subr.msk.mxu0 %vm173_vm0, %v3453_v44  ;;  %7359 = vmatprep.subr.msk.mxu1 %vm173_vm0, %v3437_v58  ;;  %v3452_v2 = vmul.f32 %v12526_v4, %v2612_v53  ;;  %v12527_v22 = vld [vmem:[#allocation65_spill] sm:$0xff]  ;;  %v2595_v56 = vmul.f32 %v7907_v7, %v10425_v13  ;;  %v10803_v53 = vadd.f32 %v10483_v11, %v10385_v38  ;;  %7934 = vpow2.f32 %v6567_v61  ;;  %v8041_v61 = vld [vmem:[%s12260_s2 + $0x50] sm:$0xff] }
 0x1f8   :  { %v10772_v27 = vpop.f32.mrf.mxu1  ;;  %v7911_v37 = vpop.eup %7910  ;;  %v2611_v29 = vmul.f32 %v7909_v17, %v10439_v48  ;;  %5276 = vperm.xlu1 %7508, %v8038_v0   ;;  %v3436_v26 = vmul.f32 %v12527_v22, %v2596_v35  ;;  %v6566_v17 = vmul.f32 -1.442695, %v10780_v45  ;;  %v12530_v22 = vld [vmem:[#allocation66_spill] sm:$0xff] }
 0x1f9   :  { %v10786_v43 = vpop.permute.xlu1 %4872  ;;  %v7913_v23 = vpop.eup %7912  ;;  %5288 = vperm.xlu0 %7509, %v8039_v52   ;;  %v2446_v48 = vadd.f32 1.0, %v7911_v37  ;;  %v3435_v59 = vmul.f32 %v12530_v22, %v2595_v56 }
 0x1fa   :  { %v10784_v9 = vpop.f32.mrf.mxu1  ;;  %v7915_v16 = vpop.eup %7914  ;;  %7413 = vmatpush3.xpose.msk.msra.mxu0 %vm173_vm0, %v3453_v44  ;;  %7360 = vmatpush3.xpose.msk.msra.mxu1 %vm173_vm0, %v3437_v58  ;;  %v2594_v13 = vmul.f32 %v7913_v23, %v10364_v15  ;;  %v12529_v44 = vld [vmem:[#allocation82_spill] sm:$0xff]  ;;  %v8040_v58 = vld [vmem:[%s12260_s2 + $0x38] sm:$0xff] }
 0x1fb   :  { %v10789_v8 = vpop.permute.xlu0 %4876  ;;  %7414 = vmatprep.subr.msk.mxu0 %vm173_vm0, %v3452_v2  ;;  %v7917_v35 = vpop.eup %7916  ;;  %7361 = vmatprep.subr.msk.mxu1 %vm173_vm0, %v3436_v26  ;;  %v2610_v7 = vmul.f32 %v7915_v16, %v10466_v18  ;;  %v3451_v37 = vmul.f32 %v12529_v44, %v2611_v29  ;;  %v6565_v18 = vmul.f32 -1.442695, %v10803_v53  ;;  %v10832_v29 = vadd.f32 %v10483_v11, %v10416_v50 }
 0x1fc   :  { %v1464_v40 = vpop.f32.mrf.mxu1  ;;  %5284 = vperm.xlu1 %7508, %v8040_v58   ;;  %v7919_v52 = vpop.eup %7918  ;;  %7936 = vrcp.f32 %v2446_v48  ;;  %v2445_v44 = vadd.f32 1.0, %v7917_v35 }
 0x1fd   :  { %v10811_v0 = vpop.permute.xlu1 %4880  ;;  %5296 = vperm.xlu0 %7509, %v8041_v61   ;;  %v1465_v15 = vadd.f32 %v10406_v47, %v1464_v40  ;;  %v7921_v16 = vpop.eup %7920  ;;  %7938 = vpow2.f32 %v6566_v17  ;;  %v12531_v40 = vld [vmem:[#allocation34_spill] sm:$0xff]  ;;  %v12535_v17 = vld [vmem:[#allocation79_spill] sm:$0xff] }
 0x1fe   :  { %v10809_v4 = vpop.f32.mrf.mxu1  ;;  %7415 = vmatpush3.xpose.msk.msra.mxu0 %vm173_vm0, %v3452_v2  ;;  %7362 = vmatpush3.xpose.msk.msra.mxu1 %vm173_vm0, %v3436_v26  ;;  %v7923_v22 = vpop.eup %7922  ;;  %v12534_v2 = vld [vmem:[#allocation63_spill] sm:$0xff]  ;;  %v3450_v35 = vmul.f32 %v12535_v17, %v2610_v7  ;;  %v2609_v26 = vmul.f32 %v7919_v52, %v10511_v62  ;;  %v2593_v60 = vmul.f32 %v7921_v16, %v10421_v42  ;;  %7940 = vpow2.f32 %v6565_v18 }
 0x1ff   :  { %v10815_v38 = vpop.permute.xlu0 %4884  ;;  %7416 = vmatprep.subr.msk.mxu0 %vm173_vm0, %v3451_v37  ;;  %v3003_v58 = vmul.f32 %v12531_v40, %v1465_v15  ;;  %7363 = vmatprep.subr.msk.mxu1 %vm173_vm0, %v3435_v59  ;;  %v7925_v48 = vpop.eup %7924  ;;  %v3434_v25 = vmul.f32 %v12534_v2, %v2594_v13  ;;  %v8042_v15 = vld [vmem:[%s12260_s2 + $0x48] sm:$0xff]  ;;  %v8043_v40 = vld [vmem:[%s12260_s2 + $0x60] sm:$0xff]  ;;  %v10859_v13 = vadd.f32 %v10483_v11, %v10324_v46  ;;  %v6564_v62 = vmul.f32 -1.442695, %v10832_v29  ;;  %v12538_v2 = vld [vmem:[#allocation95_spill] sm:$0xff] }
 0x200   :  { %12528 = vst [vmem:[#allocation7_spill] sm:$0xff] %v10815_v38  ;;  %v10826_v23 = vpop.f32.mrf.mxu1  ;;  %5292 = vperm.xlu1 %7508, %v8042_v15   ;;  %v7927_v57 = vpop.eup %7926  ;;  %v2444_v7 = vadd.f32 1.0, %v7923_v22  ;;  %7942 = vrcp.f32 %v2445_v44  ;;  %v12539_v17 = vld [vmem:[#allocation99_spill] sm:$0xff]  ;;  %v12540_v22 = vld [vmem:[#allocation80_spill] sm:$0xff]  ;;  %v12561_v38 = vld [vmem:[#allocation33_spill] sm:$0xff] }
 0x201   :  { %v10840_v56 = vpop.permute.xlu1 %4888  ;;  %5304 = vperm.xlu0 %7509, %v8043_v40   ;;  %7426 = vmatprep.mubr.msk.f32.mxu0 %vm173_vm0, %v3003_v58  ;;  %v7929_v16 = vpop.eup %7928  ;;  %v2608_v58 = vmul.f32 %v7927_v57, %v12539_v17  ;;  %v3449_v44 = vmul.f32 %v12540_v22, %v2609_v26  ;;  %v8045_v15 = vld [vmem:[%s12260_s2 + $0x70] sm:$0xff]  ;;  %7944 = vpow2.f32 %v6564_v62  ;;  %v12545_v62 = vld [vmem:[#allocation77_spill] sm:$0xff] }
 0x202   :  { %v10838_v61 = vpop.f32.mrf.mxu1  ;;  %12532 = vst [vmem:[#allocation110_spill] sm:$0xff] %v10840_v56  ;;  %7417 = vmatpush3.xpose.msk.msra.mxu0 %vm173_vm0, %v3451_v37  ;;  %7364 = vmatpush3.xpose.msk.msra.mxu1 %vm173_vm0, %v3435_v59  ;;  %v7931_v18 = vpop.eup %7930  ;;  %v2592_v37 = vmul.f32 %v7925_v48, %v12538_v2  ;;  %v8044_v59 = vld [vmem:[%s12260_s2 + $0x58] sm:$0xff]  ;;  %v12542_v48 = vld [vmem:[#allocation89_spill] sm:$0xff]  ;;  %7946 = vrcp.f32 %v2444_v7  ;;  %v2443_v2 = vadd.f32 1.0, %v7929_v16 }
 0x203   :  { %v10843_v50 = vpop.permute.xlu0 %4892  ;;  %7418 = vmatprep.subr.msk.mxu0 %vm173_vm0, %v3450_v35  ;;  %7365 = vmatprep.subr.msk.mxu1 %vm173_vm0, %v3434_v25  ;;  %v7933_v40 = vpop.eup %7932  ;;  %v10886_v57 = vadd.f32 %v10483_v11, %v12542_v48  ;;  %v2591_v22 = vmul.f32 %v7931_v18, %v10559_v3  ;;  %v8046_v7 = vld [vmem:[%s12260_s2 + $0x68] sm:$0xff]  ;;  %v12560_v56 = vld [vmem:[#allocation19_spill] sm:$0xff] }
 0x204   :  { %12533 = vst [vmem:[#allocation74_spill] sm:$0xff] %v10843_v50  ;;  %v10854_v6 = vpop.f32.mrf.mxu1  ;;  %5300 = vperm.xlu1 %7508, %v8044_v59   ;;  %v6563_v50 = vmul.f32 -1.442695, %v10859_v13  ;;  %v3448_v59 = vmul.f32 %v12545_v62, %v2608_v58  ;;  %v12546_v16 = vld [vmem:[#allocation61_spill] sm:$0xff]  ;;  %v12547_v48 = vld [vmem:[#allocation158_spill] sm:$0xff] }
 0x205   :  { %v10868_v42 = vpop.permute.xlu1 %4896  ;;  %5312 = vperm.xlu0 %7509, %v8045_v15   ;;  %v3432_v15 = vmul.f32 %v12546_v16, %v2592_v37  ;;  %v6562_v3 = vmul.f32 -1.442695, %v10886_v57  ;;  %v12552_v16 = vld [vmem:[#allocation161_spill] sm:$0xff] }
 0x206   :  { %v10866_v52 = vpop.f32.mrf.mxu1  ;;  %12536 = vst [vmem:[#allocation10_spill] sm:$0xff] %v10868_v42  ;;  %v12541_v42 = vld [vmem:[#allocation64_spill] sm:$0xff]  ;;  %7419 = vmatpush3.xpose.msk.msra.mxu0 %vm173_vm0, %v3450_v35  ;;  %7366 = vmatpush3.xpose.msk.msra.mxu1 %vm173_vm0, %v3434_v25  ;;  %v2607_v35 = vmul.f32 %v7933_v40, %v10593_v32  ;;  %7948 = vpow2.f32 %v6563_v50  ;;  %v12550_v50 = vld [vmem:[#allocation62_spill] sm:$0xff] }
 0x207   :  { %v10871_v46 = vpop.permute.xlu0 %4900  ;;  %7420 = vmatprep.subr.msk.mxu0 %vm173_vm0, %v3449_v44  ;;  %v8047_v25 = vld [vmem:[%s12260_s2 + $0x80] sm:$0xff]  ;;  %7950 = vrcp.f32 %v2443_v2 }
 0x208   :  { %12537 = vst [vmem:[#allocation9_spill] sm:$0xff] %v10871_v46  ;;  %v3433_v46 = vmul.f32 %v12541_v42, %v2593_v60  ;;  %v10889_v26 = vpop.f32.mrf.mxu1  ;;  %v7935_v60 = vpop.eup %7934  ;;  %5308 = vperm.xlu1 %7508, %v8046_v7   ;;  %v3431_v7 = vmul.f32 %v12550_v50, %v2591_v22  ;;  %7952 = vpow2.f32 %v6562_v3  ;;  %v1405_v3 = vadd.f32 %v10406_v47, %v10625_v24 }
 0x209   :  { %v10893_v17 = vpop.permute.xlu1 %4904  ;;  %5320 = vperm.xlu0 %7509, %v8047_v25   ;;  %v7937_v18 = vpop.eup %7936  ;;  %v2442_v58 = vadd.f32 1.0, %v7935_v60  ;;  %v12551_v25 = vld [vmem:[#allocation78_spill] sm:$0xff]  ;;  %v8048_v60 = vld [vmem:[%s12260_s2 + $0x78] sm:$0xff] }
 0x20a   :  { %12543 = vst [vmem:[#allocation12_spill] sm:$0xff] %v10893_v17  ;;  %7367 = vmatprep.subr.msk.mxu1 %vm173_vm0, %v3433_v46  ;;  %7421 = vmatpush3.xpose.msk.msra.mxu0 %vm173_vm0, %v3449_v44  ;;  %v10914_v32 = vpop.f32.mrf.mxu1  ;;  %v7939_v37 = vpop.eup %7938  ;;  %v3447_v44 = vmul.f32 %v12551_v25, %v2607_v35  ;;  %v2638_v22 = vmul.f32 %v7937_v18, %v10629_v31  ;;  %v8050_v18 = vld [vmem:[%s12260_s2 + $0x88] sm:$0xff] }
 0x20b   :  { %v10896_v42 = vpop.permute.xlu0 %4908  ;;  %7368 = vmatpush3.xpose.msk.msra.mxu1 %vm173_vm0, %v3433_v46  ;;  %7422 = vmatprep.subr.msk.mxu0 %vm173_vm0, %v3448_v59  ;;  %v8049_v46 = vld [vmem:[%s12260_s2 + $0x90] sm:$0xff]  ;;  %v7941_v50 = vpop.eup %7940  ;;  %7954 = vrcp.f32 %v2442_v58  ;;  %v2441_v25 = vadd.f32 1.0, %v7939_v37  ;;  %v1470_v31 = vadd.f32 %v10784_v9, %v10406_v47  ;;  %v8051_v58 = vld [vmem:[%s12260_s2 + $0xa0] sm:$0xff] }
 0x20c   :  { %12544 = vst [vmem:[#allocation71_spill] sm:$0xff] %v10896_v42  ;;  %v10910_v42 = vadd.f32 %v10483_v11, %v12547_v48  ;;  %7369 = vmatprep.subr.msk.mxu1 %vm173_vm0, %v3432_v15  ;;  %5316 = vperm.xlu1 %7508, %v8048_v60   ;;  %v10934_v48 = vadd.f32 %v10483_v11, %v12552_v16  ;;  %v10938_v35 = vpop.f32.mrf.mxu1  ;;  %v12554_v16 = vld [vmem:[#allocation98_spill] sm:$0xff]  ;;  %v12556_v9 = vld [vmem:[#allocation152_spill] sm:$0xff]  ;;  %v2440_v17 = vadd.f32 1.0, %v7941_v50 }
 0x20d   :  { %v10918_v40 = vpop.permute.xlu1 %4912  ;;  %5328 = vperm.xlu0 %7509, %v8049_v46   ;;  %v7943_v46 = vpop.eup %7942  ;;  %v10963_v37 = vadd.f32 %v10483_v11, %v12556_v9 }
 0x20e   :  { %12548 = vst [vmem:[#allocation88_spill] sm:$0xff] %v10918_v40  ;;  %v6561_v2 = vmul.f32 -1.442695, %v10910_v42  ;;  %7423 = vmatpush3.xpose.msk.msra.mxu0 %vm173_vm0, %v3448_v59  ;;  %v6560_v24 = vmul.f32 -1.442695, %v10934_v48 }
 0x20f   :  { %v10921_v62 = vpop.permute.xlu0 %4916  ;;  %7370 = vmatpush3.xpose.msk.msra.mxu1 %vm173_vm0, %v3432_v15  ;;  %7424 = vmatprep.subr.msk.mxu0 %vm173_vm0, %v3447_v44  ;;  %v1475_v15 = vadd.f32 %v10406_v47, %v10826_v23  ;;  %v10968_v23 = vpop.f32.mrf.mxu1 }
 0x210   :  { %12549 = vst [vmem:[#allocation11_spill] sm:$0xff] %v10921_v62  ;;  %v1400_v62 = vadd.f32 %v12554_v16, %v10406_v47  ;;  %7371 = vmatprep.subr.msk.mxu1 %vm173_vm0, %v3431_v7  ;;  %5324 = vperm.xlu1 %7508, %v8050_v18   ;;  %7956 = vpow2.f32 %v6561_v2  ;;  %v12557_v16 = vld [vmem:[#allocation122_spill] sm:$0xff]  ;;  %v12558_v18 = vld [vmem:[#allocation148_spill] sm:$0xff] }
 0x211   :  { %v10942_v60 = vpop.permute.xlu1 %4920  ;;  %5336 = vperm.xlu0 %7509, %v8051_v58   ;;  %v10972_v40 = vadd.f32 %v10483_v11, %v12558_v18  ;;  %7958 = vrcp.f32 %v2441_v25  ;;  %v2637_v58 = vmul.f32 %v7943_v46, %v10664_v49  ;;  %v3004_v18 = vmul.f32 %v12561_v38, %v1470_v31  ;;  %v12562_v49 = vld [vmem:[#allocation22_spill] sm:$0xff]  ;;  %v12563_v46 = vld [vmem:[#allocation36_spill] sm:$0xff]  ;;  %v11006_v31 = vpop.f32.mrf.mxu1 }
 0x212   :  { %12553 = vst [vmem:[#allocation14_spill] sm:$0xff] %v10942_v60  ;;  %7425 = vmatpush3.xpose.msk.msra.mxu0 %vm173_vm0, %v3447_v44  ;;  %v7945_v60 = vpop.eup %7944  ;;  %v1410_v44 = vadd.f32 %v10617_v21, %v10406_v47  ;;  %v2991_v25 = vmul.f32 %v12562_v49, %v1405_v3  ;;  %v8052_v21 = vld [vmem:[%s12260_s2 + $0x98] sm:$0xff]  ;;  %v6559_v38 = vmul.f32 -1.442695, %v10963_v37  ;;  %7960 = vpow2.f32 %v6560_v24 }
 0x213   :  { %v10949_v59 = vpop.permute.xlu0 %4924  ;;  %7372 = vmatpush3.xpose.msk.msra.mxu1 %vm173_vm0, %v3431_v7  ;;  %v7947_v9 = vpop.eup %7946  ;;  %v1480_v7 = vadd.f32 %v10809_v4, %v10406_v47  ;;  %v1485_v4 = vadd.f32 %v10406_v47, %v10854_v6  ;;  %7962 = vrcp.f32 %v2440_v17  ;;  %v12566_v6 = vld [vmem:[#allocation149_spill] sm:$0xff]  ;;  %v11022_v17 = vld [vmem:[%s12267_s9] ss:$0 sm:$0xff] }
 0x214   :  { %12555 = vst [vmem:[#allocation72_spill] sm:$0xff] %v10949_v59  ;;  %v3478_v59 = vmul.f32 %v12557_v16, %v2638_v22  ;;  %v2990_v22 = vmul.f32 %v12560_v56, %v1400_v62  ;;  %v1415_v16 = vadd.f32 %v10406_v47, %v10655_v19  ;;  %5332 = vperm.xlu1 %7508, %v8052_v21   ;;  %v8053_v19 = vld [vmem:[%s12260_s2 + $0xb0] sm:$0xff]  ;;  %v7949_v3 = vpop.eup %7948  ;;  %7964 = vpow2.f32 %v6559_v38 }
 0x215   :  { %v10976_v2 = vpop.permute.xlu1 %4928  ;;  %5344 = vperm.xlu0 %7509, %v8053_v19   ;;  %v12564_v56 = vld [vmem:[#allocation155_spill] sm:$0xff]  ;;  %7427 = vmatmul.mubr.msk.f32.vlgmr.msra.gmra.mxu0 %vm173_vm0, %v3004_v18  ;;  %v2636_v49 = vmul.f32 %v7947_v9, %v10694_v36  ;;  %v7951_v47 = vpop.eup %7950  ;;  %v12567_v18 = vld [vmem:[#allocation21_spill] sm:$0xff]  ;;  %v1420_v36 = vadd.f32 %v11022_v17, %v10645_v33 }
 0x216   :  { %12559 = vst [vmem:[#allocation13_spill] sm:$0xff] %v10976_v2  ;;  %7447 = vmatprep.subr.msk.mxu1 %vm173_vm0, %v3478_v59  ;;  %v3005_v2 = vmul.f32 %v12563_v46, %v1475_v15  ;;  %v11000_v62 = vadd.f32 %v10483_v11, %v12564_v56  ;;  %7374 = vmatmul.mubr.msk.f32.vlgmr.msra.gmra.mxu1 %vm173_vm0, %v2990_v22  ;;  %v2439_v15 = vadd.f32 1.0, %v7945_v60  ;;  %v12565_v46 = vld [vmem:[#allocation123_spill] sm:$0xff]  ;;  %v12568_v60 = vld [vmem:[#allocation24_spill] sm:$0xff]  ;;  %v8055_v33 = vld [vmem:[%s12260_s2 + $0xa8] sm:$0xff] }
 0x217   :  { %v10985_v50 = vpop.permute.xlu0 %4932  ;;  %v3477_v21 = vmul.f32 %v12565_v46, %v2637_v58  ;;  %7376 = vmatprep.mubr.msk.f32.mxu1 %vm173_vm0, %v2991_v25  ;;  %v11016_v22 = vadd.f32 %v10483_v11, %v12566_v6  ;;  %v2992_v19 = vmul.f32 %v12567_v18, %v1410_v44  ;;  %v2993_v58 = vmul.f32 %v12568_v60, %v1415_v16  ;;  %v12569_v9 = vld [vmem:[#allocation35_spill] sm:$0xff]  ;;  %v12570_v16 = vld [vmem:[#allocation38_spill] sm:$0xff]  ;;  %v7953_v46 = vpop.eup %7952 }
 0x218   :  { %7429 = vmatprep.mubr.msk.f32.mxu0 %vm173_vm0, %v3005_v2  ;;  %7448 = vmatpush3.xpose.msk.msra.mxu1 %vm173_vm0, %v3478_v59  ;;  %v1425_v11 = vadd.f32 %v11022_v17, %v10686_v55  ;;  %v3006_v25 = vmul.f32 %v12569_v9, %v1480_v7  ;;  %v1490_v44 = vadd.f32 %v11022_v17, %v10838_v61  ;;  %v6558_v59 = vmul.f32 -1.442695, %v11000_v62  ;;  %v8056_v7 = vld [vmem:[%s12260_s2 + $0xc0] sm:$0xff]  ;;  %v11047_v61 = vpop.f32.mrf.mxu1  ;;  %v12571_v38 = vld [vmem:[#allocation119_spill] sm:$0xff] }
 0x219   :  { %v11012_v24 = vpop.permute.xlu1 %4936  ;;  %7449 = vmatprep.subr.msk.mxu1 %vm173_vm0, %v3477_v21  ;;  %5340 = vperm.xlu1 %7508, %v8055_v33   ;;  %v3007_v56 = vmul.f32 %v12570_v16, %v1485_v4  ;;  %v1495_v55 = vadd.f32 %v11022_v17, %v10889_v26  ;;  %v2438_v6 = vadd.f32 1.0, %v7949_v3  ;;  %7966 = vrcp.f32 %v2439_v15  ;;  %v7955_v4 = vpop.eup %7954  ;;  %v12573_v9 = vld [vmem:[#allocation23_spill] sm:$0xff]  ;;  %v12574_v15 = vld [vmem:[#allocation26_spill] sm:$0xff] }
 0x21a   :  { %5352 = vperm.xlu0 %7509, %v8056_v7   ;;  %7377 = vmatmul.mubr.msk.f32.gmra.mxu1 %vm173_vm0, %v2992_v19  ;;  %v3476_v18 = vmul.f32 %v12571_v38, %v2636_v49  ;;  %v2635_v60 = vmul.f32 %v7951_v47, %v10725_v10  ;;  %v2994_v33 = vmul.f32 %v12573_v9, %v1420_v36  ;;  %v12575_v47 = vld [vmem:[#allocation37_spill] sm:$0xff]  ;;  %7968 = vpow2.f32 %v6558_v59  ;;  %v1524_v16 = vpop.f32.mrf.mxu1  ;;  %v12577_v38 = vld [vmem:[#allocation120_spill] sm:$0xff] }
 0x21b   :  { %v11028_v2 = vpop.permute.xlu0 %4940  ;;  %7430 = vmatmul.mubr.msk.f32.gmra.mxu0 %vm173_vm0, %v3006_v25  ;;  %7379 = vmatprep.mubr.msk.f32.mxu1 %vm173_vm0, %v2993_v58  ;;  %v1430_v19 = vadd.f32 %v11022_v17, %v10672_v5  ;;  %v1435_v3 = vadd.f32 %v11022_v17, %v10714_v14  ;;  %v2995_v49 = vmul.f32 %v12574_v15, %v1425_v11  ;;  %v8057_v5 = vld [vmem:[%s12260_s2 + $0xb8] sm:$0xff]  ;;  %v6557_v14 = vmul.f32 -1.442695, %v10972_v40  ;;  %v12579_v9 = vld [vmem:[#allocation25_spill] sm:$0xff] }
 0x21c   :  { %7432 = vmatprep.mubr.msk.f32.mxu0 %vm173_vm0, %v3007_v56  ;;  %7450 = vmatpush3.xpose.msk.msra.mxu1 %vm173_vm0, %v3477_v21  ;;  %v3008_v58 = vmul.f32 %v12575_v47, %v1490_v44  ;;  %v1500_v25 = vadd.f32 %v11022_v17, %v10866_v52  ;;  %v12576_v21 = vld [vmem:[#allocation40_spill] sm:$0xff]  ;;  %v1505_v11 = vadd.f32 %v11022_v17, %v10938_v35  ;;  %v8058_v52 = vld [vmem:[%s12260_s2 + $0xd0] sm:$0xff]  ;;  %7970 = vrcp.f32 %v2438_v6 }
 0x21d   :  { %v11053_v26 = vpop.permute.xlu1 %4944  ;;  %7451 = vmatprep.subr.msk.mxu1 %vm173_vm0, %v3476_v18  ;;  %5348 = vperm.xlu1 %7508, %v8057_v5   ;;  %v3009_v36 = vmul.f32 %v12576_v21, %v1495_v55  ;;  %v7957_v44 = vpop.eup %7956  ;;  %v2437_v56 = vadd.f32 1.0, %v7953_v46  ;;  %v2634_v7 = vmul.f32 %v7955_v4, %v10752_v28  ;;  %v3475_v59 = vmul.f32 %v12577_v38, %v2635_v60  ;;  %v12582_v6 = vld [vmem:[#allocation39_spill] sm:$0xff] }
 0x21e   :  { %12572 = vst [vmem:[#allocation90_spill] sm:$0xff] %v11053_v26  ;;  %5360 = vperm.xlu0 %7509, %v8058_v52   ;;  %7380 = vmatmul.mubr.msk.f32.gmra.mxu1 %vm173_vm0, %v2994_v33  ;;  %v7959_v55 = vpop.eup %7958  ;;  %v2996_v15 = vmul.f32 %v12579_v9, %v1430_v19  ;;  %v1440_v47 = vadd.f32 %v11022_v17, %v10700_v30  ;;  %v12580_v33 = vld [vmem:[#allocation28_spill] sm:$0xff]  ;;  %v8059_v30 = vld [vmem:[%s12260_s2 + $0xc8] sm:$0xff]  ;;  %7972 = vpow2.f32 %v6557_v14  ;;  %v12584_v14 = vld [vmem:[#allocation115_spill] sm:$0xff] }
 0x21f   :  { %v11062_v10 = vpop.permute.xlu0 %4948  ;;  %7433 = vmatmul.mubr.msk.f32.gmra.mxu0 %vm173_vm0, %v3008_v58  ;;  %7382 = vmatprep.mubr.msk.f32.mxu1 %vm173_vm0, %v2995_v49  ;;  %v2997_v5 = vmul.f32 %v12580_v33, %v1435_v3  ;;  %v1445_v46 = vadd.f32 %v11022_v17, %v10745_v41  ;;  %v3010_v60 = vmul.f32 %v12582_v6, %v1500_v25  ;;  %v12583_v19 = vld [vmem:[#allocation42_spill] sm:$0xff]  ;;  %v11107_v49 = vpop.f32.mrf.mxu1  ;;  %v2436_v25 = vadd.f32 1.0, %v7957_v44  ;;  %v12586_v52 = vld [vmem:[#allocation27_spill] sm:$0xff]  ;;  %v12688_v26 = vld [vmem:[#allocation60_spill] sm:$0xff] }
 0x220   :  { %7435 = vmatprep.mubr.msk.f32.mxu0 %vm173_vm0, %v3009_v36  ;;  %7452 = vmatpush3.xpose.msk.msra.mxu1 %vm173_vm0, %v3476_v18  ;;  %v1510_v4 = vadd.f32 %v11022_v17, %v10914_v32  ;;  %v6556_v18 = vmul.f32 -1.442695, %v11016_v22  ;;  %v3011_v3 = vmul.f32 %v12583_v19, %v1505_v11  ;;  %v1515_v41 = vadd.f32 %v11022_v17, %v11006_v31  ;;  %v8060_v32 = vld [vmem:[%s12260_s2 + $0xe0] sm:$0xff]  ;;  %v7961_v58 = vpop.eup %7960 }
 0x221   :  { %v11084_v35 = vpop.permute.xlu1 %4952  ;;  %7453 = vmatprep.subr.msk.mxu1 %vm173_vm0, %v3475_v59  ;;  %5356 = vperm.xlu1 %7508, %v8059_v30   ;;  %7974 = vrcp.f32 %v2437_v56  ;;  %v3474_v21 = vmul.f32 %v12584_v14, %v2634_v7  ;;  %v2633_v36 = vmul.f32 %v7959_v55, %v10780_v45  ;;  %v7963_v11 = vpop.eup %7962  ;;  %v2998_v38 = vmul.f32 %v12586_v52, %v1440_v47  ;;  %v12588_v56 = vld [vmem:[#allocation30_spill] sm:$0xff]  ;;  %v12589_v55 = vld [vmem:[#allocation41_spill] sm:$0xff] }
 0x222   :  { %12578 = vst [vmem:[#allocation16_spill] sm:$0xff] %v11084_v35  ;;  %5368 = vperm.xlu0 %7509, %v8060_v32   ;;  %7383 = vmatmul.mubr.msk.f32.gmra.mxu1 %vm173_vm0, %v2996_v15  ;;  %v1450_v9 = vadd.f32 %v11022_v17, %v10729_v12  ;;  %v1455_v44 = vadd.f32 %v11022_v17, %v10772_v27  ;;  %v8061_v12 = vld [vmem:[%s12260_s2 + $0xd8] sm:$0xff]  ;;  %7976 = vpow2.f32 %v6556_v18  ;;  %v2435_v6 = vadd.f32 1.0, %v7961_v58  ;;  %v12593_v19 = vld [vmem:[#allocation29_spill] sm:$0xff]  ;;  %v12597_v52 = vld [vmem:[#allocation46_spill] sm:$0xff] }
 0x223   :  { %v11092_v28 = vpop.permute.xlu0 %4956  ;;  %7436 = vmatmul.mubr.msk.f32.gmra.mxu0 %vm173_vm0, %v3010_v60  ;;  %7385 = vmatprep.mubr.msk.f32.mxu1 %vm173_vm0, %v2997_v5  ;;  %v2999_v7 = vmul.f32 %v12588_v56, %v1445_v46  ;;  %v3012_v15 = vmul.f32 %v12589_v55, %v1510_v4  ;;  %v1520_v33 = vadd.f32 %v11022_v17, %v10968_v23  ;;  %v12590_v27 = vld [vmem:[#allocation44_spill] sm:$0xff]  ;;  %v1534_v5 = vpop.f32.mrf.mxu1  ;;  %v8062_v46 = vld [vmem:[%s12260_s2 + $0xf0] sm:$0xff]  ;;  %7978 = vrcp.f32 %v2436_v25 }
 0x224   :  { %12581 = vst [vmem:[#allocation18_spill] sm:$0xff] %v11092_v28  ;;  %7438 = vmatprep.mubr.msk.f32.mxu0 %vm173_vm0, %v3011_v3  ;;  %7454 = vmatpush3.xpose.msk.msra.mxu1 %vm173_vm0, %v3475_v59  ;;  %v3013_v47 = vmul.f32 %v12590_v27, %v1515_v41  ;;  %v1525_v59 = vadd.f32 %v11022_v17, %v1524_v16  ;;  %v7965_v23 = vpop.eup %7964  ;;  %v12591_v4 = vld [vmem:[#allocation116_spill] sm:$0xff]  ;;  %v12596_v58 = vld [vmem:[#allocation43_spill] sm:$0xff]  ;;  %7980 = vrcp.f32 %v2435_v6 }
 0x225   :  { %v11117_v31 = vpop.permute.xlu1 %4960  ;;  %7455 = vmatprep.subr.msk.mxu1 %vm173_vm0, %v3474_v21  ;;  %5364 = vperm.xlu1 %7508, %v8061_v12   ;;  %v2632_v60 = vmul.f32 %v7963_v11, %v10803_v53  ;;  %v3473_v30 = vmul.f32 %v12591_v4, %v2633_v36  ;;  %v3000_v3 = vmul.f32 %v12593_v19, %v1450_v9  ;;  %v12594_v32 = vld [vmem:[#allocation32_spill] sm:$0xff] }
 0x226   :  { %12585 = vst [vmem:[#allocation15_spill] sm:$0xff] %v11117_v31  ;;  %5376 = vperm.xlu0 %7509, %v8062_v46   ;;  %7386 = vmatmul.mubr.msk.f32.gmra.mxu1 %vm173_vm0, %v2998_v38  ;;  %v7967_v18 = vpop.eup %7966  ;;  %v1460_v41 = vadd.f32 %v11022_v17, %v10757_v54  ;;  %v3001_v14 = vmul.f32 %v12594_v32, %v1455_v44  ;;  %v8063_v54 = vld [vmem:[%s12260_s2 + $0xe8] sm:$0xff]  ;;  %v12598_v44 = vld [vmem:[#allocation111_spill] sm:$0xff]  ;;  %v8066_v6 = vld [vmem:[%s12260_s2 + $0x160] sm:$0xff] }
 0x227   :  { %v11126_v45 = vpop.permute.xlu0 %4964  ;;  %7439 = vmatmul.mubr.msk.f32.gmra.mxu0 %vm173_vm0, %v3012_v15  ;;  %7388 = vmatprep.mubr.msk.f32.mxu1 %vm173_vm0, %v2999_v7  ;;  %v3014_v25 = vmul.f32 %v12596_v58, %v1520_v33  ;;  %v1530_v36 = vadd.f32 %v11022_v17, %v11047_v61  ;;  %v1535_v11 = vadd.f32 %v11022_v17, %v1534_v5  ;;  %v7969_v9 = vpop.eup %7968  ;;  %v2434_v61 = vadd.f32 1.0, %v7965_v23  ;;  %v12600_v33 = vld [vmem:[#allocation31_spill] sm:$0xff]  ;;  %v12603_v5 = vld [vmem:[#allocation48_spill] sm:$0xff]  ;;  %v8068_v58 = vld [vmem:[%s12260_s2 + $0x168] sm:$0xff] }
 0x228   :  { %12587 = vst [vmem:[#allocation69_spill] sm:$0xff] %v11126_v45  ;;  %7441 = vmatprep.mubr.msk.f32.mxu0 %vm173_vm0, %v3013_v47  ;;  %7456 = vmatpush3.xpose.msk.msra.mxu1 %vm173_vm0, %v3474_v21  ;;  %v3015_v38 = vmul.f32 %v12597_v52, %v1525_v59  ;;  %v8064_v21 = vld [vmem:[%s12260_s2 + $0x158] sm:$0xff]  ;;  %v3472_v56 = vmul.f32 %v12598_v44, %v2632_v60  ;;  %v12602_v47 = vld [vmem:[#allocation45_spill] sm:$0xff]  ;;  %v12281_v23 = vlaneseq  ;;  %v2433_v4 = vadd.f32 1.0, %v7969_v9 }
 0x229   :  { %v11146_v16 = vpop.permute.xlu1 %4968  ;;  %7457 = vmatprep.subr.msk.mxu1 %vm173_vm0, %v3473_v30  ;;  %5372 = vperm.xlu1 %7508, %v8063_v54   ;;  %v2631_v7 = vmul.f32 %v7967_v18, %v10832_v29  ;;  %v7971_v15 = vpop.eup %7970  ;;  %v3002_v12 = vmul.f32 %v12600_v33, %v1460_v41  ;;  %v3016_v59 = vmul.f32 %v12602_v47, %v1530_v36  ;;  %v8065_v29 = vld [vmem:[%s12260_s2 + $0x150] sm:$0xff]  ;;  %7982 = vrcp.f32 %v2434_v61  ;;  %v12604_v18 = vld [vmem:[#allocation112_spill] sm:$0xff]  ;;  %v11219_v61 = vld [vmem:[%s12261_s3 + $0x8] sm:$0x7] }
 0x22a   :  { %12592 = vst [vmem:[#allocation85_spill] sm:$0xff] %v11146_v16  ;;  %5428 = vperm.xlu0 %7509, %v8064_v21   ;;  %7389 = vmatmul.mubr.msk.f32.gmra.mxu1 %vm173_vm0, %v3000_v3  ;;  %v3017_v46 = vmul.f32 %v12603_v5, %v1535_v11  ;;  %7984 = vrcp.f32 %v2433_v4  ;;  %v12608_v11 = vld [vmem:[#allocation107_spill] sm:$0xff]  ;;  %12611 = vst [vmem:[#allocation81_spill] sm:$0xff] %v11219_v61  ;;  %v8069_v44 = vld [vmem:[%s12260_s2 + $0x100] sm:$0xff]  ;;  %v11233_v47 = vpop.f32.mrf.mxu1 }
 0x22b   :  { %v11154_v53 = vpop.permute.xlu0 %4972  ;;  %7442 = vmatmul.mubr.msk.f32.gmra.mxu0 %vm173_vm0, %v3014_v25  ;;  %7391 = vmatprep.mubr.msk.f32.mxu1 %vm173_vm0, %v3001_v14  ;;  %v7973_v60 = vpop.eup %7972  ;;  %v3471_v19 = vmul.f32 %v12604_v18, %v2631_v7  ;;  %v8067_v14 = vld [vmem:[%s12260_s2 + $0xf8] sm:$0xff] }
 0x22c   :  { %12595 = vst [vmem:[#allocation20_spill] sm:$0xff] %v11154_v53  ;;  %7444 = vmatprep.mubr.msk.f32.mxu0 %vm173_vm0, %v3015_v38  ;;  %7458 = vmatpush3.xpose.msk.msra.mxu1 %vm173_vm0, %v3473_v30  ;;  %v2630_v30 = vmul.f32 %v7971_v15, %v10859_v13  ;;  %v11204_v13 = vshrl.u32 %v12281_v23, 7  ;;  %v2432_v36 = vadd.f32 1.0, %v7973_v60  ;;  %v12612_v33 = vld [vmem:[#allocation108_spill] sm:$0xff]  ;;  %v12616_v60 = vld [vmem:[#allocation91_spill] sm:$0xff] }
 0x22d   :  { %v11173_v55 = vpop.permute.xlu1 %4976  ;;  %7459 = vmatprep.subr.msk.mxu1 %vm173_vm0, %v3472_v56  ;;  %5424 = vperm.xlu1 %7508, %v8065_v29   ;;  %v8072_v18 = vld [vmem:[%s12260_s2 + $0x178] sm:$0xff] }
 0x22e   :  { %12599 = vst [vmem:[#allocation17_spill] sm:$0xff] %v11173_v55  ;;  %5432 = vperm.xlu0 %7509, %v8066_v6   ;;  %7392 = vmatmul.mubr.msk.f32.gmra.mxu1 %vm173_vm0, %v3002_v12  ;;  %v7975_v41 = vpop.eup %7974  ;;  %12607 = vst [vmem:[#allocation67_spill] sm:$0xff] %v11204_v13  ;;  %v3470_v54 = vmul.f32 %v12608_v11, %v2630_v30  ;;  %7986 = vrcp.f32 %v2432_v36  ;;  %v11242_v29 = vsub.s32 1, %v11204_v13  ;;  %v11264_v36 = vpop.f32.mrf.mxu1  ;;  %v12665_v53 = vld [vmem:[#allocation56_spill] sm:$0xff] }
 0x22f   :  { %v11178_v27 = vpop.permute.xlu0 %4980  ;;  %7445 = vmatmul.mubr.msk.f32.gmra.mxu0 %vm173_vm0, %v3016_v59  ;;  %7479 = vmatprep.mubr.msk.f32.mxu1 %vm173_vm0, %v3017_v46  ;;  %v7977_v25 = vpop.eup %7976  ;;  %v2629_v52 = vmul.f32 %v7975_v41, %v10886_v57  ;;  %v11226_v57 = vsub.s32 0, %v11204_v13  ;;  %v12685_v35 = vld [vmem:[#allocation156_spill] sm:$0xff] }
 0x230   :  { %12601 = vst [vmem:[#allocation70_spill] sm:$0xff] %v11178_v27  ;;  %7460 = vmatpush3.xpose.msk.msra.mxu1 %vm173_vm0, %v3472_v56  ;;  %v7979_v21 = vpop.eup %7978  ;;  %v8070_v56 = vld [vmem:[%s12260_s2 + $0x170] sm:$0xff]  ;;  %v2431_v7 = vadd.f32 1.0, %v7977_v25  ;;  %v11255_v30 = vrot.slane %v11219_v61, %v11242_v29 }
 0x231   :  { %v11194_v3 = vpop.permute.xlu1 %4984  ;;  %7461 = vmatprep.subr.msk.mxu1 %vm173_vm0, %v3471_v19  ;;  %5380 = vperm.xlu1 %7508, %v8067_v14   ;;  %v2628_v15 = vmul.f32 %v7979_v21, %v10910_v42  ;;  %v3469_v12 = vmul.f32 %v12612_v33, %v2629_v52  ;;  %v7981_v5 = vpop.eup %7980  ;;  %v11239_v46 = vrot.slane %v11219_v61, %v11226_v57  ;;  %v8071_v42 = vld [vmem:[%s12260_s2 + $0x108] sm:$0xff] }
 0x232   :  { %12605 = vst [vmem:[#allocation86_spill] sm:$0xff] %v11194_v3  ;;  %5436 = vperm.xlu0 %7509, %v8068_v58   ;;  %12617 = vst [vmem:[#allocation34_spill] sm:$0xff] %v11255_v30  ;;  %7988 = vrcp.f32 %v2431_v7  ;;  %v2627_v14 = vmul.f32 %v7981_v5, %v10934_v48  ;;  %v12619_v58 = vld [vmem:[#allocation75_spill] sm:$0xff]  ;;  %v8074_v7 = vld [vmem:[%s12260_s2 + $0x180] sm:$0xff] }
 0x233   :  { %v11197_v32 = vpop.permute.xlu0 %4988  ;;  %12614 = vst [vmem:[#allocation82_spill] sm:$0xff] %v11239_v46  ;;  %v4775_v4 = vsub.f32 %v12616_v60, %v11239_v46  ;;  %v4776_v25 = vsub.f32 %v12619_v58, %v11239_v46  ;;  %v11278_v60 = vpop.f32.mrf.mxu1 }
 0x234   :  { %12606 = vst [vmem:[#allocation83_spill] sm:$0xff] %v11197_v32  ;;  %7462 = vmatpush3.xpose.msk.msra.mxu1 %vm173_vm0, %v3471_v19  ;;  %v12618_v19 = vld [vmem:[#allocation105_spill] sm:$0xff] }
 0x235   :  { %v11211_v38 = vpop.permute.xlu1 %4992  ;;  %7463 = vmatprep.subr.msk.mxu1 %vm173_vm0, %v3470_v54  ;;  %5384 = vperm.xlu1 %7508, %v8069_v44   ;;  %v3468_v41 = vmul.f32 %v12618_v19, %v2628_v15  ;;  %v8073_v44 = vld [vmem:[%s12260_s2 + $0x110] sm:$0xff] }
 0x236   :  { %12609 = vst [vmem:[#allocation84_spill] sm:$0xff] %v11211_v38  ;;  %5440 = vperm.xlu0 %7509, %v8070_v56   ;;  %v4831_v56 = vmul.f32 %v4775_v4, %v4775_v4 }
 0x237   :  { %v11214_v9 = vpop.permute.xlu0 %4996 }
 0x238   :  { %12610 = vst [vmem:[#allocation68_spill] sm:$0xff] %v11214_v9  ;;  %7464 = vmatpush3.xpose.msk.msra.mxu1 %vm173_vm0, %v3470_v54  ;;  %v7983_v54 = vpop.eup %7982 }
 0x239   :  { %v11235_v59 = vpop.permute.xlu1 %5000  ;;  %7465 = vmatprep.subr.msk.mxu1 %vm173_vm0, %v3469_v12  ;;  %5388 = vperm.xlu1 %7508, %v8071_v42   ;;  %v2626_v33 = vmul.f32 %v7983_v54, %v10963_v37  ;;  %v4832_v42 = vmul.f32 %v4776_v25, %v4776_v25  ;;  %v7985_v58 = vpop.eup %7984  ;;  %v8075_v37 = vld [vmem:[%s12260_s2 + $0x118] sm:$0xff]  ;;  %v8076_v25 = vld [vmem:[%s12260_s2 + $0x188] sm:$0xff] }
 0x23a   :  { %12613 = vst [vmem:[#allocation65_spill] sm:$0xff] %v11235_v59  ;;  %5444 = vperm.xlu0 %7509, %v8072_v18   ;;  %v12625_v54 = vld [vmem:[#allocation103_spill] sm:$0xff] }
 0x23b   :  { %v11245_v6 = vpop.permute.xlu0 %5004 }
 0x23c   :  { %12615 = vst [vmem:[#allocation66_spill] sm:$0xff] %v11245_v6  ;;  %7466 = vmatpush3.xpose.msk.msra.mxu1 %vm173_vm0, %v3469_v12  ;;  %v12620_v12 = vld [vmem:[#allocation106_spill] sm:$0xff] }
 0x23d   :  { %v5009_v11 = vpop.permute.xlu1 %5008  ;;  %7467 = vmatprep.subr.msk.mxu1 %vm173_vm0, %v3468_v41  ;;  %5392 = vperm.xlu1 %7508, %v8073_v44   ;;  %v3467_v5 = vmul.f32 %v12620_v12, %v2627_v14  ;;  %v7987_v44 = vpop.eup %7986 }
 0x23e   :  { %v5127_v52 = vsub.f32 %v5009_v11, %v11255_v30  ;;  %5448 = vperm.xlu0 %7509, %v8074_v7  }
 0x23f   :  { %v5013_v21 = vpop.permute.xlu0 %5012 }
 0x240   :  { %v5128_v48 = vsub.f32 %v5013_v21, %v11255_v30  ;;  %v5183_v15 = vmul.f32 %v5127_v52, %v5127_v52  ;;  %7468 = vmatpush3.xpose.msk.msra.mxu1 %vm173_vm0, %v3468_v41  ;;  %v3466_v41 = vmul.f32 %v12625_v54, %v2626_v33  ;;  %v2625_v52 = vmul.f32 %v7985_v58, %v11000_v62  ;;  %v1554_v21 = vpop.f32.mrf.mxu1  ;;  %v12628_v33 = vld [vmem:[#allocation104_spill] sm:$0xff] }
 0x241   :  { %v11280_v19 = vpop.permute.xlu1 %5016  ;;  %7469 = vmatprep.subr.msk.mxu1 %vm173_vm0, %v3467_v5  ;;  %5396 = vperm.xlu1 %7508, %v8075_v37   ;;  %v2624_v62 = vmul.f32 %v7987_v44, %v10972_v40  ;;  %v8080_v58 = vld [vmem:[%s12260_s2 + $0x198] sm:$0xff]  ;;  %v8081_v44 = vld [vmem:[%s12260_s2 + $0x130] sm:$0xff] }
 0x242   :  { %v5184_v18 = vmul.f32 %v5128_v48, %v5128_v48  ;;  %12621 = vst [vmem:[#allocation63_spill] sm:$0xff] %v11280_v19  ;;  %v11285_v11 = vadd.f32 %v5183_v15, %v4831_v56  ;;  %5452 = vperm.xlu0 %7509, %v8076_v25   ;;  %v8077_v56 = vld [vmem:[%s12260_s2 + $0x120] sm:$0xff]  ;;  %v8078_v15 = vld [vmem:[%s12260_s2 + $0x190] sm:$0xff]  ;;  %v3465_v12 = vmul.f32 %v12628_v33, %v2625_v52 }
 0x243   :  { %v11283_v4 = vpop.permute.xlu0 %5020  ;;  %v12630_v37 = vld [vmem:[#allocation100_spill] sm:$0xff] }
 0x244   :  { %12622 = vst [vmem:[#allocation79_spill] sm:$0xff] %v11283_v4  ;;  %12623 = vst [vmem:[#allocation95_spill] sm:$0xff] %v11285_v11  ;;  %v11291_v14 = vadd.f32 %v5184_v18, %v4832_v42  ;;  %7470 = vmatpush3.xpose.msk.msra.mxu1 %vm173_vm0, %v3467_v5  ;;  %v11312_v5 = vpop.f32.mrf.mxu1  ;;  %v7989_v42 = vpop.eup %7988  ;;  %v8079_v18 = vld [vmem:[%s12260_s2 + $0x128] sm:$0xff]  ;;  %v3464_v25 = vmul.f32 %v12630_v37, %v2624_v62  ;;  %v11342_v33 = vld [vmem:[%s12261_s3] sm:$0x7]  ;;  %v1545_v37 = vadd.f32 %v11022_v17, %v11264_v36 }
 0x245   :  { %v11299_v48 = vpop.permute.xlu1 %5024  ;;  %7471 = vmatprep.subr.msk.mxu1 %vm173_vm0, %v3466_v41  ;;  %5400 = vperm.xlu1 %7508, %v8077_v56   ;;  %v2623_v54 = vmul.f32 %v7989_v42, %v11016_v22  ;;  %v8082_v56 = vld [vmem:[%s12260_s2 + $0x1a0] sm:$0xff]  ;;  %v1540_v42 = vadd.f32 %v11022_v17, %v11107_v49  ;;  %v4722_v49 = vrot.slane %v11342_v33, %v11226_v57 }
 0x246   :  { %12624 = vst [vmem:[#allocation99_spill] sm:$0xff] %v11291_v14  ;;  %12626 = vst [vmem:[#allocation80_spill] sm:$0xff] %v11299_v48  ;;  %5456 = vperm.xlu0 %7509, %v8078_v15   ;;  %v1564_v52 = vpop.f32.mrf.mxu1  ;;  %v12632_v15 = vld [vmem:[#allocation102_spill] sm:$0xff]  ;;  %v8085_v36 = vld [vmem:[%s12260_s2 + $0x140] sm:$0xff] }
 0x247   :  { %v11305_v7 = vpop.permute.xlu0 %5028  ;;  %v3463_v62 = vmul.f32 %v12632_v15, %v2623_v54  ;;  %v1550_v15 = vadd.f32 %v11022_v17, %v11233_v47  ;;  %v8086_v14 = vld [vmem:[%s12260_s2 + $0x1b0] sm:$0xff]  ;;  %v12658_v19 = vld [vmem:[#allocation136_spill] sm:$0xff] }
 0x248   :  { %12627 = vst [vmem:[#allocation64_spill] sm:$0xff] %v11305_v7  ;;  %7472 = vmatpush3.xpose.msk.msra.mxu1 %vm173_vm0, %v3466_v41  ;;  %v11337_v22 = vpop.f32.mrf.mxu1  ;;  %v4748_v55 = vsub.f32 %v12658_v19, %v4722_v49  ;;  %v12662_v19 = vld [vmem:[#allocation53_spill] sm:$0xff] }
 0x249   :  { %7473 = vmatprep.subr.msk.mxu1 %vm173_vm0, %v3465_v12  ;;  %5404 = vperm.xlu1 %7508, %v8079_v18   ;;  %v11322_v40 = vpop.permute.xlu1 %5032  ;;  %v8083_v18 = vld [vmem:[%s12260_s2 + $0x138] sm:$0xff] }
 0x24a   :  { %5460 = vperm.xlu0 %7509, %v8080_v58   ;;  %12629 = vst [vmem:[#allocation89_spill] sm:$0xff] %v11322_v40  ;;  %v1574_v54 = vpop.f32.mrf.mxu1  ;;  %v12652_v40 = vld [vmem:[#allocation51_spill] sm:$0xff] }
 0x24b   :  { %v11326_v41 = vpop.permute.xlu0 %5036 }
 0x24c   :  { %12631 = vst [vmem:[#allocation77_spill] sm:$0xff] %v11326_v41  ;;  %7474 = vmatpush3.xpose.msk.msra.mxu1 %vm173_vm0, %v3465_v12  ;;  %v11377_v11 = vpop.f32.mrf.mxu1  ;;  %v12651_v41 = vld [vmem:[#allocation132_spill] sm:$0xff] }
 0x24d   :  { %7475 = vmatprep.subr.msk.mxu1 %vm173_vm0, %v3464_v25  ;;  %5408 = vperm.xlu1 %7508, %v8081_v44   ;;  %v11345_v12 = vpop.permute.xlu1 %5040  ;;  %v12635_v44 = vld [vmem:[#allocation47_spill] sm:$0xff] }
 0x24e   :  { %5464 = vperm.xlu0 %7509, %v8082_v56   ;;  %12633 = vst [vmem:[#allocation61_spill] sm:$0xff] %v11345_v12  ;;  %v3018_v56 = vmul.f32 %v12635_v44, %v1540_v42  ;;  %v12638_v42 = vld [vmem:[#allocation124_spill] sm:$0xff]  ;;  %v1565_v12 = vadd.f32 %v11022_v17, %v1564_v52  ;;  %v12648_v52 = vld [vmem:[#allocation130_spill] sm:$0xff] }
 0x24f   :  { %v11353_v58 = vpop.permute.xlu0 %5044  ;;  %v4736_v44 = vsub.f32 %v12638_v42, %v4722_v49  ;;  %v11393_v42 = vld [vmem:[%s12261_s3 + $0xc] sm:$0x7] }
 0x250   :  { %7476 = vmatpush3.xpose.msk.msra.mxu1 %vm173_vm0, %v3464_v25  ;;  %12634 = vst [vmem:[#allocation158_spill] sm:$0xff] %v11353_v58  ;;  %v8084_v25 = vld [vmem:[%s12260_s2 + $0x1a8] sm:$0xff]  ;;  %v12646_v58 = vld [vmem:[#allocation52_spill] sm:$0xff] }
 0x251   :  { %7477 = vmatprep.subr.msk.mxu1 %vm173_vm0, %v3463_v62  ;;  %5412 = vperm.xlu1 %7508, %v8083_v18   ;;  %v12636_v18 = vld [vmem:[#allocation50_spill] sm:$0xff]  ;;  %v11406_v3 = vmul.f32 %v4736_v44, %v4736_v44 }
 0x252   :  { %5468 = vperm.xlu0 %7509, %v8084_v25   ;;  %v3019_v23 = vmul.f32 %v12636_v18, %v1545_v37  ;;  %v1555_v25 = vadd.f32 %v11022_v17, %v1554_v21  ;;  %v12641_v37 = vld [vmem:[#allocation126_spill] sm:$0xff]  ;;  %v12642_v21 = vld [vmem:[#allocation127_spill] sm:$0xff] }
 0x253   :  { %v11380_v47 = vpop.permute.xlu0 %5052  ;;  %v4738_v18 = vsub.f32 %v12641_v37, %v4722_v49  ;;  %v4737_v59 = vsub.f32 %v12642_v21, %v4722_v49  ;;  %v8087_v37 = vld [vmem:[%s12260_s2 + $0x148] sm:$0xff]  ;;  %v12644_v21 = vld [vmem:[#allocation128_spill] sm:$0xff] }
 0x254   :  { %7478 = vmatpush3.xpose.msk.msra.mxu1 %vm173_vm0, %v3463_v62  ;;  %v11374_v62 = vpop.permute.xlu1 %5048  ;;  %12639 = vst [vmem:[#allocation78_spill] sm:$0xff] %v11380_v47  ;;  %v4740_v9 = vsub.f32 %v12644_v21, %v4722_v49  ;;  %v3021_v32 = vmul.f32 %v12646_v58, %v1555_v25  ;;  %v4742_v25 = vsub.f32 %v12648_v52, %v4722_v49  ;;  %v12654_v52 = vld [vmem:[#allocation54_spill] sm:$0xff] }
 0x255   :  { %5416 = vperm.xlu1 %7508, %v8085_v36   ;;  %12637 = vst [vmem:[#allocation62_spill] sm:$0xff] %v11374_v62  ;;  %v12640_v36 = vld [vmem:[#allocation125_spill] sm:$0xff]  ;;  %v11421_v58 = vmul.f32 %v4737_v59, %v4737_v59  ;;  %v8088_v59 = vld [vmem:[%s12260_s2 + $0x1b8] sm:$0xff]  ;;  %s8114_s2 = smov [#allocation2]  }
 0x256   :  { %5472 = vperm.xlu0 %7509, %v8086_v14   ;;  %v4735_v6 = vsub.f32 %v12640_v36, %v4722_v49  ;;  %v11388_v14 = vld [vmem:[%s12261_s3 + $0x4] sm:$0x7]  ;;  %v1560_v36 = vadd.f32 %v11022_v17, %v11278_v60  ;;  %v11414_v60 = vrot.slane %v11393_v42, %v11226_v57  ;;  %s6265_s20 = sshll.u32 %s8114_s2, 4  ;;  %s6266_s20 = int_to_ptr.vmem [resolvable:$true] %s6265_s20 }
 0x257   :  { %7480 = vmatmul.mubr.msk.f32.vlgmr.msra.gmra.mxu1 %vm173_vm0, %v3018_v56  ;;  %v12643_v56 = vld [vmem:[#allocation49_spill] sm:$0xff]  ;;  %s8089_s21 = scalar_lea.vmem %s6266_s20, 64  ;;  %p8094_p1 = scmp.lt.s32.totalorder %s6266_s20, %s6266_s20 }
 0x258   :  { %7482 = vmatprep.mubr.msk.f32.mxu1 %vm173_vm0, %v3019_v23  ;;  %v3020_v47 = vmul.f32 %v12643_v56, %v1550_v15  ;;  %v12645_v62 = vld [vmem:[#allocation129_spill] sm:$0xff]  ;;  %v11410_v23 = vrot.slane %v11388_v14, %v11226_v57  ;;  %12647 = vst [vmem:[#allocation161_spill] sm:$0xff] %v11414_v60  ;;  %v1584_v15 = vpop.f32.mrf.mxu1  ;;  %v11417_v56 = vmul.f32 %v4735_v6, %v4735_v6  ;;  %v11425_v44 = vpop.permute.xlu1 %5056  ;;  %p8090_p0 = scmp.ne.s32.totalorder %s6266_s20, %s8089_s21  ;;  %p8095_p2 = scmp.lt.s32.totalorder %s8089_s21, %s8089_s21 }
 0x259   :  { %5420 = vperm.xlu1 %7508, %v8087_v37   ;;  %v4739_v38 = vsub.f32 %v12645_v62, %v4722_v49  ;;  %v11419_v62 = vmul.f32 %v4738_v18, %v4738_v18  ;;  %12649 = vst [vmem:[#allocation98_spill] sm:$0xff] %v11425_v44  ;;  %v12650_v37 = vld [vmem:[#allocation131_spill] sm:$0xff]  ;;  %v4744_v57 = vsub.f32 %v12651_v41, %v4722_v49  ;;  %v12655_v44 = vld [vmem:[#allocation133_spill] sm:$0xff] }
 0x25a   :  { %v4741_v21 = vsub.f32 %v12650_v37, %v4722_v49  ;;  %v3022_v7 = vmul.f32 %v12652_v40, %v1560_v36  ;;  %v1570_v6 = vadd.f32 %v11022_v17, %v11312_v5  ;;  %v11437_v18 = vmul.f32 %v4740_v9, %v4740_v9  ;;  %v12656_v36 = vld [vmem:[#allocation134_spill] sm:$0xff]  ;;  %v12657_v5 = vld [vmem:[#allocation135_spill] sm:$0xff]  ;;  %v7183_v4 = vpop.f32.mrf.mxu1  ;;  %v12659_v9 = vld [vmem:[#allocation137_spill] sm:$0xff]  ;;  %p8096_p3 = por %p8095_p2, %p8094_p1 }
 0x25b   :  { %7483 = vmatmul.mubr.msk.f32.gmra.mxu1 %vm173_vm0, %v3020_v47  ;;  %v11435_v47 = vpop.permute.xlu0 %5060  ;;  %v3023_v37 = vmul.f32 %v12654_v52, %v1565_v12  ;;  %v1575_v41 = vadd.f32 %v11022_v17, %v1574_v54  ;;  %v4743_v40 = vsub.f32 %v12655_v44, %v4722_v49  ;;  %v4746_v27 = vsub.f32 %v12656_v36, %v4722_v49  ;;  %v12661_v54 = vld [vmem:[#allocation139_spill] sm:$0xff] }
 0x25c   :  { %7485 = vmatprep.mubr.msk.f32.mxu1 %vm173_vm0, %v3021_v32  ;;  %12653 = vst [vmem:[#allocation152_spill] sm:$0xff] %v11435_v47  ;;  %v11439_v32 = vmul.f32 %v4739_v38, %v4739_v38  ;;  %v4745_v48 = vsub.f32 %v12657_v5, %v4722_v49  ;;  %v4747_v38 = vsub.f32 %v12659_v9, %v4722_v49  ;;  %v12660_v47 = vld [vmem:[#allocation138_spill] sm:$0xff]  ;;  %v12664_v9 = vld [vmem:[#allocation141_spill] sm:$0xff]  ;;  %p8097_p4 = pnand %p8096_p3, %p8090_p0 }
 0x25d   :  { %5476 = vperm.xlu1 %7508, %v8088_v59   ;;  %v11448_v59 = vmul.f32 %v4742_v25, %v4742_v25  ;;  %v4750_v12 = vsub.f32 %v12660_v47, %v11410_v23  ;;  %v4749_v52 = vsub.f32 %v12661_v54, %v11410_v23  ;;  %v11456_v44 = vmul.f32 %v4741_v21, %v4741_v21  ;;  %v12663_v25 = vld [vmem:[#allocation140_spill] sm:$0xff] }
 0x25e   :  { %v11458_v36 = vmul.f32 %v4744_v57, %v4744_v57  ;;  %v3024_v5 = vmul.f32 %v12662_v19, %v1570_v6  ;;  %v4752_v49 = vsub.f32 %v12663_v25, %v11410_v23  ;;  %v4751_v47 = vsub.f32 %v12664_v9, %v11410_v23 }
 0x25f   :  { %7486 = vmatmul.mubr.msk.f32.gmra.mxu1 %vm173_vm0, %v3022_v7  ;;  %v1580_v7 = vadd.f32 %v11022_v17, %v11337_v22  ;;  %v3025_v16 = vmul.f32 %v12665_v53, %v1575_v41  ;;  %v1585_v54 = vadd.f32 %v11022_v17, %v1584_v15  ;;  %v11471_v21 = vmul.f32 %v4743_v40, %v4743_v40  ;;  %v1594_v22 = vpop.f32.mrf.mxu1  ;;  %v12669_v41 = vld [vmem:[#allocation142_spill] sm:$0xff] }
 0x260   :  { %7488 = vmatprep.mubr.msk.f32.mxu1 %vm173_vm0, %v3023_v37  ;;  %v11473_v57 = vmul.f32 %v4746_v27, %v4746_v27  ;;  %v11475_v6 = vmul.f32 %v4745_v48, %v4745_v48  ;;  %v11477_v19 = vmul.f32 %v4748_v55, %v4748_v55  ;;  %v11482_v9 = vmul.f32 %v4747_v38, %v4747_v38  ;;  %v12670_v27 = vld [vmem:[#allocation143_spill] sm:$0xff]  ;;  %v12671_v48 = vld [vmem:[#allocation144_spill] sm:$0xff] }
 0x261   :  { %v11484_v53 = vmul.f32 %v4750_v12, %v4750_v12  ;;  %v11486_v15 = vmul.f32 %v4749_v52, %v4749_v52  ;;  %v4754_v40 = vsub.f32 %v12669_v41, %v11410_v23  ;;  %v4753_v55 = vsub.f32 %v12670_v27, %v11410_v23  ;;  %v12677_v27 = vld [vmem:[#allocation146_spill] sm:$0xff] }
 0x262   :  { %v11469_v37 = vpop.permute.xlu1 %5064  ;;  %v11480_v25 = vpop.permute.xlu0 %5068  ;;  %12668 = vst [vmem:[#allocation19_spill] sm:$0xff] %v11482_v9  ;;  %v1590_v38 = vadd.f32 %v11022_v17, %v11377_v11  ;;  %v11498_v12 = vmul.f32 %v4752_v49, %v4752_v49  ;;  %v11500_v52 = vmul.f32 %v4751_v47, %v4751_v47  ;;  %v1595_v41 = vadd.f32 %v11022_v17, %v1594_v22  ;;  %v12681_v47 = vld [vmem:[#allocation151_spill] sm:$0xff]  ;;  %v12682_v22 = vld [vmem:[#allocation153_spill] sm:$0xff] }
 0x263   :  { %12666 = vst [vmem:[#allocation122_spill] sm:$0xff] %v11469_v37  ;;  %7489 = vmatmul.mubr.msk.f32.gmra.mxu1 %vm173_vm0, %v3024_v5  ;;  %12667 = vst [vmem:[#allocation148_spill] sm:$0xff] %v11480_v25  ;;  %v4756_v37 = vsub.f32 %v12671_v48, %v11410_v23  ;;  %v12672_v5 = vld [vmem:[#allocation55_spill] sm:$0xff]  ;;  %v12675_v25 = vld [vmem:[#allocation58_spill] sm:$0xff]  ;;  %v4758_v30 = vsub.f32 %v12677_v27, %v11410_v23  ;;  %v11513_v49 = vmul.f32 %v4754_v40, %v4754_v40 }
 0x264   :  { %7491 = vmatprep.mubr.msk.f32.mxu1 %vm173_vm0, %v3025_v16  ;;  %v3026_v45 = vmul.f32 %v12672_v5, %v1580_v7  ;;  %12673 = vst [vmem:[#allocation33_spill] sm:$0xff] %v11498_v12  ;;  %12674 = vst [vmem:[#allocation22_spill] sm:$0xff] %v11500_v52  ;;  %v3027_v9 = vmul.f32 %v12675_v25, %v1585_v54  ;;  %v12676_v16 = vld [vmem:[#allocation145_spill] sm:$0xff]  ;;  %v12678_v48 = vld [vmem:[#allocation147_spill] sm:$0xff]  ;;  %v4759_v54 = vsub.f32 %v12681_v47, %v11410_v23 }
 0x265   :  { %v4755_v31 = vsub.f32 %v12676_v16, %v11410_v23  ;;  %v4757_v7 = vsub.f32 %v12678_v48, %v11410_v23  ;;  %v12679_v5 = vld [vmem:[#allocation150_spill] sm:$0xff]  ;;  %12680 = vst [vmem:[#allocation36_spill] sm:$0xff] %v11513_v49  ;;  %v4762_v25 = vsub.f32 %v12682_v22, %v11410_v23  ;;  %v12684_v40 = vld [vmem:[#allocation57_spill] sm:$0xff]  ;;  %v1600_v47 = vadd.f32 %v11022_v17, %v7183_v4 }
 0x266   :  { %v4760_v11 = vsub.f32 %v12679_v5, %v11410_v23  ;;  %v12683_v16 = vld [vmem:[#allocation154_spill] sm:$0xff]  ;;  %v11526_v5 = vmul.f32 %v4753_v55, %v4753_v55  ;;  %v3028_v28 = vmul.f32 %v12684_v40, %v1590_v38  ;;  %v4764_v22 = vsub.f32 %v12685_v35, %v11239_v46  ;;  %v12686_v49 = vld [vmem:[#allocation157_spill] sm:$0xff] }
 0x267   :  { %7492 = vmatmul.mubr.msk.f32.gmra.mxu1 %vm173_vm0, %v3026_v45  ;;  %v4761_v61 = vsub.f32 %v12683_v16, %v11410_v23  ;;  %v11522_v27 = vpop.permute.xlu1 %5256  ;;  %v11524_v48 = vpop.permute.xlu0 %5260  ;;  %v11528_v45 = vmul.f32 %v4756_v37, %v4756_v37  ;;  %v4763_v23 = vsub.f32 %v12686_v49, %v11239_v46  ;;  %v3029_v12 = vmul.f32 %v12688_v26, %v1595_v41  ;;  %v12695_v49 = vld [vmem:[#allocation160_spill] sm:$0xff] }
 0x268   :  { %7494 = vmatprep.mubr.msk.f32.mxu1 %vm173_vm0, %v3027_v9  ;;  %v12687_v9 = vld [vmem:[#allocation159_spill] sm:$0xff]  ;;  %v11539_v52 = vmul.f32 %v4755_v31, %v4755_v31  ;;  %v11541_v55 = vmul.f32 %v4758_v30, %v4758_v30  ;;  %v11543_v37 = vmul.f32 %v4757_v7, %v4757_v7  ;;  %v11545_v38 = vmul.f32 %v4760_v11, %v4760_v11  ;;  %v12698_v30 = vld [vmem:[#allocation162_spill] sm:$0xff]  ;;  %v12700_v11 = vld [vmem:[#allocation164_spill] sm:$0xff] }
 0x269   :  { %v4766_v16 = vsub.f32 %v12687_v9, %v11239_v46  ;;  %v11548_v17 = vmul.f32 %v4759_v54, %v4759_v54  ;;  %v11550_v35 = vmul.f32 %v4762_v25, %v4762_v25  ;;  %v11552_v4 = vmul.f32 %v4761_v61, %v4761_v61  ;;  %v12701_v61 = vld [vmem:[#allocation59_spill] sm:$0xff] }
 0x26a   :  { %12689 = vst [vmem:[#allocation155_spill] sm:$0xff] %v11541_v55  ;;  %12690 = vst [vmem:[#allocation123_spill] sm:$0xff] %v11543_v37  ;;  %v4765_v40 = vsub.f32 %v12695_v49, %v11239_v46  ;;  %v4768_v41 = vsub.f32 %v12698_v30, %v11239_v46  ;;  %v4770_v54 = vsub.f32 %v12700_v11, %v11239_v46  ;;  %v12721_v37 = vld [vmem:[#allocation6_spill] sm:$0xff] }
 0x26b   :  { %12691 = vst [vmem:[#allocation149_spill] sm:$0xff] %v11545_v38  ;;  %7495 = vmatmul.mubr.msk.f32.gmra.mxu1 %vm173_vm0, %v3028_v28  ;;  %12692 = vst [vmem:[#allocation21_spill] sm:$0xff] %v11548_v17  ;;  %v11557_v26 = vpop.permute.xlu1 %5264  ;;  %v12699_v28 = vld [vmem:[#allocation163_spill] sm:$0xff]  ;;  %v3030_v25 = vmul.f32 %v12701_v61, %v1600_v47  ;;  %v11568_v9 = vmul.f32 %v4764_v22, %v4764_v22  ;;  %v11570_v49 = vmul.f32 %v4763_v23, %v4763_v23  ;;  %v12706_v17 = vld [vmem:[#allocation113_spill] sm:$0xff] }
 0x26c   :  { %12693 = vst [vmem:[#allocation24_spill] sm:$0xff] %v11550_v35  ;;  %12694 = vst [vmem:[#allocation35_spill] sm:$0xff] %v11552_v4  ;;  %7497 = vmatprep.mubr.msk.f32.mxu1 %vm173_vm0, %v3029_v12  ;;  %v11559_v31 = vpop.permute.xlu0 %5272  ;;  %v4767_v7 = vsub.f32 %v12699_v28, %v11239_v46  ;;  %v11572_v12 = vmul.f32 %v4766_v16, %v4766_v16  ;;  %v12705_v4 = vld [vmem:[#allocation165_spill] sm:$0xff]  ;;  %v4771_v30 = vsub.f32 %v12706_v17, %v11239_v46  ;;  %v12709_v47 = vld [vmem:[#allocation114_spill] sm:$0xff] }
 0x26d   :  { %12696 = vst [vmem:[#allocation38_spill] sm:$0xff] %v11557_v26  ;;  %12697 = vst [vmem:[#allocation119_spill] sm:$0xff] %v11559_v31  ;;  %v4769_v35 = vsub.f32 %v12705_v4, %v11239_v46  ;;  %v12707_v31 = vld [vmem:[#allocation117_spill] sm:$0xff]  ;;  %v4780_v22 = vsub.f32 %v12709_v47, %v11414_v60  ;;  %v12710_v23 = vld [vmem:[#allocation118_spill] sm:$0xff]  ;;  %v11599_v47 = vmul.f32 %v4768_v41, %v4768_v41 }
 0x26e   :  { %12702 = vst [vmem:[#allocation23_spill] sm:$0xff] %v11568_v9  ;;  %12703 = vst [vmem:[#allocation26_spill] sm:$0xff] %v11570_v49  ;;  %v4778_v28 = vsub.f32 %v12707_v31, %v11414_v60  ;;  %v12708_v26 = vld [vmem:[#allocation97_spill] sm:$0xff]  ;;  %v4779_v16 = vsub.f32 %v12710_v23, %v11414_v60  ;;  %v5074_v31 = vrot.slane %v11342_v33, %v11242_v29 }
 0x26f   :  { %12704 = vst [vmem:[#allocation37_spill] sm:$0xff] %v11572_v12  ;;  %v4777_v11 = vsub.f32 %v12708_v26, %v11414_v60  ;;  %7498 = vmatmul.mubr.msk.f32.gmra.mxu1 %vm173_vm0, %v3030_v25  ;;  %v12711_v61 = vld [vmem:[#allocation101_spill] sm:$0xff]  ;;  %v12712_v12 = vld [vmem:[#allocation96_spill] sm:$0xff]  ;;  %v11593_v49 = vpop.permute.xlu1 %5268  ;;  %v11597_v9 = vmul.f32 %v4765_v40, %v4765_v40  ;;  %12715 = vst [vmem:[#allocation25_spill] sm:$0xff] %v11599_v47  ;;  %v11601_v25 = vmul.f32 %v4767_v7, %v4767_v7 }
 0x270   :  { %v4782_v4 = vsub.f32 %v12711_v61, %v11414_v60  ;;  %v4781_v17 = vsub.f32 %v12712_v12, %v11414_v60  ;;  %12713 = vst [vmem:[#allocation40_spill] sm:$0xff] %v11593_v49  ;;  %v11595_v26 = vpop.permute.xlu0 %5280  ;;  %v11603_v23 = vmul.f32 %v4770_v54, %v4770_v54  ;;  %v11605_v38 = vmul.f32 %v4769_v35, %v4769_v35  ;;  %v12719_v61 = vld [vmem:[#allocation87_spill] sm:$0xff]  ;;  %v12722_v49 = vld [vmem:[#allocation8_spill] sm:$0xff] }
 0x271   :  { %12714 = vst [vmem:[#allocation120_spill] sm:$0xff] %v11595_v26  ;;  %12716 = vst [vmem:[#allocation28_spill] sm:$0xff] %v11601_v25  ;;  %v11609_v12 = vsub.f32 %v12719_v61, %v11239_v46  ;;  %v4784_v55 = vsub.f32 %v12721_v37, %v11414_v60  ;;  %v4783_v26 = vsub.f32 %v12722_v49, %v11414_v60  ;;  %v12733_v60 = vld [vmem:[#allocation7_spill] sm:$0xff] }
 0x272   :  { %12717 = vst [vmem:[#allocation39_spill] sm:$0xff] %v11603_v23  ;;  %12718 = vst [vmem:[#allocation42_spill] sm:$0xff] %v11605_v38  ;;  %v11615_v40 = vmul.f32 %v4771_v30, %v4771_v30  ;;  %v11617_v41 = vmul.f32 %v4778_v28, %v4778_v28  ;;  %v11619_v7 = vmul.f32 %v4777_v11, %v4777_v11 }
 0x273   :  { %12720 = vst [vmem:[#allocation115_spill] sm:$0xff] %v11609_v12  ;;  %v11621_v54 = vmul.f32 %v4780_v22, %v4780_v22  ;;  %v11623_v35 = vmul.f32 %v4779_v16, %v4779_v16  ;;  %v11625_v23 = vmul.f32 %v4782_v4, %v4782_v4  ;;  %v11627_v61 = vmul.f32 %v4781_v17, %v4781_v17  ;;  %v11630_v37 = vpop.permute.xlu1 %5276 }
 0x274   :  { %12723 = vst [vmem:[#allocation27_spill] sm:$0xff] %v11615_v40  ;;  %12724 = vst [vmem:[#allocation30_spill] sm:$0xff] %v11617_v41  ;;  %v5088_v46 = vsub.f32 %v10702_v1, %v5074_v31  ;;  %v11632_v12 = vpop.permute.xlu0 %5288  ;;  %v5087_v49 = vsub.f32 %v10705_v20, %v5074_v31  ;;  %v5089_v30 = vsub.f32 %v10731_v63, %v5074_v31 }
 0x275   :  { %12725 = vst [vmem:[#allocation41_spill] sm:$0xff] %v11619_v7  ;;  %12726 = vst [vmem:[#allocation44_spill] sm:$0xff] %v11621_v54  ;;  %v5090_v28 = vsub.f32 %v10735_v51, %v5074_v31  ;;  %v5091_v11 = vsub.f32 %v10759_v34, %v5074_v31  ;;  %v11638_v22 = vmul.f32 %v4784_v55, %v4784_v55  ;;  %v12734_v34 = vld [vmem:[#allocation110_spill] sm:$0xff] }
 0x276   :  { %12727 = vst [vmem:[#allocation116_spill] sm:$0xff] %v11623_v35  ;;  %12728 = vst [vmem:[#allocation29_spill] sm:$0xff] %v11625_v23  ;;  %v11640_v16 = vmul.f32 %v4783_v26, %v4783_v26  ;;  %v5092_v4 = vsub.f32 %v10762_v39, %v5074_v31  ;;  %v5093_v1 = vsub.f32 %v10786_v43, %v5074_v31 }
 0x277   :  { %12729 = vst [vmem:[#allocation32_spill] sm:$0xff] %v11627_v61  ;;  %12730 = vst [vmem:[#allocation43_spill] sm:$0xff] %v11632_v12  ;;  %v5094_v17 = vsub.f32 %v10789_v8, %v5074_v31  ;;  %v5095_v40 = vsub.f32 %v10811_v0, %v5074_v31  ;;  %v5096_v20 = vsub.f32 %v12733_v60, %v5074_v31  ;;  %v11656_v39 = vpop.permute.xlu1 %5284  ;;  %v12736_v61 = vld [vmem:[#allocation10_spill] sm:$0xff] }
 0x278   :  { %12731 = vst [vmem:[#allocation46_spill] sm:$0xff] %v11638_v22  ;;  %12732 = vst [vmem:[#allocation111_spill] sm:$0xff] %v11640_v16  ;;  %v11649_v63 = vrot.slane %v11388_v14, %v11242_v29  ;;  %v5144_v51 = vmul.f32 %v5088_v46, %v5088_v46  ;;  %v5097_v55 = vsub.f32 %v12734_v34, %v5074_v31  ;;  %v12735_v22 = vld [vmem:[#allocation74_spill] sm:$0xff]  ;;  %v11654_v16 = vsub.s32 2, %v11204_v13  ;;  %v11658_v43 = vpop.permute.xlu0 %5296  ;;  %v12737_v46 = vld [vmem:[#allocation9_spill] sm:$0xff] }
 0x279   :  { %v5098_v26 = vsub.f32 %v12735_v22, %v5074_v31  ;;  %v5143_v8 = vmul.f32 %v5087_v49, %v5087_v49  ;;  %v5145_v0 = vmul.f32 %v5089_v30, %v5089_v30  ;;  %v5146_v38 = vmul.f32 %v5090_v28, %v5090_v28  ;;  %v12738_v13 = vld [vmem:[#allocation12_spill] sm:$0xff] }
 0x27a   :  { %v5147_v60 = vmul.f32 %v5091_v11, %v5091_v11  ;;  %v5148_v23 = vmul.f32 %v5092_v4, %v5092_v4  ;;  %v5149_v47 = vmul.f32 %v5093_v1, %v5093_v1  ;;  %v5099_v25 = vsub.f32 %v12736_v61, %v5074_v31 }
 0x27b   :  { %v5100_v54 = vsub.f32 %v12737_v46, %v5074_v31  ;;  %v5150_v34 = vmul.f32 %v5094_v17, %v5094_v17  ;;  %v5151_v35 = vmul.f32 %v5095_v40, %v5095_v40  ;;  %v5152_v22 = vmul.f32 %v5096_v20, %v5096_v20  ;;  %v11672_v28 = vpop.permute.xlu1 %5292  ;;  %v12739_v31 = vld [vmem:[#allocation71_spill] sm:$0xff] }
 0x27c   :  { %v5101_v7 = vsub.f32 %v12738_v13, %v11649_v63  ;;  %v5153_v41 = vmul.f32 %v5097_v55, %v5097_v55  ;;  %v5154_v12 = vmul.f32 %v5098_v26, %v5098_v26  ;;  %v11666_v49 = vrot.slane %v11393_v42, %v11242_v29  ;;  %v11674_v61 = vpop.permute.xlu0 %5304  ;;  %v12740_v55 = vld [vmem:[#allocation88_spill] sm:$0xff] }
 0x27d   :  { %v11670_v30 = vrot.slane %v11342_v33, %v11654_v16  ;;  %v5102_v40 = vsub.f32 %v12739_v31, %v11649_v63  ;;  %v11680_v13 = vrot.slane %v11388_v14, %v11654_v16  ;;  %v11683_v11 = vadd.f32 %v5144_v51, %v11406_v3 }
 0x27e   :  { %v11686_v29 = vadd.f32 %v5143_v8, %v11417_v56  ;;  %v11688_v4 = vmul.f32 %v5099_v25, %v5099_v25  ;;  %v5156_v33 = vmul.f32 %v5100_v54, %v5100_v54  ;;  %v11691_v1 = vadd.f32 %v5146_v38, %v11419_v62  ;;  %v12741_v56 = vld [vmem:[#allocation11_spill] sm:$0xff] }
 0x27f   :  { %v11694_v17 = vadd.f32 %v5145_v0, %v11421_v58  ;;  %v5157_v20 = vmul.f32 %v5101_v7, %v5101_v7  ;;  %v5103_v14 = vsub.f32 %v12740_v55, %v11649_v63  ;;  %v11699_v26 = vadd.f32 %v5148_v23, %v11437_v18  ;;  %v11706_v54 = vpop.permute.xlu1 %5300  ;;  %v12742_v23 = vld [vmem:[#allocation14_spill] sm:$0xff]  ;;  %v12743_v0 = vld [vmem:[#allocation72_spill] sm:$0xff] }
 0x280   :  { %v11702_v3 = vadd.f32 %v5147_v60, %v11439_v32  ;;  %v5104_v25 = vsub.f32 %v12741_v56, %v11649_v63  ;;  %v5313_v62 = vpop.permute.xlu0 %5312  ;;  %v11709_v38 = vadd.f32 %v5150_v34, %v11448_v59  ;;  %v11712_v58 = vadd.f32 %v5149_v47, %v11456_v44  ;;  %v12744_v59 = vld [vmem:[#allocation13_spill] sm:$0xff] }
 0x281   :  { %v11715_v7 = vadd.f32 %v5152_v22, %v11458_v36  ;;  %v5158_v18 = vmul.f32 %v5102_v40, %v5102_v40  ;;  %v5105_v32 = vsub.f32 %v12742_v23, %v11649_v63  ;;  %v5509_v51 = vsub.f32 %v5313_v62, %v11680_v13  ;;  %v12745_v62 = vld [vmem:[#allocation22_spill] sm:$0xff] }
 0x282   :  { %v11721_v8 = vadd.f32 %v5151_v35, %v11471_v21  ;;  %v5106_v60 = vsub.f32 %v12743_v0, %v11649_v63  ;;  %v5107_v46 = vsub.f32 %v12744_v59, %v11649_v63  ;;  %v5108_v44 = vsub.f32 %v10985_v50, %v11649_v63  ;;  %v12746_v59 = vld [vmem:[#allocation33_spill] sm:$0xff] }
 0x283   :  { %v11730_v36 = vadd.f32 %v5154_v12, %v11473_v57  ;;  %v5159_v47 = vmul.f32 %v5103_v14, %v5103_v14  ;;  %v5565_v34 = vmul.f32 %v5509_v51, %v5509_v51  ;;  %v11733_v22 = vadd.f32 %v5153_v41, %v11475_v6  ;;  %v11742_v55 = vpop.permute.xlu1 %5308 }
 0x284   :  { %v5213_v21 = vadd.f32 %v5157_v20, %v11486_v15  ;;  %v5160_v35 = vmul.f32 %v5104_v25, %v5104_v25  ;;  %v5109_v31 = vsub.f32 %v11012_v24, %v11649_v63  ;;  %v5110_v40 = vsub.f32 %v11028_v2, %v11649_v63  ;;  %v5321_v57 = vpop.permute.xlu0 %5320 }
 0x285   :  { %v5496_v50 = vsub.f32 %v11524_v48, %v11670_v30  ;;  %v5161_v12 = vmul.f32 %v5105_v32, %v5105_v32  ;;  %v5511_v14 = vsub.f32 %v5321_v57, %v11680_v13  ;;  %v11746_v6 = vadd.f32 %v5156_v33, %v11477_v19 }
 0x286   :  { %v11748_v15 = vadd.f32 %v5565_v34, %v5213_v21  ;;  %v5162_v41 = vmul.f32 %v5106_v60, %v5106_v60  ;;  %v5163_v20 = vmul.f32 %v5107_v46, %v5107_v46  ;;  %v5164_v24 = vmul.f32 %v5108_v44, %v5108_v44  ;;  %v12748_v34 = vld [vmem:[#allocation36_spill] sm:$0xff] }
 0x287   :  { %v5214_v56 = vadd.f32 %v5158_v18, %v11484_v53  ;;  %v5112_v2 = vsub.f32 %v11062_v10, %v11649_v63  ;;  %v5495_v48 = vsub.f32 %v11522_v27, %v11670_v30  ;;  %v5567_v25 = vmul.f32 %v5511_v14, %v5511_v14  ;;  %v5317_v33 = vpop.permute.xlu1 %5316  ;;  %v12747_v27 = vld [vmem:[#allocation90_spill] sm:$0xff]  ;;  %v12749_v14 = vld [vmem:[#allocation40_spill] sm:$0xff] }
 0x288   :  { %v5215_v23 = vadd.f32 %v5159_v47, %v12745_v62  ;;  %v5165_v32 = vmul.f32 %v5109_v31, %v5109_v31  ;;  %v5166_v51 = vmul.f32 %v5110_v40, %v5110_v40  ;;  %v5552_v19 = vmul.f32 %v5496_v50, %v5496_v50  ;;  %v5329_v0 = vpop.permute.xlu0 %5328 }
 0x289   :  { %v5216_v60 = vadd.f32 %v5160_v35, %v12746_v59  ;;  %v5510_v46 = vsub.f32 %v5317_v33, %v11680_v13  ;;  %v5513_v53 = vsub.f32 %v5329_v0, %v11680_v13  ;;  %v5217_v10 = vadd.f32 %v5161_v12, %v11526_v5  ;;  %v12750_v12 = vld [vmem:[#allocation155_spill] sm:$0xff] }
 0x28a   :  { %v11759_v18 = vadd.f32 %v5567_v25, %v5215_v23  ;;  %v5111_v44 = vsub.f32 %v12747_v27, %v11649_v63  ;;  %v5218_v47 = vadd.f32 %v5162_v41, %v12748_v34  ;;  %v11766_v21 = vadd.f32 %v5164_v24, %v11528_v45  ;;  %v12751_v41 = vld [vmem:[#allocation123_spill] sm:$0xff]  ;;  %v12755_v34 = vld [vmem:[#allocation149_spill] sm:$0xff] }
 0x28b   :  { %v5219_v31 = vadd.f32 %v5163_v20, %v11539_v52  ;;  %v5168_v40 = vmul.f32 %v5112_v2, %v5112_v2  ;;  %v5551_v35 = vmul.f32 %v5495_v48, %v5495_v48  ;;  %v5566_v50 = vmul.f32 %v5510_v46, %v5510_v46  ;;  %v5325_v62 = vpop.permute.xlu1 %5324  ;;  %v12752_v48 = vld [vmem:[#allocation16_spill] sm:$0xff]  ;;  %v12753_v46 = vld [vmem:[#allocation18_spill] sm:$0xff] }
 0x28c   :  { %v5569_v57 = vmul.f32 %v5513_v53, %v5513_v53  ;;  %v5498_v25 = vsub.f32 %v12749_v14, %v11670_v30  ;;  %v5337_v23 = vpop.permute.xlu0 %5336  ;;  %v5608_v5 = vadd.f32 %v5552_v19, %v11683_v11  ;;  %v11773_v33 = vadd.f32 %v5166_v51, %v12750_v12  ;;  %v12754_v51 = vld [vmem:[#allocation81_spill] sm:$0xff] }
 0x28d   :  { %v5221_v0 = vadd.f32 %v5165_v32, %v12751_v41  ;;  %v5512_v45 = vsub.f32 %v5325_v62, %v11680_v13  ;;  %v5515_v52 = vsub.f32 %v5337_v23, %v11680_v13  ;;  %v11778_v20 = vadd.f32 %v5566_v50, %v5214_v56 }
 0x28e   :  { %v11780_v24 = vadd.f32 %v5569_v57, %v5217_v10  ;;  %v5167_v2 = vmul.f32 %v5111_v44, %v5111_v44  ;;  %v5113_v59 = vsub.f32 %v12752_v48, %v11649_v63  ;;  %v5114_v11 = vsub.f32 %v12753_v46, %v11649_v63  ;;  %v12756_v10 = vld [vmem:[#allocation38_spill] sm:$0xff] }
 0x28f   :  { %v11788_v19 = vrot.slane %v12754_v51, %v11654_v16  ;;  %v5568_v32 = vmul.f32 %v5512_v45, %v5512_v45  ;;  %v5571_v53 = vmul.f32 %v5515_v52, %v5515_v52  ;;  %v5607_v27 = vadd.f32 %v5551_v35, %v11686_v29  ;;  %v5333_v14 = vpop.permute.xlu1 %5332  ;;  %v12757_v45 = vld [vmem:[#allocation34_spill] sm:$0xff]  ;;  %v12758_v52 = vld [vmem:[#allocation15_spill] sm:$0xff] }
 0x290   :  { %v11792_v56 = vadd.f32 %v5168_v40, %v12755_v34  ;;  %v5497_v44 = vsub.f32 %v12756_v10, %v11670_v30  ;;  %v5554_v50 = vmul.f32 %v5498_v25, %v5498_v25  ;;  %v5500_v57 = vsub.f32 %v11630_v37, %v11670_v30  ;;  %v5345_v63 = vpop.permute.xlu0 %5344  ;;  %v12759_v37 = vld [vmem:[#allocation69_spill] sm:$0xff] }
 0x291   :  { %vm5664_vm1 = vcmp.lt.f32.partialorder %v5608_v5, 100.0  ;;  %v5514_v62 = vsub.f32 %v5333_v14, %v11680_v13  ;;  %v5517_v23 = vsub.f32 %v5345_v63, %v11680_v13  ;;  %v7322_v12 = vpop.f32.mrf.mxu1  ;;  %v11800_v41 = vadd.f32 %v5568_v32, %v5216_v60  ;;  %v12760_v60 = vld [vmem:[#allocation119_spill] sm:$0xff] }
 0x292   :  { %v11802_v29 = vadd.f32 %v5571_v53, %v5219_v31  ;;  %v5169_v40 = vmul.f32 %v5113_v59, %v5113_v59  ;;  %v5170_v35 = vmul.f32 %v5114_v11, %v5114_v11  ;;  %v5115_v25 = vsub.f32 %v12758_v52, %v12757_v45  ;;  %v12762_v52 = vld [vmem:[#allocation24_spill] sm:$0xff] }
 0x293   :  { %v5720_v48 = vsel %vm5664_vm1, %v7322_v12, 0.0  ;;  %v5116_v46 = vsub.f32 %v12759_v37, %v12757_v45  ;;  %v5570_v51 = vmul.f32 %v5514_v62, %v5514_v62  ;;  %v5573_v5 = vmul.f32 %v5517_v23, %v5517_v23  ;;  %v3635_v34 = vpop.f32.mrf.mxu1  ;;  %v12763_v37 = vld [vmem:[#allocation35_spill] sm:$0xff] }
 0x294   :  { %5777 = vadd.xlane.f32.xlu1 %v5720_v48  ;;  %vm5663_vm2 = vcmp.lt.f32.partialorder %v5607_v27, 100.0  ;;  %v5553_v10 = vmul.f32 %v5497_v44, %v5497_v44  ;;  %v5499_v32 = vsub.f32 %v12760_v60, %v11670_v30  ;;  %v5341_v31 = vpop.permute.xlu1 %5340  ;;  %v5610_v59 = vadd.f32 %v5554_v50, %v11691_v1  ;;  %v12761_v27 = vld [vmem:[#allocation21_spill] sm:$0xff] }
 0x295   :  { %v5719_v53 = vsel %vm5663_vm2, %v3635_v34, 0.0  ;;  %v5556_v11 = vmul.f32 %v5500_v57, %v5500_v57  ;;  %v5516_v14 = vsub.f32 %v5341_v31, %v11680_v13  ;;  %v5353_v63 = vpop.permute.xlu0 %5352  ;;  %v11812_v12 = vadd.f32 %v5570_v51, %v5218_v47 }
 0x296   :  { %5775 = vadd.xlane.f32.xlu0 %v5719_v53  ;;  %v11814_v62 = vadd.f32 %v5573_v5, %v5221_v0  ;;  %v5519_v23 = vsub.f32 %v5353_v63, %v11680_v13  ;;  %v5223_v44 = vadd.f32 %v5167_v2, %v12761_v27  ;;  %v11819_v48 = vadd.f32 %v5170_v35, %v12762_v52  ;;  %v12766_v63 = vld [vmem:[#allocation23_spill] sm:$0xff] }
 0x297   :  { %v5225_v34 = vadd.f32 %v5169_v40, %v12763_v37  ;;  %v5171_v60 = vmul.f32 %v5115_v25, %v5115_v25  ;;  %v5172_v1 = vmul.f32 %v5116_v46, %v5116_v46  ;;  %v5572_v50 = vmul.f32 %v5516_v14, %v5516_v14 }
 0x298   :  { %v11824_v57 = vrot.slane %v11393_v42, %v11654_v16  ;;  %v5555_v47 = vmul.f32 %v5499_v32, %v5499_v32  ;;  %v5575_v51 = vmul.f32 %v5519_v23, %v5519_v23  ;;  %v5349_v0 = vpop.permute.xlu1 %5348  ;;  %vm5666_vm3 = vcmp.lt.f32.partialorder %v5610_v59, 100.0  ;;  %v12764_v42 = vld [vmem:[#allocation85_spill] sm:$0xff] }
 0x299   :  { %v5609_v5 = vadd.f32 %v5553_v10, %v11694_v17  ;;  %v5502_v2 = vsub.f32 %v11656_v39, %v11670_v30  ;;  %v5518_v35 = vsub.f32 %v5349_v0, %v11680_v13  ;;  %v5361_v31 = vpop.permute.xlu0 %5360  ;;  %v7325_v40 = vpop.f32.mrf.mxu1  ;;  %v5612_v25 = vadd.f32 %v5556_v11, %v11699_v26  ;;  %v12765_v17 = vld [vmem:[#allocation20_spill] sm:$0xff]  ;;  %v12767_v26 = vld [vmem:[#allocation26_spill] sm:$0xff] }
 0x29a   :  { %v11832_v46 = vadd.f32 %v5572_v50, %v11766_v21  ;;  %v5117_v16 = vsub.f32 %v12764_v42, %v12757_v45  ;;  %v5521_v32 = vsub.f32 %v5361_v31, %v11680_v13  ;;  %v5722_v53 = vsel %vm5666_vm3, %v7325_v40, 0.0  ;;  %v12768_v11 = vld [vmem:[#allocation120_spill] sm:$0xff] }
 0x29b   :  { %v11837_v59 = vadd.f32 %v5575_v51, %v5223_v44  ;;  %v5118_v39 = vsub.f32 %v12765_v17, %v12757_v45  ;;  %v5574_v10 = vmul.f32 %v5518_v35, %v5518_v35  ;;  %5781 = vadd.xlane.f32.xlu1 %v5722_v53  ;;  %v3645_v14 = vpop.f32.mrf.mxu1  ;;  %v11842_v23 = vadd.f32 %v5172_v1, %v12766_v63 }
 0x29c   :  { %v5227_v21 = vadd.f32 %v5171_v60, %v12767_v26  ;;  %v5501_v27 = vsub.f32 %v12768_v11, %v11670_v30  ;;  %v5577_v52 = vmul.f32 %v5521_v32, %v5521_v32  ;;  %vm5665_vm4 = vcmp.lt.f32.partialorder %v5609_v5, 100.0  ;;  %v5357_v37 = vpop.permute.xlu1 %5356  ;;  %v12769_v5 = vld [vmem:[#allocation79_spill] sm:$0xff]  ;;  %v12770_v26 = vld [vmem:[#allocation17_spill] sm:$0xff] }
 0x29d   :  { %v5611_v44 = vadd.f32 %v5555_v47, %v11702_v3  ;;  %v5558_v50 = vmul.f32 %v5502_v2, %v5502_v2  ;;  %v5520_v51 = vsub.f32 %v5357_v37, %v11680_v13  ;;  %v5369_v0 = vpop.permute.xlu0 %5368  ;;  %v7328_v35 = vpop.f32.mrf.mxu1  ;;  %vm5668_vm5 = vcmp.lt.f32.partialorder %v5612_v25, 100.0  ;;  %v12771_v37 = vld [vmem:[#allocation63_spill] sm:$0xff] }
 0x29e   :  { %v11850_v31 = vadd.f32 %v5574_v10, %v11773_v33  ;;  %v5721_v1 = vsel %vm5665_vm4, %v3645_v14, 0.0  ;;  %v5523_v60 = vsub.f32 %v5369_v0, %v11788_v19  ;;  %v5724_v40 = vsel %vm5668_vm5, %v7328_v35, 0.0  ;;  %v12773_v0 = vld [vmem:[#allocation43_spill] sm:$0xff] }
 0x29f   :  { %v11853_v42 = vadd.f32 %v5577_v52, %v5225_v34  ;;  %v5173_v32 = vmul.f32 %v5117_v16, %v5117_v16  ;;  %v5130_v53 = vsub.f32 %v12769_v5, %v11666_v49  ;;  %v5576_v3 = vmul.f32 %v5520_v51, %v5520_v51  ;;  %5779 = vadd.xlane.f32.xlu1 %v5721_v1  ;;  %v3655_v47 = vpop.f32.mrf.mxu1 }
 0x2a0   :  { %5785 = vadd.xlane.f32.xlu0 %v5724_v40  ;;  %v5174_v2 = vmul.f32 %v5118_v39, %v5118_v39  ;;  %v5557_v17 = vmul.f32 %v5501_v27, %v5501_v27  ;;  %v5579_v25 = vmul.f32 %v5523_v60, %v5523_v60  ;;  %vm5667_vm6 = vcmp.lt.f32.partialorder %v5611_v44, 100.0  ;;  %v5365_v33 = vpop.permute.xlu1 %5364 }
 0x2a1   :  { %v5504_v10 = vsub.f32 %v11672_v28, %v11670_v30  ;;  %v5522_v14 = vsub.f32 %v5365_v33, %v11680_v13  ;;  %v5377_v34 = vpop.permute.xlu0 %5376  ;;  %v5614_v16 = vadd.f32 %v5558_v50, %v11709_v38  ;;  %v11862_v63 = vadd.f32 %v5576_v3, %v11792_v56  ;;  %v7331_v13 = vpop.f32.mrf.mxu1  ;;  %v12772_v56 = vld [vmem:[#allocation80_spill] sm:$0xff] }
 0x2a2   :  { %v5119_v11 = vsub.f32 %v12770_v26, %v12757_v45  ;;  %v5723_v52 = vsel %vm5667_vm6, %v3655_v47, 0.0  ;;  %v5525_v39 = vsub.f32 %v5377_v34, %v11788_v19  ;;  %v11867_v27 = vadd.f32 %v5579_v25, %v5227_v21 }
 0x2a3   :  { %v5129_v44 = vsub.f32 %v12771_v37, %v11666_v49  ;;  %v5186_v28 = vmul.f32 %v5130_v53, %v5130_v53  ;;  %v5578_v51 = vmul.f32 %v5522_v14, %v5522_v14  ;;  %v5229_v38 = vadd.f32 %v5173_v32, %v11597_v9  ;;  %v12774_v9 = vld [vmem:[#allocation70_spill] sm:$0xff] }
 0x2a4   :  { %5783 = vadd.xlane.f32.xlu0 %v5723_v52  ;;  %v5131_v50 = vsub.f32 %v12772_v56, %v11666_v49  ;;  %v5503_v35 = vsub.f32 %v12773_v0, %v11670_v30  ;;  %v5581_v1 = vmul.f32 %v5525_v39, %v5525_v39  ;;  %v5613_v60 = vadd.f32 %v5557_v17, %v11712_v58  ;;  %v5373_v21 = vpop.permute.xlu1 %5372  ;;  %v12775_v58 = vld [vmem:[#allocation64_spill] sm:$0xff] }
 0x2a5   :  { %v5560_v40 = vmul.f32 %v5504_v10, %v5504_v10  ;;  %vm5670_vm7 = vcmp.lt.f32.partialorder %v5614_v16, 100.0  ;;  %v5524_v5 = vsub.f32 %v5373_v21, %v11788_v19  ;;  %v5429_v53 = vpop.permute.xlu0 %5428  ;;  %v11879_v3 = vadd.f32 %v5578_v51, %v11819_v48  ;;  %v3665_v10 = vpop.f32.mrf.mxu1  ;;  %v12776_v16 = vld [vmem:[#allocation30_spill] sm:$0xff]  ;;  %v12778_v21 = vld [vmem:[#allocation89_spill] sm:$0xff] }
 0x2a6   :  { %v5120_v32 = vsub.f32 %v12774_v9, %v12757_v45  ;;  %v5726_v47 = vsel %vm5670_vm7, %v7331_v13, 0.0  ;;  %v5538_v25 = vsub.f32 %v5429_v53, %v11824_v57  ;;  %v11884_v33 = vadd.f32 %v5581_v1, %v5229_v38 }
 0x2a7   :  { %v5185_v14 = vmul.f32 %v5129_v44, %v5129_v44  ;;  %v5132_v17 = vsub.f32 %v12775_v58, %v11666_v49  ;;  %v5580_v34 = vmul.f32 %v5524_v5, %v5524_v5  ;;  %v5242_v26 = vadd.f32 %v5186_v28, %v12776_v16  ;;  %v12777_v28 = vld [vmem:[#allocation37_spill] sm:$0xff]  ;;  %v12780_v58 = vld [vmem:[#allocation116_spill] sm:$0xff] }
 0x2a8   :  { %5789 = vadd.xlane.f32.xlu0 %v5726_v47  ;;  %v5187_v52 = vmul.f32 %v5131_v50, %v5131_v50  ;;  %v5559_v48 = vmul.f32 %v5503_v35, %v5503_v35  ;;  %vm5669_vm8 = vcmp.lt.f32.partialorder %v5613_v60, 100.0  ;;  %v5594_v39 = vmul.f32 %v5538_v25, %v5538_v25  ;;  %v5425_v37 = vpop.permute.xlu1 %5424 }
 0x2a9   :  { %v5506_v51 = vsub.f32 %v11706_v54, %v11670_v30  ;;  %v5616_v13 = vadd.f32 %v5560_v40, %v11715_v7  ;;  %v5537_v44 = vsub.f32 %v5425_v37, %v11824_v57  ;;  %v5433_v38 = vpop.permute.xlu0 %5432  ;;  %v11894_v56 = vadd.f32 %v5580_v34, %v11842_v23  ;;  %v7334_v54 = vpop.f32.mrf.mxu1  ;;  %v12779_v7 = vld [vmem:[#allocation41_spill] sm:$0xff] }
 0x2aa   :  { %v5725_v0 = vsel %vm5669_vm8, %v3665_v10, 0.0  ;;  %v5539_v1 = vsub.f32 %v5433_v38, %v11824_v57  ;;  %v5230_v50 = vadd.f32 %v5174_v2, %v12777_v28  ;;  %v11898_v35 = vadd.f32 %v5594_v39, %v5242_v26 }
 0x2ab   :  { %v5188_v60 = vmul.f32 %v5132_v17, %v5132_v17  ;;  %v5133_v5 = vsub.f32 %v12778_v21, %v11666_v49  ;;  %v5593_v53 = vmul.f32 %v5537_v44, %v5537_v44  ;;  %v5241_v40 = vadd.f32 %v5185_v14, %v12779_v7  ;;  %v3675_v38 = vpop.f32.mrf.mxu1 }
 0x2ac   :  { %5787 = vadd.xlane.f32.xlu0 %v5725_v0  ;;  %v5505_v23 = vsub.f32 %v11658_v43, %v11670_v30  ;;  %v5615_v9 = vadd.f32 %v5559_v48, %v11721_v8  ;;  %v5595_v47 = vmul.f32 %v5539_v1, %v5539_v1  ;;  %v5381_v25 = vpop.permute.xlu1 %5380  ;;  %v5243_v2 = vadd.f32 %v5187_v52, %v12780_v58  ;;  %v12781_v8 = vld [vmem:[#allocation77_spill] sm:$0xff]  ;;  %v12782_v1 = vld [vmem:[#allocation44_spill] sm:$0xff] }
 0x2ad   :  { %v5562_v10 = vmul.f32 %v5506_v51, %v5506_v51  ;;  %vm5672_vm9 = vcmp.lt.f32.partialorder %v5616_v13, 100.0  ;;  %v5526_v17 = vsub.f32 %v5381_v25, %v11788_v19  ;;  %v5437_v34 = vpop.permute.xlu0 %5436  ;;  %v11908_v16 = vadd.f32 %v5593_v53, %v5241_v40  ;;  %v12783_v53 = vld [vmem:[#allocation86_spill] sm:$0xff] }
 0x2ae   :  { %v5175_v26 = vmul.f32 %v5119_v11, %v5119_v11  ;;  %v5728_v39 = vsel %vm5672_vm9, %v7334_v54, 0.0  ;;  %v5540_v14 = vsub.f32 %v5437_v34, %v11824_v57  ;;  %v11911_v37 = vadd.f32 %v5595_v47, %v5243_v2 }
 0x2af   :  { %v5176_v43 = vmul.f32 %v5120_v32, %v5120_v32  ;;  %v5189_v44 = vmul.f32 %v5133_v5, %v5133_v5  ;;  %v5134_v48 = vsub.f32 %v12781_v8, %v11666_v49  ;;  %v5582_v52 = vmul.f32 %v5526_v17, %v5526_v17 }
 0x2b0   :  { %5793 = vadd.xlane.f32.xlu0 %v5728_v39  ;;  %v5561_v51 = vmul.f32 %v5505_v23, %v5505_v23  ;;  %vm5671_vm10 = vcmp.lt.f32.partialorder %v5615_v9, 100.0  ;;  %v5596_v13 = vmul.f32 %v5540_v14, %v5540_v14  ;;  %v5385_v0 = vpop.permute.xlu1 %5384  ;;  %v5244_v28 = vadd.f32 %v5188_v60, %v12782_v1  ;;  %v7337_v60 = vpop.f32.mrf.mxu1 }
 0x2b1   :  { %v5508_v11 = vsub.f32 %v11742_v55, %v11670_v30  ;;  %v5618_v21 = vadd.f32 %v5562_v10, %v11730_v36  ;;  %v5527_v32 = vsub.f32 %v5385_v0, %v11788_v19  ;;  %v5441_v5 = vpop.permute.xlu0 %5440  ;;  %v11920_v54 = vadd.f32 %v5582_v52, %v5230_v50  ;;  %v12784_v55 = vld [vmem:[#allocation28_spill] sm:$0xff]  ;;  %v12786_v10 = vld [vmem:[#allocation61_spill] sm:$0xff] }
 0x2b2   :  { %v5121_v7 = vsub.f32 %v12783_v53, %v12757_v45  ;;  %v5727_v40 = vsel %vm5671_vm10, %v3675_v38, 0.0  ;;  %v5541_v23 = vsub.f32 %v5441_v5, %v11824_v57  ;;  %v11925_v9 = vadd.f32 %v5596_v13, %v5244_v28  ;;  %v12785_v36 = vld [vmem:[#allocation32_spill] sm:$0xff]  ;;  %v12790_v5 = vld [vmem:[#allocation158_spill] sm:$0xff] }
 0x2b3   :  { %v5190_v47 = vmul.f32 %v5134_v48, %v5134_v48  ;;  %v5583_v25 = vmul.f32 %v5527_v32, %v5527_v32  ;;  %v5231_v58 = vadd.f32 %v5175_v26, %v12784_v55  ;;  %v5245_v2 = vadd.f32 %v5189_v44, %v12785_v36  ;;  %v12787_v26 = vld [vmem:[#allocation83_spill] sm:$0xff] }
 0x2b4   :  { %5791 = vadd.xlane.f32.xlu0 %v5727_v40  ;;  %v5135_v50 = vsub.f32 %v12786_v10, %v11666_v49  ;;  %v5507_v17 = vsub.f32 %v11674_v61, %v11670_v30  ;;  %v5617_v34 = vadd.f32 %v5561_v51, %v11733_v22  ;;  %v5597_v39 = vmul.f32 %v5541_v23, %v5541_v23  ;;  %v5389_v14 = vpop.permute.xlu1 %5388  ;;  %v3685_v61 = vpop.f32.mrf.mxu1  ;;  %v12788_v51 = vld [vmem:[#allocation25_spill] sm:$0xff] }
 0x2b5   :  { %v5564_v8 = vmul.f32 %v5508_v11, %v5508_v11  ;;  %vm5674_vm11 = vcmp.lt.f32.partialorder %v5618_v21, 100.0  ;;  %v5528_v48 = vsub.f32 %v5389_v14, %v11788_v19  ;;  %v5445_v38 = vpop.permute.xlu0 %5444  ;;  %v11935_v52 = vadd.f32 %v5583_v25, %v5231_v58  ;;  %v12789_v11 = vld [vmem:[#allocation29_spill] sm:$0xff] }
 0x2b6   :  { %v5122_v44 = vsub.f32 %v12787_v26, %v12757_v45  ;;  %v5730_v13 = vsel %vm5674_vm11, %v7337_v60, 0.0  ;;  %v5542_v0 = vsub.f32 %v5445_v38, %v11824_v57  ;;  %v11940_v1 = vadd.f32 %v5597_v39, %v5245_v2  ;;  %v12791_v2 = vld [vmem:[#allocation19_spill] sm:$0xff]  ;;  %v12794_v38 = vld [vmem:[#allocation62_spill] sm:$0xff] }
 0x2b7   :  { %v5177_v30 = vmul.f32 %v5121_v7, %v5121_v7  ;;  %v5584_v22 = vmul.f32 %v5528_v48, %v5528_v48  ;;  %v5232_v28 = vadd.f32 %v5176_v43, %v12788_v51  ;;  %v5246_v21 = vadd.f32 %v5190_v47, %v12789_v11  ;;  %v12796_v11 = vld [vmem:[#allocation161_spill] sm:$0xff] }
 0x2b8   :  { %5797 = vadd.xlane.f32.xlu0 %v5730_v13  ;;  %v5191_v32 = vmul.f32 %v5135_v50, %v5135_v50  ;;  %v5136_v53 = vsub.f32 %v12790_v5, %v11666_v49  ;;  %v5563_v40 = vmul.f32 %v5507_v17, %v5507_v17  ;;  %v5598_v23 = vmul.f32 %v5542_v0, %v5542_v0  ;;  %v5393_v25 = vpop.permute.xlu1 %5392  ;;  %v12792_v17 = vld [vmem:[#allocation84_spill] sm:$0xff] }
 0x2b9   :  { %vm5673_vm12 = vcmp.lt.f32.partialorder %v5617_v34, 100.0  ;;  %v5620_v60 = vadd.f32 %v5564_v8, %v11746_v6  ;;  %v5529_v55 = vsub.f32 %v5393_v25, %v11788_v19  ;;  %v5449_v7 = vpop.permute.xlu0 %5448  ;;  %v11948_v58 = vadd.f32 %v5584_v22, %v5232_v28  ;;  %v7340_v34 = vpop.f32.mrf.mxu1  ;;  %v12793_v6 = vld [vmem:[#allocation42_spill] sm:$0xff] }
 0x2ba   :  { %v5729_v36 = vsel %vm5673_vm12, %v3685_v61, 0.0  ;;  %v5211_v43 = vadd.f32 %v11688_v4, %v12791_v2  ;;  %v5543_v47 = vsub.f32 %v5449_v7, %v11824_v57  ;;  %v11953_v10 = vadd.f32 %v5598_v23, %v5246_v21  ;;  %v12795_v4 = vld [vmem:[#allocation111_spill] sm:$0xff]  ;;  %v12797_v21 = vld [vmem:[#allocation109_spill] sm:$0xff] }
 0x2bb   :  { %v5178_v50 = vmul.f32 %v5122_v44, %v5122_v44  ;;  %v5123_v39 = vsub.f32 %v12792_v17, %v12757_v45  ;;  %v5585_v14 = vmul.f32 %v5529_v55, %v5529_v55  ;;  %v5233_v8 = vadd.f32 %v5177_v30, %v12793_v6  ;;  %v12799_v55 = vld [vmem:[#allocation68_spill] sm:$0xff] }
 0x2bc   :  { %5795 = vadd.xlane.f32.xlu0 %v5729_v36  ;;  %v5192_v48 = vmul.f32 %v5136_v53, %v5136_v53  ;;  %v5137_v26 = vsub.f32 %v12794_v38, %v11666_v49  ;;  %v5599_v13 = vmul.f32 %v5543_v47, %v5543_v47  ;;  %v5397_v0 = vpop.permute.xlu1 %5396  ;;  %v5247_v61 = vadd.f32 %v5191_v32, %v12795_v4  ;;  %v3695_v32 = vpop.f32.mrf.mxu1 }
 0x2bd   :  { %vm5676_vm13 = vcmp.lt.f32.partialorder %v5620_v60, 100.0  ;;  %v5619_v22 = vadd.f32 %v5563_v40, %v5211_v43  ;;  %v5530_v44 = vsub.f32 %v5397_v0, %v11788_v19  ;;  %v5453_v51 = vpop.permute.xlu0 %5452  ;;  %v11962_v28 = vadd.f32 %v5585_v14, %v5233_v8  ;;  %v12800_v40 = vld [vmem:[#allocation39_spill] sm:$0xff]  ;;  %v12801_v43 = vld [vmem:[#allocation78_spill] sm:$0xff]  ;;  %v12803_v8 = vld [vmem:[#allocation76_spill] sm:$0xff] }
 0x2be   :  { %v4785_v5 = vsub.f32 %v12797_v21, %v12796_v11  ;;  %v5732_v23 = vsel %vm5676_vm13, %v7340_v34, 0.0  ;;  %v5544_v30 = vsub.f32 %v5453_v51, %v11824_v57  ;;  %v11967_v53 = vadd.f32 %v5599_v13, %v5247_v61  ;;  %v12802_v34 = vld [vmem:[#allocation46_spill] sm:$0xff]  ;;  %v12804_v51 = vld [vmem:[#allocation65_spill] sm:$0xff] }
 0x2bf   :  { %v5179_v25 = vmul.f32 %v5123_v39, %v5123_v39  ;;  %v5124_v7 = vsub.f32 %v12799_v55, %v12757_v45  ;;  %v5586_v60 = vmul.f32 %v5530_v44, %v5530_v44  ;;  %v5234_v36 = vadd.f32 %v5178_v50, %v12800_v40  ;;  %v12806_v55 = vld [vmem:[#allocation98_spill] sm:$0xff] }
 0x2c0   :  { %12798 = vst [vmem:[#allocation31_spill] sm:$0xff] %v11967_v53  ;;  %5801 = vadd.xlane.f32.xlu0 %v5732_v23  ;;  %v5193_v2 = vmul.f32 %v5137_v26, %v5137_v26  ;;  %v5138_v47 = vsub.f32 %v12801_v43, %v11666_v49  ;;  %v5600_v17 = vmul.f32 %v5544_v30, %v5544_v30  ;;  %v5401_v14 = vpop.permute.xlu1 %5400  ;;  %vm5675_vm14 = vcmp.lt.f32.partialorder %v5619_v22, 100.0  ;;  %v12805_v23 = vld [vmem:[#allocation27_spill] sm:$0xff] }
 0x2c1   :  { %v5248_v6 = vadd.f32 %v5192_v48, %v12802_v34  ;;  %v4786_v38 = vsub.f32 %v12803_v8, %v12796_v11  ;;  %v5531_v39 = vsub.f32 %v5401_v14, %v11788_v19  ;;  %v5457_v13 = vpop.permute.xlu0 %5456  ;;  %v11978_v0 = vadd.f32 %v5586_v60, %v5234_v36  ;;  %v12809_v14 = vld [vmem:[#allocation93_spill] sm:$0xff] }
 0x2c2   :  { %v4841_v4 = vmul.f32 %v4785_v5, %v4785_v5  ;;  %v5731_v61 = vsel %vm5675_vm14, %v3695_v32, 0.0  ;;  %v5545_v50 = vsub.f32 %v5457_v13, %v11824_v57  ;;  %v5180_v44 = vmul.f32 %v5124_v7, %v5124_v7  ;;  %v12807_v32 = vld [vmem:[#allocation115_spill] sm:$0xff] }
 0x2c3   :  { %v11981_v26 = vadd.f32 %v5600_v17, %v5248_v6  ;;  %v5125_v21 = vsub.f32 %v12804_v51, %v12757_v45  ;;  %v5587_v48 = vmul.f32 %v5531_v39, %v5531_v39  ;;  %v5235_v30 = vadd.f32 %v5179_v25, %v12805_v23  ;;  %v12808_v17 = vld [vmem:[#allocation82_spill] sm:$0xff]  ;;  %v12810_v25 = vld [vmem:[#allocation73_spill] sm:$0xff] }
 0x2c4   :  { %5799 = vadd.xlane.f32.xlu0 %v5731_v61  ;;  %v5194_v22 = vmul.f32 %v5138_v47, %v5138_v47  ;;  %v5139_v40 = vsub.f32 %v12806_v55, %v11666_v49  ;;  %v5601_v60 = vmul.f32 %v5545_v50, %v5545_v50  ;;  %v5405_v36 = vpop.permute.xlu1 %5404  ;;  %v5249_v5 = vadd.f32 %v5193_v2, %v4841_v4  ;;  %v12811_v4 = vld [vmem:[#allocation66_spill] sm:$0xff] }
 0x2c5   :  { %v4828_v43 = vmul.f32 %v12807_v32, %v12807_v32  ;;  %v4773_v7 = vsub.f32 %v12809_v14, %v12808_v17  ;;  %v5532_v34 = vsub.f32 %v5405_v36, %v11788_v19  ;;  %v5461_v6 = vpop.permute.xlu0 %5460  ;;  %v11993_v8 = vadd.f32 %v5587_v48, %v5235_v30  ;;  %v12812_v36 = vld [vmem:[#allocation152_spill] sm:$0xff]  ;;  %v12813_v14 = vld [vmem:[#allocation121_spill] sm:$0xff] }
 0x2c6   :  { %v4842_v39 = vmul.f32 %v4786_v38, %v4786_v38  ;;  %v4787_v47 = vsub.f32 %v12810_v25, %v12796_v11  ;;  %v5546_v13 = vsub.f32 %v5461_v6, %v11824_v57  ;;  %v11998_v61 = vadd.f32 %v5601_v60, %v5249_v5 }
 0x2c7   :  { %v5181_v2 = vmul.f32 %v5125_v21, %v5125_v21  ;;  %v5126_v50 = vsub.f32 %v12811_v4, %v12757_v45  ;;  %v5588_v51 = vmul.f32 %v5532_v34, %v5532_v34  ;;  %v5236_v23 = vadd.f32 %v5180_v44, %v4828_v43  ;;  %v12814_v45 = vld [vmem:[#allocation92_spill] sm:$0xff] }
 0x2c8   :  { %v5195_v55 = vmul.f32 %v5139_v40, %v5139_v40  ;;  %v5140_v32 = vsub.f32 %v12812_v36, %v11666_v49  ;;  %v5602_v48 = vmul.f32 %v5546_v13, %v5546_v13  ;;  %v5409_v30 = vpop.permute.xlu1 %5408  ;;  %v5250_v38 = vadd.f32 %v5194_v22, %v4842_v39 }
 0x2c9   :  { %v4774_v25 = vsub.f32 %v12813_v14, %v12808_v17  ;;  %v4829_v53 = vmul.f32 %v4773_v7, %v4773_v7  ;;  %v5533_v60 = vsub.f32 %v5409_v30, %v11788_v19  ;;  %v5465_v5 = vpop.permute.xlu0 %5464  ;;  %v12007_v21 = vadd.f32 %v5588_v51, %v5236_v23  ;;  %v12815_v17 = vld [vmem:[#allocation122_spill] sm:$0xff] }
 0x2ca   :  { %v4788_v34 = vsub.f32 %v12814_v45, %v12796_v11  ;;  %v4843_v44 = vmul.f32 %v4787_v47, %v4787_v47  ;;  %v5547_v40 = vsub.f32 %v5465_v5, %v11824_v57  ;;  %v12012_v43 = vadd.f32 %v5602_v48, %v5250_v38  ;;  %v12816_v48 = vld [vmem:[#allocation94_spill] sm:$0xff] }
 0x2cb   :  { %v5182_v6 = vmul.f32 %v5126_v50, %v5126_v50  ;;  %v5589_v13 = vmul.f32 %v5533_v60, %v5533_v60  ;;  %v5237_v22 = vadd.f32 %v5181_v2, %v4829_v53  ;;  %v5196_v39 = vmul.f32 %v5140_v32, %v5140_v32 }
 0x2cc   :  { %v5141_v7 = vsub.f32 %v12815_v17, %v11666_v49  ;;  %v5603_v4 = vmul.f32 %v5547_v40, %v5547_v40  ;;  %v5413_v36 = vpop.permute.xlu1 %5412  ;;  %v5251_v30 = vadd.f32 %v5195_v55, %v4843_v44  ;;  %v4830_v51 = vmul.f32 %v4774_v25, %v4774_v25 }
 0x2cd   :  { %v5534_v23 = vsub.f32 %v5413_v36, %v11788_v19  ;;  %v5469_v14 = vpop.permute.xlu0 %5468  ;;  %v12017_v45 = vadd.f32 %v5589_v13, %v5237_v22  ;;  %v4844_v47 = vmul.f32 %v4788_v34, %v4788_v34  ;;  %v4789_v38 = vsub.f32 %v12816_v48, %v12796_v11 }
 0x2ce   :  { %v5548_v50 = vsub.f32 %v5469_v14, %v11824_v57  ;;  %v12022_v53 = vadd.f32 %v5603_v4, %v5251_v30  ;;  %v5238_v32 = vadd.f32 %v5182_v6, %v4830_v51  ;;  %v5197_v60 = vmul.f32 %v5141_v7, %v5141_v7  ;;  %v12817_v4 = vld [vmem:[#allocation148_spill] sm:$0xff] }
 0x2cf   :  { %v5590_v2 = vmul.f32 %v5534_v23, %v5534_v23  ;;  %v5252_v55 = vadd.f32 %v5196_v39, %v4844_v47  ;;  %v4845_v13 = vmul.f32 %v4789_v38, %v4789_v38  ;;  %v5142_v30 = vsub.f32 %v12817_v4, %v11666_v49  ;;  %v12818_v39 = vld [vmem:[#allocation95_spill] sm:$0xff]  ;;  %v12819_v47 = vld [vmem:[#allocation5_spill] sm:$0xff] }
 0x2d0   :  { %v5604_v5 = vmul.f32 %v5548_v50, %v5548_v50  ;;  %v5417_v40 = vpop.permute.xlu1 %5416  ;;  %v4790_v48 = vsub.f32 %v12819_v47, %v12796_v11  ;;  %vm5678_vm15 = vcmp.lt.f32.partialorder %v11778_v20, 100.0  ;;  %vm5691_vm0 = vcmp.lt.f32.partialorder %v11867_v27, 100.0 }
 0x2d1   :  { %v5535_v25 = vsub.f32 %v5417_v40, %v11788_v19  ;;  %v5473_v44 = vpop.permute.xlu0 %5472  ;;  %v12025_v17 = vadd.f32 %v5590_v2, %v5238_v32  ;;  %v5253_v7 = vadd.f32 %v5197_v60, %v4845_v13  ;;  %v5198_v49 = vmul.f32 %v5142_v30, %v5142_v30 }
 0x2d2   :  { %v5549_v34 = vsub.f32 %v5473_v44, %v11824_v57  ;;  %v12028_v22 = vadd.f32 %v5604_v5, %v5252_v55  ;;  %v4846_v11 = vmul.f32 %v4790_v48, %v4790_v48  ;;  %vm5692_vm1 = vcmp.lt.f32.partialorder %v11894_v56, 100.0 }
 0x2d3   :  { %v5591_v36 = vmul.f32 %v5535_v25, %v5535_v25  ;;  %v12820_v25 = vld [vmem:[#allocation99_spill] sm:$0xff]  ;;  %vm5693_vm2 = vcmp.lt.f32.partialorder %v11884_v33, 100.0  ;;  %vm5677_vm3 = vcmp.lt.f32.partialorder %v11748_v15, 100.0  ;;  %vm5682_vm4 = vcmp.lt.f32.partialorder %v11812_v12, 100.0 }
 0x2d4   :  { %v5605_v23 = vmul.f32 %v5549_v34, %v5549_v34  ;;  %v5421_v6 = vpop.permute.xlu1 %5420  ;;  %v5254_v27 = vadd.f32 %v5198_v49, %v4846_v11  ;;  %vm5680_vm5 = vcmp.lt.f32.partialorder %v11800_v41, 100.0  ;;  %vm5681_vm6 = vcmp.lt.f32.partialorder %v11780_v24, 100.0 }
 0x2d5   :  { %v5536_v51 = vsub.f32 %v5421_v6, %v11788_v19  ;;  %v12034_v14 = vadd.f32 %v5591_v36, %v12818_v39  ;;  %v7428_v50 = vpop.f32.mrf.mxu0  ;;  %vm5694_vm7 = vcmp.lt.f32.partialorder %v11920_v54, 100.0  ;;  %vm5684_vm8 = vcmp.lt.f32.partialorder %v11832_v46, 100.0 }
 0x2d6   :  { %v7375_v38 = vpop.f32.mrf.mxu1  ;;  %v12039_v2 = vadd.f32 %v5605_v23, %v5253_v7  ;;  %v5748_v34 = vsel %vm5692_vm1, %v7428_v50, 0.0  ;;  %vm5679_vm9 = vcmp.lt.f32.partialorder %v11759_v18, 100.0  ;;  %vm5683_vm10 = vcmp.lt.f32.partialorder %v11802_v29, 100.0 }
 0x2d7   :  { %v5592_v32 = vmul.f32 %v5536_v51, %v5536_v51  ;;  %v5734_v5 = vsel %vm5678_vm15, %v7375_v38, 0.0  ;;  %v4085_v40 = vpop.f32.mrf.mxu0  ;;  %vm5696_vm11 = vcmp.lt.f32.partialorder %v11948_v58, 100.0  ;;  %vm5686_vm12 = vcmp.lt.f32.partialorder %v11850_v31, 100.0 }
 0x2d8   :  { %5805 = vadd.xlane.f32.xlu0 %v5734_v5  ;;  %v3860_v19 = vpop.f32.mrf.mxu1  ;;  %v5747_v60 = vsel %vm5691_vm0, %v4085_v40, 0.0  ;;  %v5477_v55 = vpop.permute.xlu1 %5476  ;;  %vm5695_vm13 = vcmp.lt.f32.partialorder %v11935_v52, 100.0  ;;  %vm5685_vm14 = vcmp.lt.f32.partialorder %v11814_v62, 100.0  ;;  %vm5698_vm15 = vcmp.lt.f32.partialorder %v11978_v0, 100.0 }
 0x2d9   :  { %v12043_v44 = vadd.f32 %v5592_v32, %v12820_v25  ;;  %v5550_v20 = vsub.f32 %v5477_v55, %v11824_v57  ;;  %5831 = vadd.xlane.f32.xlu1 %v5747_v60  ;;  %v5733_v51 = vsel %vm5677_vm3, %v3860_v19, 0.0  ;;  %vm5688_vm0 = vcmp.lt.f32.partialorder %v11862_v63, 100.0 }
 0x2da   :  { %v7378_v13 = vpop.f32.mrf.mxu1  ;;  %vm5697_vm1 = vcmp.lt.f32.partialorder %v11962_v28, 100.0  ;;  %vm5700_vm3 = vcmp.lt.f32.partialorder %v12007_v21, 100.0 }
 0x2db   :  { %v7431_v36 = vpop.f32.mrf.mxu0  ;;  %v5606_v4 = vmul.f32 %v5550_v20, %v5550_v20  ;;  %v5736_v39 = vsel %vm5680_vm5, %v7378_v13, 0.0  ;;  %vm5699_vm5 = vcmp.lt.f32.partialorder %v11993_v8, 100.0  ;;  %v12821_v8 = vlaneseq }
 0x2dc   :  { %5833 = vadd.xlane.f32.xlu0 %v5748_v34  ;;  %v3870_v30 = vpop.f32.mrf.mxu1  ;;  %v5750_v33 = vsel %vm5694_vm7, %v7431_v36, 0.0  ;;  %vm5702_vm7 = vcmp.lt.f32.partialorder %v12025_v17, 100.0 }
 0x2dd   :  { %v4095_v23 = vpop.f32.mrf.mxu0  ;;  %v12049_v7 = vadd.f32 %v5606_v4, %v5254_v27  ;;  %v5735_v41 = vsel %vm5679_vm9, %v3870_v30, 0.0  ;;  %v12073_v4 = vand.u32 127, %v12821_v8  ;;  %vm5706_vm9 = vcmp.lt.f32.partialorder %v11898_v35, 100.0 }
 0x2de   :  { %v5749_v6 = vsel %vm5693_vm2, %v4095_v23, 0.0  ;;  %v7381_v56 = vpop.f32.mrf.mxu1  ;;  %vm5687_vm2 = vcmp.lt.f32.partialorder %v11837_v59, 100.0 }
 0x2df   :  { %5835 = vadd.xlane.f32.xlu1 %v5749_v6  ;;  %v5738_v57 = vsel %vm5682_vm4, %v7381_v56, 0.0  ;;  %v7434_v50 = vpop.f32.mrf.mxu0  ;;  %vm5690_vm4 = vcmp.lt.f32.partialorder %v11879_v3, 100.0  ;;  %v12822_v56 = vld [vmem:[#allocation67_spill] sm:$0xff] }
 0x2e0   :  { %5803 = vadd.xlane.f32.xlu0 %v5733_v51  ;;  %v3880_v47 = vpop.f32.mrf.mxu1  ;;  %v5752_v54 = vsel %vm5696_vm11, %v7434_v50, 0.0  ;;  %vm5708_vm11 = vcmp.lt.f32.partialorder %v11925_v9, 100.0  ;;  %v5956_v50 = vadd.s32 4294967280, %v12073_v4 }
 0x2e1   :  { %v5737_v15 = vsel %vm5681_vm6, %v3880_v47, 0.0  ;;  %v4105_v5 = vpop.f32.mrf.mxu0  ;;  %vm5689_vm6 = vcmp.lt.f32.partialorder %v11853_v42, 100.0  ;;  %v5949_v42 = vadd.s32 4294967288, %v12073_v4 }
 0x2e2   :  { %v7384_v48 = vpop.f32.mrf.mxu1  ;;  %v5751_v46 = vsel %vm5695_vm13, %v4105_v5, 0.0  ;;  %vm5954_vm13 = vcmask 130112  }
 0x2e3   :  { %5813 = vadd.xlane.f32.xlu1 %v5738_v57  ;;  %v5740_v12 = vsel %vm5684_vm8, %v7384_v48, 0.0  ;;  %v7437_v40 = vpop.f32.mrf.mxu0  ;;  %vm5701_vm8 = vcmp.lt.f32.partialorder %v12017_v45, 100.0  ;;  %v12080_v57 = vsub.s32 %v5949_v42, %v12822_v56 }
 0x2e4   :  { %5809 = vadd.xlane.f32.xlu0 %v5736_v39  ;;  %v3890_v38 = vpop.f32.mrf.mxu1  ;;  %v5754_v58 = vsel %vm5698_vm15, %v7437_v40, 0.0  ;;  %v12084_v39 = vsub.s32 %v12073_v4, %v12822_v56  ;;  %vm5704_vm15 = vcmp.lt.f32.partialorder %v12043_v44, 100.0  ;;  %v5970_v44 = vadd.s32 4294967264, %v12073_v4 }
 0x2e5   :  { %v5739_v24 = vsel %vm5683_vm10, %v3890_v38, 0.0  ;;  %v4115_v60 = vpop.f32.mrf.mxu0  ;;  %vm5705_vm10 = vcmp.lt.f32.partialorder %v11908_v16, 100.0  ;;  %v5977_v40 = vadd.s32 4294967256, %v12073_v4 }
 0x2e6   :  { %v7387_v32 = vpop.f32.mrf.mxu1  ;;  %v5753_v52 = vsel %vm5697_vm1, %v4115_v60, 0.0  ;;  %vm5709_vm1 = vcmp.lt.f32.partialorder %v11940_v1, 100.0 }
 0x2e7   :  { %5811 = vadd.xlane.f32.xlu1 %v5737_v15  ;;  %v5742_v18 = vsel %vm5686_vm12, %v7387_v32, 0.0  ;;  %v7440_v25 = vpop.f32.mrf.mxu0  ;;  %vm5703_vm12 = vcmp.lt.f32.partialorder %v12034_v14, 100.0 }
 0x2e8   :  { %5837 = vadd.xlane.f32.xlu0 %v5750_v33  ;;  %v3900_v49 = vpop.f32.mrf.mxu1  ;;  %v5756_v0 = vsel %vm5700_vm3, %v7440_v25, 0.0  ;;  %vm5968_vm3 = vcmask 261312   ;;  %v12110_v25 = vsub.s32 %v5977_v40, %v12822_v56  ;;  %v6026_v40 = vadd.s32 4294967200, %v12073_v4 }
 0x2e9   :  { %v5741_v29 = vsel %vm5685_vm14, %v3900_v49, 0.0  ;;  %v4125_v20 = vpop.f32.mrf.mxu0  ;;  %vm5707_vm14 = vcmp.lt.f32.partialorder %v11911_v37, 100.0 }
 0x2ea   :  { %v7390_v19 = vpop.f32.mrf.mxu1  ;;  %v5755_v28 = vsel %vm5699_vm5, %v4125_v20, 0.0  ;;  %vm5975_vm5 = vcmask 326912  }
 0x2eb   :  { %5817 = vadd.xlane.f32.xlu1 %v5740_v12  ;;  %v5744_v31 = vsel %vm5688_vm0, %v7390_v19, 0.0  ;;  %v7443_v34 = vpop.f32.mrf.mxu0  ;;  %vm5710_vm0 = vcmp.lt.f32.partialorder %v11953_v10, 100.0 }
 0x2ec   :  { %5807 = vadd.xlane.f32.xlu0 %v5735_v41  ;;  %v3910_v55 = vpop.f32.mrf.mxu1  ;;  %v5758_v21 = vsel %vm5702_vm7, %v7443_v34, 0.0 }
 0x2ed   :  { %v5743_v62 = vsel %vm5687_vm2, %v3910_v55, 0.0  ;;  %v4135_v36 = vpop.f32.mrf.mxu0  ;;  %vm5961_vm2 = vcmask 195712  }
 0x2ee   :  { %v7393_v11 = vpop.f32.mrf.mxu1  ;;  %v5757_v3 = vsel %vm5701_vm8, %v4135_v36, 0.0  ;;  %vm5718_vm8 = vcmp.lt.f32.partialorder %v12049_v7, 100.0 }
 0x2ef   :  { %5815 = vadd.xlane.f32.xlu1 %v5739_v24  ;;  %v5746_v63 = vsel %vm5690_vm4, %v7393_v11, 0.0  ;;  %v7446_v30 = vpop.f32.mrf.mxu0  ;;  %vm5712_vm4 = vcmp.lt.f32.partialorder %v11981_v26, 100.0  ;;  %v12823_v26 = vld [vmem:[#allocation31_spill] sm:$0xff] }
 0x2f0   :  { %5841 = vadd.xlane.f32.xlu0 %v5752_v54  ;;  %v3920_v13 = vpop.f32.mrf.mxu1  ;;  %v5760_v24 = vsel %vm5704_vm15, %v7446_v30, 0.0  ;;  %v5963_v54 = vadd.s32 4294967272, %v12073_v4  ;;  %vm5711_vm7 = vcmp.lt.f32.partialorder %v12823_v26, 100.0  ;;  %vm6003_vm15 = vcmask 589312  }
 0x2f1   :  { %v5745_v59 = vsel %vm5689_vm6, %v3920_v13, 0.0  ;;  %v4145_v51 = vpop.f32.mrf.mxu0  ;;  %vm5982_vm6 = vcmask 392512   ;;  %v5984_v13 = vadd.s32 4294967248, %v12073_v4 }
 0x2f2   :  { %v5759_v16 = vsel %vm5703_vm12, %v4145_v51, 0.0  ;;  %v12100_v49 = vsub.s32 %v5963_v54, %v12822_v56  ;;  %v5998_v51 = vadd.s32 4294967232, %v12073_v4  ;;  %vm5713_vm12 = vcmp.lt.f32.partialorder %v11998_v61, 100.0 }
 0x2f3   :  { %5821 = vadd.xlane.f32.xlu1 %v5742_v18  ;;  %v12124_v42 = vsub.s32 %v5984_v13, %v12822_v56 }
 0x2f4   :  { %5839 = vadd.xlane.f32.xlu0 %v5751_v46  ;;  %v12096_v46 = vsub.s32 %v5956_v50, %v12822_v56 }
 0x2f7   :  { %5819 = vadd.xlane.f32.xlu1 %v5741_v29 }
 0x2f8   :  { %5845 = vadd.xlane.f32.xlu0 %v5754_v58 }
 0x2fb   :  { %5825 = vadd.xlane.f32.xlu1 %v5744_v31 }
 0x2fc   :  { %5843 = vadd.xlane.f32.xlu0 %v5753_v52  ;;  %v12106_v52 = vsub.s32 %v5970_v44, %v12822_v56 }
 0x2ff   :  { %5823 = vadd.xlane.f32.xlu1 %v5743_v62 }
 0x300   :  { %5849 = vadd.xlane.f32.xlu0 %v5756_v0 }
 0x303   :  { %5829 = vadd.xlane.f32.xlu1 %v5746_v63 }
 0x304   :  { %5847 = vadd.xlane.f32.xlu0 %v5755_v28 }
 0x307   :  { %5827 = vadd.xlane.f32.xlu1 %v5745_v59  ;;  %v5991_v59 = vadd.s32 4294967240, %v12073_v4 }
 0x308   :  { %5853 = vadd.xlane.f32.xlu0 %v5758_v21 }
 0x30c   :  { %5851 = vadd.xlane.f32.xlu0 %v5757_v3 }
 0x317   :  { %v7481_v27 = vpop.f32.mrf.mxu1 }
 0x318   :  { %v5762_v23 = vsel %vm5706_vm9, %v7481_v27, 0.0  ;;  %vm5714_vm9 = vcmp.lt.f32.partialorder %v12012_v43, 100.0 }
 0x319   :  { %5861 = vadd.xlane.f32.xlu1 %v5762_v23  ;;  %v4310_v17 = vpop.f32.mrf.mxu1  ;;  %v12127_v23 = vsub.s32 %v5991_v59, %v12822_v56 }
 0x31a   :  { %v5761_v6 = vsel %vm5705_vm10, %v4310_v17, 0.0  ;;  %vm5989_vm10 = vcmask 458112  }
 0x31b   :  { %5859 = vadd.xlane.f32.xlu0 %v5761_v6  ;;  %v7484_v45 = vpop.f32.mrf.mxu1 }
 0x31c   :  { %v5764_v35 = vsel %vm5708_vm11, %v7484_v45, 0.0  ;;  %vm5996_vm11 = vcmask 523712  }
 0x31d   :  { %v5778_v47 = vpop.xlane.xlu1 %5777  ;;  %5865 = vadd.xlane.f32.xlu1 %v5764_v35  ;;  %v4320_v15 = vpop.f32.mrf.mxu1  ;;  %v6005_v35 = vadd.s32 4294967224, %v12073_v4 }
 0x31e   :  { %v5953_v48 = vrot.slane %v5778_v47, %v12080_v57  ;;  %v5763_v41 = vsel %vm5707_vm14, %v4320_v15, 0.0  ;;  %vm5716_vm14 = vcmp.lt.f32.partialorder %v12028_v22, 100.0 }
 0x31f   :  { %v5776_v33 = vpop.xlane.xlu0 %5775  ;;  %5855 = vadd.xlane.f32.xlu0 %v5759_v16  ;;  %v7487_v9 = vpop.f32.mrf.mxu1 }
 0x320   :  { %v5948_v12 = vrot.slane %v5776_v33, %v12084_v39  ;;  %v5766_v32 = vsel %vm5710_vm0, %v7487_v9, 0.0  ;;  %v12138_v33 = vsub.s32 %v5998_v51, %v12822_v56  ;;  %v12141_v9 = vsub.s32 %v6005_v35, %v12822_v56 }
 0x321   :  { %5863 = vadd.xlane.f32.xlu1 %v5763_v41  ;;  %v4330_v38 = vpop.f32.mrf.mxu1  ;;  %vm6010_vm0 = vcmask 654912   ;;  %v6012_v41 = vadd.s32 4294967216, %v12073_v4 }
 0x322   :  { %v5955_v14 = vsel %vm5954_vm13, %v5953_v48, %v5948_v12  ;;  %v5765_v10 = vsel %vm5709_vm1, %v4330_v38, 0.0  ;;  %vm5715_vm1 = vcmp.lt.f32.partialorder %v12022_v53, 100.0 }
 0x323   :  { %5857 = vadd.xlane.f32.xlu0 %v5760_v24  ;;  %v7490_v37 = vpop.f32.mrf.mxu1 }
 0x324   :  { %v5782_v5 = vpop.xlane.xlu1 %5781  ;;  %v5768_v0 = vsel %vm5712_vm4, %v7490_v37, 0.0  ;;  %vm5717_vm4 = vcmp.lt.f32.partialorder %v12039_v2, 100.0  ;;  %v12165_v2 = vsub.s32 %v6026_v40, %v12822_v56 }
 0x325   :  { %5869 = vadd.xlane.f32.xlu1 %v5766_v32  ;;  %v4340_v18 = vpop.f32.mrf.mxu1  ;;  %v5967_v55 = vrot.slane %v5782_v5, %v12100_v49  ;;  %v12152_v32 = vsub.s32 %v6012_v41, %v12822_v56 }
 0x326   :  { %v5767_v3 = vsel %vm5711_vm7, %v4340_v18, 0.0  ;;  %vm6017_vm7 = vcmask 720512  }
 0x327   :  { %v7493_v29 = vpop.f32.mrf.mxu1 }
 0x328   :  { %v5780_v58 = vpop.xlane.xlu1 %5779  ;;  %v5770_v17 = vsel %vm5714_vm9, %v7493_v29, 0.0  ;;  %vm6031_vm9 = vcmask 851712  }
 0x329   :  { %v5786_v19 = vpop.xlane.xlu0 %5785  ;;  %5867 = vadd.xlane.f32.xlu1 %v5765_v10  ;;  %v4350_v60 = vpop.f32.mrf.mxu1  ;;  %v5960_v31 = vrot.slane %v5780_v58, %v12096_v46  ;;  %v6033_v10 = vadd.s32 4294967192, %v12073_v4 }
 0x32a   :  { %v5981_v34 = vrot.slane %v5786_v19, %v12110_v25  ;;  %v5769_v15 = vsel %vm5713_vm12, %v4350_v60, 0.0  ;;  %vm6038_vm12 = vcmask 917312  }
 0x32b   :  { %v5962_v1 = vsel %vm5961_vm2, %v5960_v31, %v5955_v14  ;;  %v7496_v62 = vpop.f32.mrf.mxu1  ;;  %v6019_v14 = vadd.s32 4294967208, %v12073_v4  ;;  %v12168_v31 = vsub.s32 %v6033_v10, %v12822_v56 }
 0x32c   :  { %v5969_v11 = vsel %vm5968_vm3, %v5967_v55, %v5962_v1  ;;  %v5772_v48 = vsel %vm5716_vm14, %v7496_v62, 0.0  ;;  %vm6247_vm14 = vcmask 1041409  }
 0x32d   :  { %v5784_v20 = vpop.xlane.xlu0 %5783  ;;  %5873 = vadd.xlane.f32.xlu1 %v5768_v0  ;;  %v4360_v63 = vpop.f32.mrf.mxu1  ;;  %v12155_v5 = vsub.s32 %v6019_v14, %v12822_v56 }
 0x32e   :  { %v5974_v28 = vrot.slane %v5784_v20, %v12106_v52  ;;  %v5771_v24 = vsel %vm5715_vm1, %v4360_v63, 0.0  ;;  %vm6249_vm1 = vcmask 1042434  }
 0x32f   :  { %v7499_v36 = vpop.f32.mrf.mxu1 }
 0x330   :  { %v5976_v21 = vsel %vm5975_vm5, %v5974_v28, %v5969_v11  ;;  %v5774_v8 = vsel %vm5718_vm8, %v7499_v36, 0.0  ;;  %vm6024_vm8 = vcmask 786112  }
 0x331   :  { %v5790_v30 = vpop.xlane.xlu0 %5789  ;;  %v5983_v27 = vsel %vm5982_vm6, %v5981_v34, %v5976_v21  ;;  %5871 = vadd.xlane.f32.xlu1 %v5767_v3  ;;  %5885 = vadd.xlane.f32.xlu0 %v5774_v8  ;;  %v4370_v37 = vpop.f32.mrf.mxu1 }
 0x332   :  { %v5995_v45 = vrot.slane %v5790_v30, %v12127_v23  ;;  %v5773_v18 = vsel %vm5717_vm4, %v4370_v37, 0.0 }
 0x335   :  { %v5788_v6 = vpop.xlane.xlu0 %5787  ;;  %5877 = vadd.xlane.f32.xlu1 %v5770_v17 }
 0x336   :  { %v5988_v7 = vrot.slane %v5788_v6, %v12124_v42 }
 0x338   :  { %v5990_v47 = vsel %vm5989_vm10, %v5988_v7, %v5983_v27 }
 0x339   :  { %v5794_v16 = vpop.xlane.xlu0 %5793  ;;  %v5997_v43 = vsel %vm5996_vm11, %v5995_v45, %v5990_v47  ;;  %5875 = vadd.xlane.f32.xlu1 %v5769_v15 }
 0x33a   :  { %v6009_v38 = vrot.slane %v5794_v16, %v12141_v9 }
 0x33d   :  { %v5792_v12 = vpop.xlane.xlu0 %5791  ;;  %5881 = vadd.xlane.f32.xlu1 %v5772_v48 }
 0x33e   :  { %v6002_v61 = vrot.slane %v5792_v12, %v12138_v33 }
 0x340   :  { %v6004_v50 = vsel %vm6003_vm15, %v6002_v61, %v5997_v43 }
 0x341   :  { %v5798_v54 = vpop.xlane.xlu0 %5797  ;;  %v6011_v22 = vsel %vm6010_vm0, %v6009_v38, %v6004_v50  ;;  %5879 = vadd.xlane.f32.xlu1 %v5771_v24 }
 0x342   :  { %v6023_v29 = vrot.slane %v5798_v54, %v12155_v5 }
 0x345   :  { %v5796_v44 = vpop.xlane.xlu0 %5795  ;;  %5883 = vadd.xlane.f32.xlu1 %v5773_v18 }
 0x346   :  { %v6016_v53 = vrot.slane %v5796_v44, %v12152_v32 }
 0x348   :  { %v6018_v58 = vsel %vm6017_vm7, %v6016_v53, %v6011_v22 }
 0x349   :  { %v5802_v19 = vpop.xlane.xlu0 %5801  ;;  %v6025_v60 = vsel %vm6024_vm8, %v6023_v29, %v6018_v58 }
 0x34a   :  { %v6037_v62 = vrot.slane %v5802_v19, %v12168_v31 }
 0x34d   :  { %v5800_v55 = vpop.xlane.xlu0 %5799 }
 0x34e   :  { %v6030_v1 = vrot.slane %v5800_v55, %v12165_v2 }
 0x350   :  { %v6032_v4 = vsel %vm6031_vm9, %v6030_v1, %v6025_v60 }
 0x351   :  { %v6039_v0 = vsel %vm6038_vm12, %v6037_v62, %v6032_v4 }
 0x361   :  { %v5806_v11 = vpop.xlane.xlu0 %5805 }
 0x362   :  { %v5832_v20 = vpop.xlane.xlu1 %5831  ;;  %v6047_v6 = vrot.slane %v5806_v11, %v12080_v57 }
 0x363   :  { %v6112_v28 = vrot.slane %v5832_v20, %v12084_v39 }
 0x365   :  { %v5834_v63 = vpop.xlane.xlu0 %5833 }
 0x366   :  { %v6116_v13 = vrot.slane %v5834_v63, %v12080_v57 }
 0x368   :  { %v6117_v56 = vsel %vm5954_vm13, %v6116_v13, %v6112_v28  ;;  %v5836_v34 = vpop.xlane.xlu1 %5835 }
 0x369   :  { %v6121_v59 = vrot.slane %v5836_v34, %v12096_v46  ;;  %v5804_v26 = vpop.xlane.xlu0 %5803 }
 0x36a   :  { %v6043_v27 = vrot.slane %v5804_v26, %v12084_v39 }
 0x36b   :  { %v6122_v21 = vsel %vm5961_vm2, %v6121_v59, %v6117_v56 }
 0x36c   :  { %v5814_v36 = vpop.xlane.xlu1 %5813  ;;  %v6048_v45 = vsel %vm5954_vm13, %v6047_v6, %v6043_v27 }
 0x36d   :  { %v5810_v3 = vpop.xlane.xlu0 %5809  ;;  %v6067_v43 = vrot.slane %v5814_v36, %v12110_v25 }
 0x36e   :  { %v6057_v35 = vrot.slane %v5810_v3, %v12100_v49 }
 0x370   :  { %v5812_v8 = vpop.xlane.xlu1 %5811 }
 0x371   :  { %v5838_v30 = vpop.xlane.xlu0 %5837  ;;  %v6062_v47 = vrot.slane %v5812_v8, %v12106_v52 }
 0x372   :  { %v6126_v26 = vrot.slane %v5838_v30, %v12100_v49 }
 0x374   :  { %v5818_v17 = vpop.xlane.xlu1 %5817  ;;  %v6127_v8 = vsel %vm5968_vm3, %v6126_v26, %v6122_v21 }
 0x375   :  { %v5808_v7 = vpop.xlane.xlu0 %5807  ;;  %v6077_v38 = vrot.slane %v5818_v17, %v12127_v23 }
 0x376   :  { %v6052_v51 = vrot.slane %v5808_v7, %v12096_v46 }
 0x378   :  { %v6053_v15 = vsel %vm5961_vm2, %v6052_v51, %v6048_v45  ;;  %v5816_v16 = vpop.xlane.xlu1 %5815 }
 0x379   :  { %v6058_v48 = vsel %vm5968_vm3, %v6057_v35, %v6053_v15  ;;  %v5842_v12 = vpop.xlane.xlu0 %5841  ;;  %v6072_v41 = vrot.slane %v5816_v16, %v12124_v42 }
 0x37a   :  { %v6063_v61 = vsel %vm5975_vm5, %v6062_v47, %v6058_v48  ;;  %v6136_v6 = vrot.slane %v5842_v12, %v12110_v25 }
 0x37b   :  { %v6068_v14 = vsel %vm5982_vm6, %v6067_v43, %v6063_v61 }
 0x37c   :  { %v6073_v50 = vsel %vm5989_vm10, %v6072_v41, %v6068_v14  ;;  %v5822_v24 = vpop.xlane.xlu1 %5821 }
 0x37d   :  { %v5840_v54 = vpop.xlane.xlu0 %5839  ;;  %v6078_v22 = vsel %vm5996_vm11, %v6077_v38, %v6073_v50  ;;  %v6087_v19 = vrot.slane %v5822_v24, %v12141_v9 }
 0x37e   :  { %v6131_v36 = vrot.slane %v5840_v54, %v12106_v52 }
 0x380   :  { %v5820_v37 = vpop.xlane.xlu1 %5819  ;;  %v6132_v27 = vsel %vm5975_vm5, %v6131_v36, %v6127_v8 }
 0x381   :  { %v5846_v18 = vpop.xlane.xlu0 %5845  ;;  %v6082_v53 = vrot.slane %v5820_v37, %v12138_v33  ;;  %v6137_v51 = vsel %vm5982_vm6, %v6136_v6, %v6132_v27 }
 0x382   :  { %v6146_v30 = vrot.slane %v5846_v18, %v12127_v23 }
 0x383   :  { %v6083_v10 = vsel %vm6003_vm15, %v6082_v53, %v6078_v22 }
 0x384   :  { %v5826_v44 = vpop.xlane.xlu1 %5825  ;;  %v6088_v55 = vsel %vm6010_vm0, %v6087_v19, %v6083_v10 }
 0x385   :  { %v5844_v40 = vpop.xlane.xlu0 %5843  ;;  %v6097_v4 = vrot.slane %v5826_v44, %v12155_v5 }
 0x386   :  { %v6141_v17 = vrot.slane %v5844_v40, %v12124_v42 }
 0x388   :  { %v5824_v29 = vpop.xlane.xlu1 %5823  ;;  %v6142_v45 = vsel %vm5989_vm10, %v6141_v17, %v6137_v51 }
 0x389   :  { %v6092_v58 = vrot.slane %v5824_v29, %v12152_v32  ;;  %v5850_v1 = vpop.xlane.xlu0 %5849  ;;  %v6147_v15 = vsel %vm5996_vm11, %v6146_v30, %v6142_v45 }
 0x38a   :  { %v6156_v48 = vrot.slane %v5850_v1, %v12141_v9 }
 0x38b   :  { %v6093_v62 = vsel %vm6017_vm7, %v6092_v58, %v6088_v55 }
 0x38c   :  { %v5830_v60 = vpop.xlane.xlu1 %5829  ;;  %v6098_v28 = vsel %vm6024_vm8, %v6097_v4, %v6093_v62 }
 0x38d   :  { %v6107_v63 = vrot.slane %v5830_v60, %v12168_v31  ;;  %v5848_v56 = vpop.xlane.xlu0 %5847 }
 0x390   :  { %v5828_v11 = vpop.xlane.xlu1 %5827 }
 0x391   :  { %v6102_v20 = vrot.slane %v5828_v11, %v12165_v2  ;;  %v5854_v3 = vpop.xlane.xlu0 %5853 }
 0x392   :  { %v6166_v50 = vrot.slane %v5854_v3, %v12155_v5 }
 0x393   :  { %v6103_v13 = vsel %vm6031_vm9, %v6102_v20, %v6098_v28 }
 0x394   :  { %v6108_v34 = vsel %vm6038_vm12, %v6107_v63, %v6103_v13 }
 0x395   :  { %v6248_v59 = vsel %vm6247_vm14, %v6108_v34, %v6039_v0  ;;  %v5852_v7 = vpop.xlane.xlu0 %5851  ;;  %v6151_v0 = vrot.slane %v5848_v56, %v12138_v33 }
 0x396   :  { %v6161_v16 = vrot.slane %v5852_v7, %v12152_v32 }
 0x397   :  { %v6152_v21 = vsel %vm6003_vm15, %v6151_v0, %v6147_v15 }
 0x398   :  { %v6157_v61 = vsel %vm6010_vm0, %v6156_v48, %v6152_v21 }
 0x399   :  { %v6162_v41 = vsel %vm6017_vm7, %v6161_v16, %v6157_v61 }
 0x39a   :  { %v6167_v54 = vsel %vm6024_vm8, %v6166_v50, %v6162_v41 }
 0x3a2   :  { %v5862_v35 = vpop.xlane.xlu1 %5861 }
 0x3a3   :  { %v6185_v19 = vrot.slane %v5862_v35, %v12080_v57 }
 0x3a4   :  { %v5860_v47 = vpop.xlane.xlu0 %5859 }
 0x3a5   :  { %v6181_v10 = vrot.slane %v5860_v47, %v12084_v39 }
 0x3a6   :  { %v5866_v43 = vpop.xlane.xlu1 %5865 }
 0x3a7   :  { %v6186_v55 = vsel %vm5954_vm13, %v6185_v19, %v6181_v10  ;;  %v6195_v4 = vrot.slane %v5866_v43, %v12100_v49  ;;  %vm6251_vm13 = vcmask 1043459  }
 0x3a8   :  { %v5856_v12 = vpop.xlane.xlu0 %5855 }
 0x3a9   :  { %v6171_v38 = vrot.slane %v5856_v12, %v12165_v2 }
 0x3aa   :  { %v5864_v14 = vpop.xlane.xlu1 %5863 }
 0x3ab   :  { %v6172_v37 = vsel %vm6031_vm9, %v6171_v38, %v6167_v54  ;;  %v6190_v58 = vrot.slane %v5864_v14, %v12096_v46 }
 0x3ac   :  { %v5858_v24 = vpop.xlane.xlu0 %5857 }
 0x3ad   :  { %v6176_v22 = vrot.slane %v5858_v24, %v12168_v31  ;;  %v6191_v1 = vsel %vm5961_vm2, %v6190_v58, %v6186_v55  ;;  %vm6254_vm2 = vcmask 912384  }
 0x3ae   :  { %v5870_v18 = vpop.xlane.xlu1 %5869  ;;  %v6196_v20 = vsel %vm5968_vm3, %v6195_v4, %v6191_v1 }
 0x3af   :  { %v6177_v44 = vsel %vm6038_vm12, %v6176_v22, %v6172_v37  ;;  %v6205_v46 = vrot.slane %v5870_v18, %v12110_v25 }
 0x3b0   :  { %v6250_v53 = vsel %vm6249_vm1, %v6177_v44, %v6248_v59 }
 0x3b2   :  { %v5868_v40 = vpop.xlane.xlu1 %5867 }
 0x3b3   :  { %v6200_v62 = vrot.slane %v5868_v40, %v12106_v52 }
 0x3b5   :  { %v6201_v63 = vsel %vm5975_vm5, %v6200_v62, %v6196_v20 }
 0x3b6   :  { %v5874_v29 = vpop.xlane.xlu1 %5873  ;;  %v6206_v57 = vsel %vm5982_vm6, %v6205_v46, %v6201_v63 }
 0x3b7   :  { %v6215_v52 = vrot.slane %v5874_v29, %v12127_v23 }
 0x3ba   :  { %v5872_v60 = vpop.xlane.xlu1 %5871  ;;  %v5886_v3 = vpop.xlane.xlu0 %5885 }
 0x3bb   :  { %v6210_v39 = vrot.slane %v5872_v60, %v12124_v42  ;;  %v6245_v17 = vrot.slane %v5886_v3, %v12168_v31 }
 0x3bd   :  { %v6211_v13 = vsel %vm5989_vm10, %v6210_v39, %v6206_v57 }
 0x3be   :  { %v5878_v11 = vpop.xlane.xlu1 %5877  ;;  %v6216_v49 = vsel %vm5996_vm11, %v6215_v52, %v6211_v13 }
 0x3bf   :  { %v6225_v26 = vrot.slane %v5878_v11, %v12141_v9 }
 0x3c2   :  { %v5876_v28 = vpop.xlane.xlu1 %5875 }
 0x3c3   :  { %v6220_v56 = vrot.slane %v5876_v28, %v12138_v33 }
 0x3c5   :  { %v6221_v59 = vsel %vm6003_vm15, %v6220_v56, %v6216_v49 }
 0x3c6   :  { %v5882_v34 = vpop.xlane.xlu1 %5881  ;;  %v6226_v25 = vsel %vm6010_vm0, %v6225_v26, %v6221_v59 }
 0x3c7   :  { %v6235_v27 = vrot.slane %v5882_v34, %v12155_v5 }
 0x3ca   :  { %v5880_v36 = vpop.xlane.xlu1 %5879 }
 0x3cb   :  { %v6230_v42 = vrot.slane %v5880_v36, %v12152_v32 }
 0x3cd   :  { %v6231_v8 = vsel %vm6017_vm7, %v6230_v42, %v6226_v25 }
 0x3ce   :  { %v5884_v33 = vpop.xlane.xlu1 %5883  ;;  %v6236_v6 = vsel %vm6024_vm8, %v6235_v27, %v6231_v8 }
 0x3cf   :  { %v6240_v23 = vrot.slane %v5884_v33, %v12165_v2 }
 0x3d1   :  { %v6241_v9 = vsel %vm6031_vm9, %v6240_v23, %v6236_v6 }
 0x3d2   :  { %v6246_v32 = vsel %vm6038_vm12, %v6245_v17, %v6241_v9 }
 0x3d3   :  { %v6252_v7 = vsel %vm6251_vm13, %v6246_v32, %v6250_v53 }
 0x3d4   :  { %v6255_v51 = vsel %vm6254_vm2, %v6252_v7, 0.0 }
 0x3d5   :  { %6256 = vadd.xlane.f32.xlu1 %v6255_v51 }
 0x45e   :  { %v6257_v5 = vpop.xlane.xlu1 %6256 }
 0x45f   :  { %6258 = vst [vmem:[#allocation2] sm:$0xf] %v6257_v5 }
 0x460   :  { %8100 = shalt.err (!%p8097_p4)
}
 0x461   :  { %6268 = dma.vmem_to_hbm [thread:$0]  %s6266_s20, 64, %s12270_s12, [#allocation3]  }
 0x462   :  { %8109 = dma.done.wait [#allocation3], 64  }
 0x463   :  { %8110 = vsyncadd [#allocation3], 4294967232 }
 0x464   :  { %6272 = vsyncpa [#allocation3], 1 }

</bundles_post_ra>
